<compile_context>
chip_gen: v7x
topology: tpu7x:2x2x1
jax: 0.10.0
libtpu: 0.0.40
codegen_flags: <defaults>
</compile_context>

<pallas_src>
import functools

import jax
import jax.numpy as jnp
from jax.experimental import pallas as pl
from jax.experimental.pallas import tpu as pltpu

HIDDEN = 32
NUM_LAYERS = 3
NUM_CLASSES = 5
KEEP_T = 5        # forward() consumes the rnn output at time index 5 -> needs T > 5
SUBLANE = 8


# ---------------------------------------------------------------------------
# In-kernel helper: lane-packed fwd+bwd LSTM recurrence of one layer.
# ---------------------------------------------------------------------------
def _packed_recurrence(gx_ref, hf_ref, hb_ref, whh, *, seq_len, n_steps, batch):
    """Runs the fwd and bwd recurrences of one layer, direction-packed.

    gx_ref : (T*B, 8H) hoisted input projection + bias, time-aligned.
             cols [0:4H] = fwd gates, [4H:8H] = bwd gates, gate order [i,f,o,g].
    hf_ref : (T*B, H) fwd hidden sequence (written, time-aligned).
    hb_ref : (T*B, H) bwd hidden sequence (written, time-aligned).
    whh    : (2H, 8H) block-diagonal recurrent weights (value).
    Packed step s computes fwd time s and bwd time T-1-s.
    """
    H = HIDDEN
    BP = batch
    G4 = 4 * H
    h = None
    c_f = c_b = None
    for s in range(n_steps):                      # fully unrolled (static, small)
        t_b = seq_len - 1 - s
        gx_f = gx_ref[pl.ds(s * BP, BP), pl.ds(0, G4)]       # (BP, 4H) -> 1 vreg
        gx_b = gx_ref[pl.ds(t_b * BP, BP), pl.ds(G4, G4)]    # (BP, 4H) -> 1 vreg
        if s == 0:
            gates_f, gates_b = gx_f, gx_b         # h0 = 0 -> no W_hh term
        else:
            mm = jnp.dot(h, whh, preferred_element_type=jnp.float32)  # (BP, 8H)
            gates_f = gx_f + mm[:, :G4]
            gates_b = gx_b + mm[:, G4:]
        # gate layout [i | f | o | g]: sigmoid over the whole vreg, tanh on g.
        sig_f = jax.nn.sigmoid(gates_f)
        sig_b = jax.nn.sigmoid(gates_b)
        g_f = jnp.tanh(gates_f[:, 3 * H:])
        g_b = jnp.tanh(gates_b[:, 3 * H:])
        if s == 0:                                 # c0 = 0 -> no f*c term
            c_f = sig_f[:, :H] * g_f
            c_b = sig_b[:, :H] * g_b
        else:
            c_f = sig_f[:, H:2 * H] * c_f + sig_f[:, :H] * g_f
            c_b = sig_b[:, H:2 * H] * c_b + sig_b[:, :H] * g_b
        h_f = sig_f[:, 2 * H:3 * H] * jnp.tanh(c_f)
        h_b = sig_b[:, 2 * H:3 * H] * jnp.tanh(c_b)
        h = jnp.concatenate([h_f, h_b], axis=1)    # (BP, 2H) packed state
        hf_ref[pl.ds(s * BP, BP), :] = h_f         # time-aligned staging
        hb_ref[pl.ds(t_b * BP, BP), :] = h_b


# ---------------------------------------------------------------------------
# Fused kernel: 3 x bidirectional LSTM layers + FC + log_softmax, one launch.
#   wstack layout: [0..2] = block-diag W_hh of layers 0..2
#                  [3, 4] = merged W_ih of layers 1, 2
#                  [5]    = FC weight zero-padded to (2H, 8H)
#   bstack layout: [0..2] = merged layer biases, [3] = FC bias zero-padded.
# ---------------------------------------------------------------------------
def _fused_lstm_fc_kernel(x_ref, w0_ref, wstack_ref, bstack_ref, out_ref,
                          gx_ref, hf_ref, hb_ref, *, seq_len, batch):
    H = HIDDEN
    T, BP = seq_len, batch

    # ---- layer 0: merged input projection (single matmul, both directions) --
    gx_ref[...] = (jnp.dot(x_ref[...], w0_ref[...],
                           preferred_element_type=jnp.float32) + bstack_ref[0])
    _packed_recurrence(gx_ref, hf_ref, hb_ref, wstack_ref[0],
                       seq_len=T, n_steps=T, batch=BP)

    # ---- layers 1..2 ---------------------------------------------------------
    for li in range(1, NUM_LAYERS):
        wih = wstack_ref[2 + li]                  # (2H, 8H) merged W_ih
        gx_ref[...] = (
            jnp.dot(hf_ref[...], wih[:H, :], preferred_element_type=jnp.float32)
            + jnp.dot(hb_ref[...], wih[H:, :], preferred_element_type=jnp.float32)
            + bstack_ref[li])
        if li == NUM_LAYERS - 1:
            # Only t == KEEP_T is consumed: fwd needs packed steps 0..KEEP_T,
            # bwd reaches time KEEP_T at packed step T-1-KEEP_T.
            n_steps = max(KEEP_T + 1, T - KEEP_T)
        else:
            n_steps = T
        _packed_recurrence(gx_ref, hf_ref, hb_ref, wstack_ref[li],
                           seq_len=T, n_steps=n_steps, batch=BP)

    # ---- FC(64 -> 5) + log_softmax on the t == KEEP_T features ---------------
    h_f = hf_ref[pl.ds(KEEP_T * BP, BP), :]       # (BP, H)
    h_b = hb_ref[pl.ds(KEEP_T * BP, BP), :]       # (BP, H)
    fcw = wstack_ref[5]                           # (2H, 8H); cols >= C are zero
    logits = (jnp.dot(h_f, fcw[:H, :NUM_CLASSES], preferred_element_type=jnp.float32)
              + jnp.dot(h_b, fcw[H:, :NUM_CLASSES], preferred_element_type=jnp.float32)
              + bstack_ref[3][:, :NUM_CLASSES])   # (BP, C)
    m = jnp.max(logits, axis=-1, keepdims=True)
    lse = jnp.log(jnp.sum(jnp.exp(logits - m), axis=-1, keepdims=True)) + m
    out_ref[...] = logits - lse


# ---------------------------------------------------------------------------
# Parameter init in native PyTorch layout (uniform(-1/sqrt(fan), 1/sqrt(fan))).
# ---------------------------------------------------------------------------
def init_torch_params(key, input_size):
    H, C = HIDDEN, NUM_CLASSES
    k = 1.0 / (H ** 0.5)
    p = {}
    for layer in range(NUM_LAYERS):
        d_in = input_size if layer == 0 else 2 * H
        for suffix in ("", "_reverse"):
            key, k1, k2, k3, k4 = jax.random.split(key, 5)
            p[f"weight_ih_l{layer}{suffix}"] = jax.random.uniform(
                k1, (4 * H, d_in), jnp.float32, -k, k)
            p[f"weight_hh_l{layer}{suffix}"] = jax.random.uniform(
                k2, (4 * H, H), jnp.float32, -k, k)
            p[f"bias_ih_l{layer}{suffix}"] = jax.random.uniform(
                k3, (4 * H,), jnp.float32, -k, k)
            p[f"bias_hh_l{layer}{suffix}"] = jax.random.uniform(
                k4, (4 * H,), jnp.float32, -k, k)
    kfc = 1.0 / ((2 * H) ** 0.5)
    key, kf1, kf2 = jax.random.split(key, 3)
    p["fc_weight"] = jax.random.uniform(kf1, (C, 2 * H), jnp.float32, -kfc, kfc)
    p["fc_bias"] = jax.random.uniform(kf2, (C,), jnp.float32, -kfc, kfc)
    return p


def _gate_reorder(w):
    """Reorder the last axis gate blocks from PyTorch [i,f,g,o] to [i,f,o,g]."""
    H = HIDDEN
    return jnp.concatenate(
        [w[..., :2 * H], w[..., 3 * H:4 * H], w[..., 2 * H:3 * H]], axis=-1)


def pack_params(p):
    """Host-side packing of PyTorch-layout params into the 3 kernel operands."""
    H, C = HIDDEN, NUM_CLASSES
    f32 = jnp.float32

    def merged_wih(layer):          # (d_in, 8H) = [fwd gate cols | bwd gate cols]
        wf = _gate_reorder(p[f"weight_ih_l{layer}"].astype(f32).T)
        wb = _gate_reorder(p[f"weight_ih_l{layer}_reverse"].astype(f32).T)
        return jnp.concatenate([wf, wb], axis=1)

    def blockdiag_whh(layer):       # (2H, 8H) block-diagonal recurrent weights
        wf = _gate_reorder(p[f"weight_hh_l{layer}"].astype(f32).T)
        wb = _gate_reorder(p[f"weight_hh_l{layer}_reverse"].astype(f32).T)
        z = jnp.zeros((H, 4 * H), f32)
        return jnp.concatenate([jnp.concatenate([wf, z], axis=1),
                                jnp.concatenate([z, wb], axis=1)], axis=0)

    def merged_bias(layer):         # (1, 8H)   b_ih + b_hh, per direction
        bf = _gate_reorder((p[f"bias_ih_l{layer}"]
                            + p[f"bias_hh_l{layer}"]).astype(f32).reshape(1, 4 * H))
        bb = _gate_reorder((p[f"bias_ih_l{layer}_reverse"]
                            + p[f"bias_hh_l{layer}_reverse"]).astype(f32).reshape(1, 4 * H))
        return jnp.concatenate([bf, bb], axis=1)

    w0 = merged_wih(0)                                                    # (D, 8H)
    fc_w = jnp.zeros((2 * H, 8 * H), f32).at[:, :C].set(p["fc_weight"].astype(f32).T)
    wstack = jnp.stack([blockdiag_whh(0), blockdiag_whh(1), blockdiag_whh(2),
                        merged_wih(1), merged_wih(2), fc_w])              # (6, 2H, 8H)
    fc_b = jnp.zeros((1, 8 * H), f32).at[:, :C].set(p["fc_bias"].astype(f32))
    bstack = jnp.stack([merged_bias(0), merged_bias(1), merged_bias(2), fc_b])  # (4,1,8H)
    return {"w0": w0, "wstack": wstack, "bstack": bstack}


# ---------------------------------------------------------------------------
# Forward pass matching lstm_encoder.forward.
# ---------------------------------------------------------------------------
@jax.jit
def lstm_encoder_forward(x, packed):
    B, T, D = x.shape                              # batch_first, like PyTorch
    x = x.astype(jnp.float32)                      # x.float()
    BP = max(SUBLANE, -(-B // SUBLANE) * SUBLANE)  # pad batch to a sublane tile
    x_tm = jnp.transpose(x, (1, 0, 2))             # time-major (T, B, D)
    if BP != B:
        x_tm = jnp.pad(x_tm, ((0, 0), (0, BP - B), (0, 0)))
    x_flat = x_tm.reshape(T * BP, D)               # (T*BP, D)

    out = pl.pallas_call(
        functools.partial(_fused_lstm_fc_kernel, seq_len=T, batch=BP),
        out_shape=jax.ShapeDtypeStruct((BP, NUM_CLASSES), jnp.float32),
        scratch_shapes=[
            pltpu.VMEM((T * BP, 8 * HIDDEN), jnp.float32),   # gx (hoisted gates)
            pltpu.VMEM((T * BP, HIDDEN), jnp.float32),       # fwd hidden sequence
            pltpu.VMEM((T * BP, HIDDEN), jnp.float32),       # bwd hidden sequence
        ],
    )(x_flat, packed["w0"], packed["wstack"], packed["bstack"])
    return out[:B]


# ---------------------------------------------------------------------------
# Pure-JAX reference (XLA) using the PyTorch-layout params, for validation.
# ---------------------------------------------------------------------------
def _reference_forward(x, p):
    x = x.astype(jnp.float32)
    B, T, _ = x.shape
    H = HIDDEN
    seq = x                                        # (B, T, d_in)
    for layer in range(NUM_LAYERS):
        dir_outs = []
        for suffix, times in (("", range(T)), ("_reverse", range(T - 1, -1, -1))):
            wih = p[f"weight_ih_l{layer}{suffix}"]
            whh = p[f"weight_hh_l{layer}{suffix}"]
            b = p[f"bias_ih_l{layer}{suffix}"] + p[f"bias_hh_l{layer}{suffix}"]
            h = jnp.zeros((B, H), jnp.float32)
            c = jnp.zeros((B, H), jnp.float32)
            hs = [None] * T
            for t in times:
                g = seq[:, t, :] @ wih.T + h @ whh.T + b
                i_g = jax.nn.sigmoid(g[:, :H])
                f_g = jax.nn.sigmoid(g[:, H:2 * H])
                g_g = jnp.tanh(g[:, 2 * H:3 * H])
                o_g = jax.nn.sigmoid(g[:, 3 * H:])
                c = f_g * c + i_g * g_g
                h = o_g * jnp.tanh(c)
                hs[t] = h
            dir_outs.append(jnp.stack(hs, axis=1))   # (B, T, H)
        seq = jnp.concatenate(dir_outs, axis=-1)     # (B, T, 2H)
    feat = seq[:, KEEP_T]                            # (B, 2H)
    logits = feat @ p["fc_weight"].T + p["fc_bias"]
    return jax.nn.log_softmax(logits, axis=-1)


if __name__ == "__main__":
    B, T, D_IN = 2, 8, 16  # seq length must be > 5 because of x[:, 5]
    key = jax.random.PRNGKey(0)
    kx, kp = jax.random.split(key)
    x = jax.random.normal(kx, (B, T, D_IN), jnp.float32)
    torch_params = init_torch_params(kp, D_IN)
    packed = pack_params(torch_params)

    out = lstm_encoder_forward(x, packed)
    jax.block_until_ready(out)
    assert out.shape == (B, NUM_CLASSES)
    # log_softmax rows exp-sum to 1
    assert jnp.allclose(jnp.sum(jnp.exp(out), axis=1), 1.0, atol=1e-4)
    # match the pure-JAX reference of the PyTorch module (validates the
    # gate reordering / block-diagonal / merged-weight packing).
    ref = _reference_forward(x, torch_params)
    assert jnp.allclose(out, ref, atol=2e-3, rtol=2e-3), (out, ref)
    print("KERNEL_OK")
</pallas_src>

<mosaic_0001>
module attributes {stable_mosaic.version = 11 : i64} {
  func.func @_fused_lstm_fc_kernel(%arg0: memref<64x16xf32, #tpu.memory_space<vmem>>, %arg1: memref<16x256xf32, #tpu.memory_space<vmem>>, %arg2: memref<6x64x256xf32, #tpu.memory_space<vmem>>, %arg3: memref<4x1x256xf32, #tpu.memory_space<vmem>>, %arg4: memref<8x5xf32, #tpu.memory_space<vmem>>, %arg5: memref<64x256xf32, #tpu.memory_space<vmem>>, %arg6: memref<64x32xf32, #tpu.memory_space<vmem>>, %arg7: memref<64x32xf32, #tpu.memory_space<vmem>>) attributes {dimension_semantics = [], scalar_prefetch = 0 : i64, scratch_operands = 3 : i64, tpu.core_type = #tpu.core_type<tc>} {
    %c0 = arith.constant 0 : index
    %c0_0 = arith.constant 0 : index
    %0 = vector.load %arg0[%c0, %c0_0] : memref<64x16xf32, #tpu.memory_space<vmem>>, vector<64x16xf32>
    %c0_1 = arith.constant 0 : index
    %c0_2 = arith.constant 0 : index
    %1 = vector.load %arg1[%c0_1, %c0_2] : memref<16x256xf32, #tpu.memory_space<vmem>>, vector<16x256xf32>
    %cst = arith.constant dense<0.000000e+00> : vector<64x256xf32>
    %2 = tpu.matmul %0, %1, %cst {dimension_numbers = #tpu.dot_dimension_numbers<[1], [0], [0], [1], [0, 0, 1, 1], [], []>} : vector<64x16xf32>, vector<16x256xf32>, vector<64x256xf32> -> vector<64x256xf32>
    %c0_3 = arith.constant 0 : index
    %c0_4 = arith.constant 0 : index
    %c0_5 = arith.constant 0 : index
    %3 = vector.load %arg3[%c0_3, %c0_4, %c0_5] : memref<4x1x256xf32, #tpu.memory_space<vmem>>, vector<1x1x256xf32>
    %4 = vector.shape_cast %3 : vector<1x1x256xf32> to vector<1x256xf32>
    %5 = vector.broadcast %4 : vector<1x256xf32> to vector<64x256xf32>
    %6 = arith.addf %2, %5 : vector<64x256xf32>
    %c0_6 = arith.constant 0 : index
    %c0_7 = arith.constant 0 : index
    %7 = vector.load %arg5[%c0_6, %c0_7] : memref<64x256xf32, #tpu.memory_space<vmem>>, vector<64x256xf32>
    tpu.vector_store %arg5[%c0_6, %c0_7], %6 {strides = array<i32>} : memref<64x256xf32, #tpu.memory_space<vmem>>, vector<64x256xf32>,
    %c0_8 = arith.constant 0 : index
    %c0_9 = arith.constant 0 : index
    %c0_10 = arith.constant 0 : index
    %8 = vector.load %arg2[%c0_8, %c0_9, %c0_10] : memref<6x64x256xf32, #tpu.memory_space<vmem>>, vector<1x64x256xf32>
    %9 = vector.shape_cast %8 : vector<1x64x256xf32> to vector<64x256xf32>
    %c0_11 = arith.constant 0 : index
    %c0_12 = arith.constant 0 : index
    %10 = vector.load %arg5[%c0_11, %c0_12] : memref<64x256xf32, #tpu.memory_space<vmem>>, vector<8x128xf32>
    %c56 = arith.constant 56 : index
    %c128 = arith.constant 128 : index
    %11 = vector.load %arg5[%c56, %c128] : memref<64x256xf32, #tpu.memory_space<vmem>>, vector<8x128xf32>
    %12 = arith.negf %10 : vector<8x128xf32>
    %13 = math.exp %12 : vector<8x128xf32>
    %cst_13 = arith.constant 1.000000e+00 : f32
    %14 = vector.broadcast %cst_13 : f32 to vector<8x128xf32>
    %15 = arith.addf %14, %13 : vector<8x128xf32>
    %16 = arith.divf %14, %15 : vector<8x128xf32>
    %17 = arith.negf %11 : vector<8x128xf32>
    %18 = math.exp %17 : vector<8x128xf32>
    %cst_14 = arith.constant 1.000000e+00 : f32
    %19 = vector.broadcast %cst_14 : f32 to vector<8x128xf32>
    %20 = arith.addf %19, %18 : vector<8x128xf32>
    %21 = arith.divf %19, %20 : vector<8x128xf32>
    %22 = vector.extract_strided_slice %10 {offsets = [0, 96], sizes = [8, 32], strides = [1, 1]} : vector<8x128xf32> to vector<8x32xf32>
    %23 = math.tanh %22 : vector<8x32xf32>
    %24 = vector.extract_strided_slice %11 {offsets = [0, 96], sizes = [8, 32], strides = [1, 1]} : vector<8x128xf32> to vector<8x32xf32>
    %25 = math.tanh %24 : vector<8x32xf32>
    %26 = vector.extract_strided_slice %16 {offsets = [0, 0], sizes = [8, 32], strides = [1, 1]} : vector<8x128xf32> to vector<8x32xf32>
    %27 = arith.mulf %26, %23 : vector<8x32xf32>
    %28 = vector.extract_strided_slice %21 {offsets = [0, 0], sizes = [8, 32], strides = [1, 1]} : vector<8x128xf32> to vector<8x32xf32>
    %29 = arith.mulf %28, %25 : vector<8x32xf32>
    %30 = vector.extract_strided_slice %16 {offsets = [0, 64], sizes = [8, 32], strides = [1, 1]} : vector<8x128xf32> to vector<8x32xf32>
    %31 = math.tanh %27 : vector<8x32xf32>
    %32 = arith.mulf %30, %31 : vector<8x32xf32>
    %33 = vector.extract_strided_slice %21 {offsets = [0, 64], sizes = [8, 32], strides = [1, 1]} : vector<8x128xf32> to vector<8x32xf32>
    %34 = math.tanh %29 : vector<8x32xf32>
    %35 = arith.mulf %33, %34 : vector<8x32xf32>
    %36 = tpu.concatenate %32, %35 in 1 : vector<8x32xf32>, vector<8x32xf32> -> vector<8x64xf32>
    %c0_15 = arith.constant 0 : index
    %c0_16 = arith.constant 0 : index
    %37 = vector.load %arg6[%c0_15, %c0_16] : memref<64x32xf32, #tpu.memory_space<vmem>>, vector<8x32xf32>
    tpu.vector_store %arg6[%c0_15, %c0_16], %32 {strides = array<i32>} : memref<64x32xf32, #tpu.memory_space<vmem>>, vector<8x32xf32>,
    %c56_17 = arith.constant 56 : index
    %c0_18 = arith.constant 0 : index
    %38 = vector.load %arg7[%c56_17, %c0_18] : memref<64x32xf32, #tpu.memory_space<vmem>>, vector<8x32xf32>
    tpu.vector_store %arg7[%c56_17, %c0_18], %35 {strides = array<i32>} : memref<64x32xf32, #tpu.memory_space<vmem>>, vector<8x32xf32>,
    %c8 = arith.constant 8 : index
    %c0_19 = arith.constant 0 : index
    %39 = vector.load %arg5[%c8, %c0_19] : memref<64x256xf32, #tpu.memory_space<vmem>>, vector<8x128xf32>
    %c48 = arith.constant 48 : index
    %c128_20 = arith.constant 128 : index
    %40 = vector.load %arg5[%c48, %c128_20] : memref<64x256xf32, #tpu.memory_space<vmem>>, vector<8x128xf32>
    %cst_21 = arith.constant dense<0.000000e+00> : vector<8x256xf32>
    %41 = tpu.matmul %36, %9, %cst_21 {dimension_numbers = #tpu.dot_dimension_numbers<[1], [0], [0], [1], [0, 0, 1, 1], [], []>} : vector<8x64xf32>, vector<64x256xf32>, vector<8x256xf32> -> vector<8x256xf32>
    %42 = vector.extract_strided_slice %41 {offsets = [0, 0], sizes = [8, 128], strides = [1, 1]} : vector<8x256xf32> to vector<8x128xf32>
    %43 = arith.addf %39, %42 : vector<8x128xf32>
    %44 = vector.extract_strided_slice %41 {offsets = [0, 128], sizes = [8, 128], strides = [1, 1]} : vector<8x256xf32> to vector<8x128xf32>
    %45 = arith.addf %40, %44 : vector<8x128xf32>
    %46 = arith.negf %43 : vector<8x128xf32>
    %47 = math.exp %46 : vector<8x128xf32>
    %cst_22 = arith.constant 1.000000e+00 : f32
    %48 = vector.broadcast %cst_22 : f32 to vector<8x128xf32>
    %49 = arith.addf %48, %47 : vector<8x128xf32>
    %50 = arith.divf %48, %49 : vector<8x128xf32>
    %51 = arith.negf %45 : vector<8x128xf32>
    %52 = math.exp %51 : vector<8x128xf32>
    %cst_23 = arith.constant 1.000000e+00 : f32
    %53 = vector.broadcast %cst_23 : f32 to vector<8x128xf32>
    %54 = arith.addf %53, %52 : vector<8x128xf32>
    %55 = arith.divf %53, %54 : vector<8x128xf32>
    %56 = vector.extract_strided_slice %43 {offsets = [0, 96], sizes = [8, 32], strides = [1, 1]} : vector<8x128xf32> to vector<8x32xf32>
    %57 = math.tanh %56 : vector<8x32xf32>
    %58 = vector.extract_strided_slice %45 {offsets = [0, 96], sizes = [8, 32], strides = [1, 1]} : vector<8x128xf32> to vector<8x32xf32>
    %59 = math.tanh %58 : vector<8x32xf32>
    %60 = vector.extract_strided_slice %50 {offsets = [0, 32], sizes = [8, 32], strides = [1, 1]} : vector<8x128xf32> to vector<8x32xf32>
    %61 = arith.mulf %60, %27 : vector<8x32xf32>
    %62 = vector.extract_strided_slice %50 {offsets = [0, 0], sizes = [8, 32], strides = [1, 1]} : vector<8x128xf32> to vector<8x32xf32>
    %63 = arith.mulf %62, %57 : vector<8x32xf32>
    %64 = arith.addf %61, %63 : vector<8x32xf32>
    %65 = vector.extract_strided_slice %55 {offsets = [0, 32], sizes = [8, 32], strides = [1, 1]} : vector<8x128xf32> to vector<8x32xf32>
    %66 = arith.mulf %65, %29 : vector<8x32xf32>
    %67 = vector.extract_strided_slice %55 {offsets = [0, 0], sizes = [8, 32], strides = [1, 1]} : vector<8x128xf32> to vector<8x32xf32>
    %68 = arith.mulf %67, %59 : vector<8x32xf32>
    %69 = arith.addf %66, %68 : vector<8x32xf32>
    %70 = vector.extract_strided_slice %50 {offsets = [0, 64], sizes = [8, 32], strides = [1, 1]} : vector<8x128xf32> to vector<8x32xf32>
    %71 = math.tanh %64 : vector<8x32xf32>
    %72 = arith.mulf %70, %71 : vector<8x32xf32>
    %73 = vector.extract_strided_slice %55 {offsets = [0, 64], sizes = [8, 32], strides = [1, 1]} : vector<8x128xf32> to vector<8x32xf32>
    %74 = math.tanh %69 : vector<8x32xf32>
    %75 = arith.mulf %73, %74 : vector<8x32xf32>
    %76 = tpu.concatenate %72, %75 in 1 : vector<8x32xf32>, vector<8x32xf32> -> vector<8x64xf32>
    %c8_24 = arith.constant 8 : index
    %c0_25 = arith.constant 0 : index
    %77 = vector.load %arg6[%c8_24, %c0_25] : memref<64x32xf32, #tpu.memory_space<vmem>>, vector<8x32xf32>
    tpu.vector_store %arg6[%c8_24, %c0_25], %72 {strides = array<i32>} : memref<64x32xf32, #tpu.memory_space<vmem>>, vector<8x32xf32>,
    %c48_26 = arith.constant 48 : index
    %c0_27 = arith.constant 0 : index
    %78 = vector.load %arg7[%c48_26, %c0_27] : memref<64x32xf32, #tpu.memory_space<vmem>>, vector<8x32xf32>
    tpu.vector_store %arg7[%c48_26, %c0_27], %75 {strides = array<i32>} : memref<64x32xf32, #tpu.memory_space<vmem>>, vector<8x32xf32>,
    %c16 = arith.constant 16 : index
    %c0_28 = arith.constant 0 : index
    %79 = vector.load %arg5[%c16, %c0_28] : memref<64x256xf32, #tpu.memory_space<vmem>>, vector<8x128xf32>
    %c40 = arith.constant 40 : index
    %c128_29 = arith.constant 128 : index
    %80 = vector.load %arg5[%c40, %c128_29] : memref<64x256xf32, #tpu.memory_space<vmem>>, vector<8x128xf32>
    %cst_30 = arith.constant dense<0.000000e+00> : vector<8x256xf32>
    %81 = tpu.matmul %76, %9, %cst_30 {dimension_numbers = #tpu.dot_dimension_numbers<[1], [0], [0], [1], [0, 0, 1, 1], [], []>} : vector<8x64xf32>, vector<64x256xf32>, vector<8x256xf32> -> vector<8x256xf32>
    %82 = vector.extract_strided_slice %81 {offsets = [0, 0], sizes = [8, 128], strides = [1, 1]} : vector<8x256xf32> to vector<8x128xf32>
    %83 = arith.addf %79, %82 : vector<8x128xf32>
    %84 = vector.extract_strided_slice %81 {offsets = [0, 128], sizes = [8, 128], strides = [1, 1]} : vector<8x256xf32> to vector<8x128xf32>
    %85 = arith.addf %80, %84 : vector<8x128xf32>
    %86 = arith.negf %83 : vector<8x128xf32>
    %87 = math.exp %86 : vector<8x128xf32>
    %cst_31 = arith.constant 1.000000e+00 : f32
    %88 = vector.broadcast %cst_31 : f32 to vector<8x128xf32>
    %89 = arith.addf %88, %87 : vector<8x128xf32>
    %90 = arith.divf %88, %89 : vector<8x128xf32>
    %91 = arith.negf %85 : vector<8x128xf32>
    %92 = math.exp %91 : vector<8x128xf32>
    %cst_32 = arith.constant 1.000000e+00 : f32
    %93 = vector.broadcast %cst_32 : f32 to vector<8x128xf32>
    %94 = arith.addf %93, %92 : vector<8x128xf32>
    %95 = arith.divf %93, %94 : vector<8x128xf32>
    %96 = vector.extract_strided_slice %83 {offsets = [0, 96], sizes = [8, 32], strides = [1, 1]} : vector<8x128xf32> to vector<8x32xf32>
    %97 = math.tanh %96 : vector<8x32xf32>
    %98 = vector.extract_strided_slice %85 {offsets = [0, 96], sizes = [8, 32], strides = [1, 1]} : vector<8x128xf32> to vector<8x32xf32>
    %99 = math.tanh %98 : vector<8x32xf32>
    %100 = vector.extract_strided_slice %90 {offsets = [0, 32], sizes = [8, 32], strides = [1, 1]} : vector<8x128xf32> to vector<8x32xf32>
    %101 = arith.mulf %100, %64 : vector<8x32xf32>
    %102 = vector.extract_strided_slice %90 {offsets = [0, 0], sizes = [8, 32], strides = [1, 1]} : vector<8x128xf32> to vector<8x32xf32>
    %103 = arith.mulf %102, %97 : vector<8x32xf32>
    %104 = arith.addf %101, %103 : vector<8x32xf32>
    %105 = vector.extract_strided_slice %95 {offsets = [0, 32], sizes = [8, 32], strides = [1, 1]} : vector<8x128xf32> to vector<8x32xf32>
    %106 = arith.mulf %105, %69 : vector<8x32xf32>
    %107 = vector.extract_strided_slice %95 {offsets = [0, 0], sizes = [8, 32], strides = [1, 1]} : vector<8x128xf32> to vector<8x32xf32>
    %108 = arith.mulf %107, %99 : vector<8x32xf32>
    %109 = arith.addf %106, %108 : vector<8x32xf32>
    %110 = vector.extract_strided_slice %90 {offsets = [0, 64], sizes = [8, 32], strides = [1, 1]} : vector<8x128xf32> to vector<8x32xf32>
    %111 = math.tanh %104 : vector<8x32xf32>
    %112 = arith.mulf %110, %111 : vector<8x32xf32>
    %113 = vector.extract_strided_slice %95 {offsets = [0, 64], sizes = [8, 32], strides = [1, 1]} : vector<8x128xf32> to vector<8x32xf32>
    %114 = math.tanh %109 : vector<8x32xf32>
    %115 = arith.mulf %113, %114 : vector<8x32xf32>
    %116 = tpu.concatenate %112, %115 in 1 : vector<8x32xf32>, vector<8x32xf32> -> vector<8x64xf32>
    %c16_33 = arith.constant 16 : index
    %c0_34 = arith.constant 0 : index
    %117 = vector.load %arg6[%c16_33, %c0_34] : memref<64x32xf32, #tpu.memory_space<vmem>>, vector<8x32xf32>
    tpu.vector_store %arg6[%c16_33, %c0_34], %112 {strides = array<i32>} : memref<64x32xf32, #tpu.memory_space<vmem>>, vector<8x32xf32>,
    %c40_35 = arith.constant 40 : index
    %c0_36 = arith.constant 0 : index
    %118 = vector.load %arg7[%c40_35, %c0_36] : memref<64x32xf32, #tpu.memory_space<vmem>>, vector<8x32xf32>
    tpu.vector_store %arg7[%c40_35, %c0_36], %115 {strides = array<i32>} : memref<64x32xf32, #tpu.memory_space<vmem>>, vector<8x32xf32>,
    %c24 = arith.constant 24 : index
    %c0_37 = arith.constant 0 : index
    %119 = vector.load %arg5[%c24, %c0_37] : memref<64x256xf32, #tpu.memory_space<vmem>>, vector<8x128xf32>
    %c32 = arith.constant 32 : index
    %c128_38 = arith.constant 128 : index
    %120 = vector.load %arg5[%c32, %c128_38] : memref<64x256xf32, #tpu.memory_space<vmem>>, vector<8x128xf32>
    %cst_39 = arith.constant dense<0.000000e+00> : vector<8x256xf32>
    %121 = tpu.matmul %116, %9, %cst_39 {dimension_numbers = #tpu.dot_dimension_numbers<[1], [0], [0], [1], [0, 0, 1, 1], [], []>} : vector<8x64xf32>, vector<64x256xf32>, vector<8x256xf32> -> vector<8x256xf32>
    %122 = vector.extract_strided_slice %121 {offsets = [0, 0], sizes = [8, 128], strides = [1, 1]} : vector<8x256xf32> to vector<8x128xf32>
    %123 = arith.addf %119, %122 : vector<8x128xf32>
    %124 = vector.extract_strided_slice %121 {offsets = [0, 128], sizes = [8, 128], strides = [1, 1]} : vector<8x256xf32> to vector<8x128xf32>
    %125 = arith.addf %120, %124 : vector<8x128xf32>
    %126 = arith.negf %123 : vector<8x128xf32>
    %127 = math.exp %126 : vector<8x128xf32>
    %cst_40 = arith.constant 1.000000e+00 : f32
    %128 = vector.broadcast %cst_40 : f32 to vector<8x128xf32>
    %129 = arith.addf %128, %127 : vector<8x128xf32>
    %130 = arith.divf %128, %129 : vector<8x128xf32>
    %131 = arith.negf %125 : vector<8x128xf32>
    %132 = math.exp %131 : vector<8x128xf32>
    %cst_41 = arith.constant 1.000000e+00 : f32
    %133 = vector.broadcast %cst_41 : f32 to vector<8x128xf32>
    %134 = arith.addf %133, %132 : vector<8x128xf32>
    %135 = arith.divf %133, %134 : vector<8x128xf32>
    %136 = vector.extract_strided_slice %123 {offsets = [0, 96], sizes = [8, 32], strides = [1, 1]} : vector<8x128xf32> to vector<8x32xf32>
    %137 = math.tanh %136 : vector<8x32xf32>
    %138 = vector.extract_strided_slice %125 {offsets = [0, 96], sizes = [8, 32], strides = [1, 1]} : vector<8x128xf32> to vector<8x32xf32>
    %139 = math.tanh %138 : vector<8x32xf32>
    %140 = vector.extract_strided_slice %130 {offsets = [0, 32], sizes = [8, 32], strides = [1, 1]} : vector<8x128xf32> to vector<8x32xf32>
    %141 = arith.mulf %140, %104 : vector<8x32xf32>
    %142 = vector.extract_strided_slice %130 {offsets = [0, 0], sizes = [8, 32], strides = [1, 1]} : vector<8x128xf32> to vector<8x32xf32>
    %143 = arith.mulf %142, %137 : vector<8x32xf32>
    %144 = arith.addf %141, %143 : vector<8x32xf32>
    %145 = vector.extract_strided_slice %135 {offsets = [0, 32], sizes = [8, 32], strides = [1, 1]} : vector<8x128xf32> to vector<8x32xf32>
    %146 = arith.mulf %145, %109 : vector<8x32xf32>
    %147 = vector.extract_strided_slice %135 {offsets = [0, 0], sizes = [8, 32], strides = [1, 1]} : vector<8x128xf32> to vector<8x32xf32>
    %148 = arith.mulf %147, %139 : vector<8x32xf32>
    %149 = arith.addf %146, %148 : vector<8x32xf32>
    %150 = vector.extract_strided_slice %130 {offsets = [0, 64], sizes = [8, 32], strides = [1, 1]} : vector<8x128xf32> to vector<8x32xf32>
    %151 = math.tanh %144 : vector<8x32xf32>
    %152 = arith.mulf %150, %151 : vector<8x32xf32>
    %153 = vector.extract_strided_slice %135 {offsets = [0, 64], sizes = [8, 32], strides = [1, 1]} : vector<8x128xf32> to vector<8x32xf32>
    %154 = math.tanh %149 : vector<8x32xf32>
    %155 = arith.mulf %153, %154 : vector<8x32xf32>
    %156 = tpu.concatenate %152, %155 in 1 : vector<8x32xf32>, vector<8x32xf32> -> vector<8x64xf32>
    %c24_42 = arith.constant 24 : index
    %c0_43 = arith.constant 0 : index
    %157 = vector.load %arg6[%c24_42, %c0_43] : memref<64x32xf32, #tpu.memory_space<vmem>>, vector<8x32xf32>
    tpu.vector_store %arg6[%c24_42, %c0_43], %152 {strides = array<i32>} : memref<64x32xf32, #tpu.memory_space<vmem>>, vector<8x32xf32>,
    %c32_44 = arith.constant 32 : index
    %c0_45 = arith.constant 0 : index
    %158 = vector.load %arg7[%c32_44, %c0_45] : memref<64x32xf32, #tpu.memory_space<vmem>>, vector<8x32xf32>
    tpu.vector_store %arg7[%c32_44, %c0_45], %155 {strides = array<i32>} : memref<64x32xf32, #tpu.memory_space<vmem>>, vector<8x32xf32>,
    %c32_46 = arith.constant 32 : index
    %c0_47 = arith.constant 0 : index
    %159 = vector.load %arg5[%c32_46, %c0_47] : memref<64x256xf32, #tpu.memory_space<vmem>>, vector<8x128xf32>
    %c24_48 = arith.constant 24 : index
    %c128_49 = arith.constant 128 : index
    %160 = vector.load %arg5[%c24_48, %c128_49] : memref<64x256xf32, #tpu.memory_space<vmem>>, vector<8x128xf32>
    %cst_50 = arith.constant dense<0.000000e+00> : vector<8x256xf32>
    %161 = tpu.matmul %156, %9, %cst_50 {dimension_numbers = #tpu.dot_dimension_numbers<[1], [0], [0], [1], [0, 0, 1, 1], [], []>} : vector<8x64xf32>, vector<64x256xf32>, vector<8x256xf32> -> vector<8x256xf32>
    %162 = vector.extract_strided_slice %161 {offsets = [0, 0], sizes = [8, 128], strides = [1, 1]} : vector<8x256xf32> to vector<8x128xf32>
    %163 = arith.addf %159, %162 : vector<8x128xf32>
    %164 = vector.extract_strided_slice %161 {offsets = [0, 128], sizes = [8, 128], strides = [1, 1]} : vector<8x256xf32> to vector<8x128xf32>
    %165 = arith.addf %160, %164 : vector<8x128xf32>
    %166 = arith.negf %163 : vector<8x128xf32>
    %167 = math.exp %166 : vector<8x128xf32>
    %cst_51 = arith.constant 1.000000e+00 : f32
    %168 = vector.broadcast %cst_51 : f32 to vector<8x128xf32>
    %169 = arith.addf %168, %167 : vector<8x128xf32>
    %170 = arith.divf %168, %169 : vector<8x128xf32>
    %171 = arith.negf %165 : vector<8x128xf32>
    %172 = math.exp %171 : vector<8x128xf32>
    %cst_52 = arith.constant 1.000000e+00 : f32
    %173 = vector.broadcast %cst_52 : f32 to vector<8x128xf32>
    %174 = arith.addf %173, %172 : vector<8x128xf32>
    %175 = arith.divf %173, %174 : vector<8x128xf32>
    %176 = vector.extract_strided_slice %163 {offsets = [0, 96], sizes = [8, 32], strides = [1, 1]} : vector<8x128xf32> to vector<8x32xf32>
    %177 = math.tanh %176 : vector<8x32xf32>
    %178 = vector.extract_strided_slice %165 {offsets = [0, 96], sizes = [8, 32], strides = [1, 1]} : vector<8x128xf32> to vector<8x32xf32>
    %179 = math.tanh %178 : vector<8x32xf32>
    %180 = vector.extract_strided_slice %170 {offsets = [0, 32], sizes = [8, 32], strides = [1, 1]} : vector<8x128xf32> to vector<8x32xf32>
    %181 = arith.mulf %180, %144 : vector<8x32xf32>
    %182 = vector.extract_strided_slice %170 {offsets = [0, 0], sizes = [8, 32], strides = [1, 1]} : vector<8x128xf32> to vector<8x32xf32>
    %183 = arith.mulf %182, %177 : vector<8x32xf32>
    %184 = arith.addf %181, %183 : vector<8x32xf32>
    %185 = vector.extract_strided_slice %175 {offsets = [0, 32], sizes = [8, 32], strides = [1, 1]} : vector<8x128xf32> to vector<8x32xf32>
    %186 = arith.mulf %185, %149 : vector<8x32xf32>
    %187 = vector.extract_strided_slice %175 {offsets = [0, 0], sizes = [8, 32], strides = [1, 1]} : vector<8x128xf32> to vector<8x32xf32>
    %188 = arith.mulf %187, %179 : vector<8x32xf32>
    %189 = arith.addf %186, %188 : vector<8x32xf32>
    %190 = vector.extract_strided_slice %170 {offsets = [0, 64], sizes = [8, 32], strides = [1, 1]} : vector<8x128xf32> to vector<8x32xf32>
    %191 = math.tanh %184 : vector<8x32xf32>
    %192 = arith.mulf %190, %191 : vector<8x32xf32>
    %193 = vector.extract_strided_slice %175 {offsets = [0, 64], sizes = [8, 32], strides = [1, 1]} : vector<8x128xf32> to vector<8x32xf32>
    %194 = math.tanh %189 : vector<8x32xf32>
    %195 = arith.mulf %193, %194 : vector<8x32xf32>
    %196 = tpu.concatenate %192, %195 in 1 : vector<8x32xf32>, vector<8x32xf32> -> vector<8x64xf32>
    %c32_53 = arith.constant 32 : index
    %c0_54 = arith.constant 0 : index
    %197 = vector.load %arg6[%c32_53, %c0_54] : memref<64x32xf32, #tpu.memory_space<vmem>>, vector<8x32xf32>
    tpu.vector_store %arg6[%c32_53, %c0_54], %192 {strides = array<i32>} : memref<64x32xf32, #tpu.memory_space<vmem>>, vector<8x32xf32>,
    %c24_55 = arith.constant 24 : index
    %c0_56 = arith.constant 0 : index
    %198 = vector.load %arg7[%c24_55, %c0_56] : memref<64x32xf32, #tpu.memory_space<vmem>>, vector<8x32xf32>
    tpu.vector_store %arg7[%c24_55, %c0_56], %195 {strides = array<i32>} : memref<64x32xf32, #tpu.memory_space<vmem>>, vector<8x32xf32>,
    %c40_57 = arith.constant 40 : index
    %c0_58 = arith.constant 0 : index
    %199 = vector.load %arg5[%c40_57, %c0_58] : memref<64x256xf32, #tpu.memory_space<vmem>>, vector<8x128xf32>
    %c16_59 = arith.constant 16 : index
    %c128_60 = arith.constant 128 : index
    %200 = vector.load %arg5[%c16_59, %c128_60] : memref<64x256xf32, #tpu.memory_space<vmem>>, vector<8x128xf32>
    %cst_61 = arith.constant dense<0.000000e+00> : vector<8x256xf32>
    %201 = tpu.matmul %196, %9, %cst_61 {dimension_numbers = #tpu.dot_dimension_numbers<[1], [0], [0], [1], [0, 0, 1, 1], [], []>} : vector<8x64xf32>, vector<64x256xf32>, vector<8x256xf32> -> vector<8x256xf32>
    %202 = vector.extract_strided_slice %201 {offsets = [0, 0], sizes = [8, 128], strides = [1, 1]} : vector<8x256xf32> to vector<8x128xf32>
    %203 = arith.addf %199, %202 : vector<8x128xf32>
    %204 = vector.extract_strided_slice %201 {offsets = [0, 128], sizes = [8, 128], strides = [1, 1]} : vector<8x256xf32> to vector<8x128xf32>
    %205 = arith.addf %200, %204 : vector<8x128xf32>
    %206 = arith.negf %203 : vector<8x128xf32>
    %207 = math.exp %206 : vector<8x128xf32>
    %cst_62 = arith.constant 1.000000e+00 : f32
    %208 = vector.broadcast %cst_62 : f32 to vector<8x128xf32>
    %209 = arith.addf %208, %207 : vector<8x128xf32>
    %210 = arith.divf %208, %209 : vector<8x128xf32>
    %211 = arith.negf %205 : vector<8x128xf32>
    %212 = math.exp %211 : vector<8x128xf32>
    %cst_63 = arith.constant 1.000000e+00 : f32
    %213 = vector.broadcast %cst_63 : f32 to vector<8x128xf32>
    %214 = arith.addf %213, %212 : vector<8x128xf32>
    %215 = arith.divf %213, %214 : vector<8x128xf32>
    %216 = vector.extract_strided_slice %203 {offsets = [0, 96], sizes = [8, 32], strides = [1, 1]} : vector<8x128xf32> to vector<8x32xf32>
    %217 = math.tanh %216 : vector<8x32xf32>
    %218 = vector.extract_strided_slice %205 {offsets = [0, 96], sizes = [8, 32], strides = [1, 1]} : vector<8x128xf32> to vector<8x32xf32>
    %219 = math.tanh %218 : vector<8x32xf32>
    %220 = vector.extract_strided_slice %210 {offsets = [0, 32], sizes = [8, 32], strides = [1, 1]} : vector<8x128xf32> to vector<8x32xf32>
    %221 = arith.mulf %220, %184 : vector<8x32xf32>
    %222 = vector.extract_strided_slice %210 {offsets = [0, 0], sizes = [8, 32], strides = [1, 1]} : vector<8x128xf32> to vector<8x32xf32>
    %223 = arith.mulf %222, %217 : vector<8x32xf32>
    %224 = arith.addf %221, %223 : vector<8x32xf32>
    %225 = vector.extract_strided_slice %215 {offsets = [0, 32], sizes = [8, 32], strides = [1, 1]} : vector<8x128xf32> to vector<8x32xf32>
    %226 = arith.mulf %225, %189 : vector<8x32xf32>
    %227 = vector.extract_strided_slice %215 {offsets = [0, 0], sizes = [8, 32], strides = [1, 1]} : vector<8x128xf32> to vector<8x32xf32>
    %228 = arith.mulf %227, %219 : vector<8x32xf32>
    %229 = arith.addf %226, %228 : vector<8x32xf32>
    %230 = vector.extract_strided_slice %210 {offsets = [0, 64], sizes = [8, 32], strides = [1, 1]} : vector<8x128xf32> to vector<8x32xf32>
    %231 = math.tanh %224 : vector<8x32xf32>
    %232 = arith.mulf %230, %231 : vector<8x32xf32>
    %233 = vector.extract_strided_slice %215 {offsets = [0, 64], sizes = [8, 32], strides = [1, 1]} : vector<8x128xf32> to vector<8x32xf32>
    %234 = math.tanh %229 : vector<8x32xf32>
    %235 = arith.mulf %233, %234 : vector<8x32xf32>
    %236 = tpu.concatenate %232, %235 in 1 : vector<8x32xf32>, vector<8x32xf32> -> vector<8x64xf32>
    %c40_64 = arith.constant 40 : index
    %c0_65 = arith.constant 0 : index
    %237 = vector.load %arg6[%c40_64, %c0_65] : memref<64x32xf32, #tpu.memory_space<vmem>>, vector<8x32xf32>
    tpu.vector_store %arg6[%c40_64, %c0_65], %232 {strides = array<i32>} : memref<64x32xf32, #tpu.memory_space<vmem>>, vector<8x32xf32>,
    %c16_66 = arith.constant 16 : index
    %c0_67 = arith.constant 0 : index
    %238 = vector.load %arg7[%c16_66, %c0_67] : memref<64x32xf32, #tpu.memory_space<vmem>>, vector<8x32xf32>
    tpu.vector_store %arg7[%c16_66, %c0_67], %235 {strides = array<i32>} : memref<64x32xf32, #tpu.memory_space<vmem>>, vector<8x32xf32>,
    %c48_68 = arith.constant 48 : index
    %c0_69 = arith.constant 0 : index
    %239 = vector.load %arg5[%c48_68, %c0_69] : memref<64x256xf32, #tpu.memory_space<vmem>>, vector<8x128xf32>
    %c8_70 = arith.constant 8 : index
    %c128_71 = arith.constant 128 : index
    %240 = vector.load %arg5[%c8_70, %c128_71] : memref<64x256xf32, #tpu.memory_space<vmem>>, vector<8x128xf32>
    %cst_72 = arith.constant dense<0.000000e+00> : vector<8x256xf32>
    %241 = tpu.matmul %236, %9, %cst_72 {dimension_numbers = #tpu.dot_dimension_numbers<[1], [0], [0], [1], [0, 0, 1, 1], [], []>} : vector<8x64xf32>, vector<64x256xf32>, vector<8x256xf32> -> vector<8x256xf32>
    %242 = vector.extract_strided_slice %241 {offsets = [0, 0], sizes = [8, 128], strides = [1, 1]} : vector<8x256xf32> to vector<8x128xf32>
    %243 = arith.addf %239, %242 : vector<8x128xf32>
    %244 = vector.extract_strided_slice %241 {offsets = [0, 128], sizes = [8, 128], strides = [1, 1]} : vector<8x256xf32> to vector<8x128xf32>
    %245 = arith.addf %240, %244 : vector<8x128xf32>
    %246 = arith.negf %243 : vector<8x128xf32>
    %247 = math.exp %246 : vector<8x128xf32>
    %cst_73 = arith.constant 1.000000e+00 : f32
    %248 = vector.broadcast %cst_73 : f32 to vector<8x128xf32>
    %249 = arith.addf %248, %247 : vector<8x128xf32>
    %250 = arith.divf %248, %249 : vector<8x128xf32>
    %251 = arith.negf %245 : vector<8x128xf32>
    %252 = math.exp %251 : vector<8x128xf32>
    %cst_74 = arith.constant 1.000000e+00 : f32
    %253 = vector.broadcast %cst_74 : f32 to vector<8x128xf32>
    %254 = arith.addf %253, %252 : vector<8x128xf32>
    %255 = arith.divf %253, %254 : vector<8x128xf32>
    %256 = vector.extract_strided_slice %243 {offsets = [0, 96], sizes = [8, 32], strides = [1, 1]} : vector<8x128xf32> to vector<8x32xf32>
    %257 = math.tanh %256 : vector<8x32xf32>
    %258 = vector.extract_strided_slice %245 {offsets = [0, 96], sizes = [8, 32], strides = [1, 1]} : vector<8x128xf32> to vector<8x32xf32>
    %259 = math.tanh %258 : vector<8x32xf32>
    %260 = vector.extract_strided_slice %250 {offsets = [0, 32], sizes = [8, 32], strides = [1, 1]} : vector<8x128xf32> to vector<8x32xf32>
    %261 = arith.mulf %260, %224 : vector<8x32xf32>
    %262 = vector.extract_strided_slice %250 {offsets = [0, 0], sizes = [8, 32], strides = [1, 1]} : vector<8x128xf32> to vector<8x32xf32>
    %263 = arith.mulf %262, %257 : vector<8x32xf32>
    %264 = arith.addf %261, %263 : vector<8x32xf32>
    %265 = vector.extract_strided_slice %255 {offsets = [0, 32], sizes = [8, 32], strides = [1, 1]} : vector<8x128xf32> to vector<8x32xf32>
    %266 = arith.mulf %265, %229 : vector<8x32xf32>
    %267 = vector.extract_strided_slice %255 {offsets = [0, 0], sizes = [8, 32], strides = [1, 1]} : vector<8x128xf32> to vector<8x32xf32>
    %268 = arith.mulf %267, %259 : vector<8x32xf32>
    %269 = arith.addf %266, %268 : vector<8x32xf32>
    %270 = vector.extract_strided_slice %250 {offsets = [0, 64], sizes = [8, 32], strides = [1, 1]} : vector<8x128xf32> to vector<8x32xf32>
    %271 = math.tanh %264 : vector<8x32xf32>
    %272 = arith.mulf %270, %271 : vector<8x32xf32>
    %273 = vector.extract_strided_slice %255 {offsets = [0, 64], sizes = [8, 32], strides = [1, 1]} : vector<8x128xf32> to vector<8x32xf32>
    %274 = math.tanh %269 : vector<8x32xf32>
    %275 = arith.mulf %273, %274 : vector<8x32xf32>
    %276 = tpu.concatenate %272, %275 in 1 : vector<8x32xf32>, vector<8x32xf32> -> vector<8x64xf32>
    %c48_75 = arith.constant 48 : index
    %c0_76 = arith.constant 0 : index
    %277 = vector.load %arg6[%c48_75, %c0_76] : memref<64x32xf32, #tpu.memory_space<vmem>>, vector<8x32xf32>
    tpu.vector_store %arg6[%c48_75, %c0_76], %272 {strides = array<i32>} : memref<64x32xf32, #tpu.memory_space<vmem>>, vector<8x32xf32>,
    %c8_77 = arith.constant 8 : index
    %c0_78 = arith.constant 0 : index
    %278 = vector.load %arg7[%c8_77, %c0_78] : memref<64x32xf32, #tpu.memory_space<vmem>>, vector<8x32xf32>
    tpu.vector_store %arg7[%c8_77, %c0_78], %275 {strides = array<i32>} : memref<64x32xf32, #tpu.memory_space<vmem>>, vector<8x32xf32>,
    %c56_79 = arith.constant 56 : index
    %c0_80 = arith.constant 0 : index
    %279 = vector.load %arg5[%c56_79, %c0_80] : memref<64x256xf32, #tpu.memory_space<vmem>>, vector<8x128xf32>
    %c0_81 = arith.constant 0 : index
    %c128_82 = arith.constant 128 : index
    %280 = vector.load %arg5[%c0_81, %c128_82] : memref<64x256xf32, #tpu.memory_space<vmem>>, vector<8x128xf32>
    %cst_83 = arith.constant dense<0.000000e+00> : vector<8x256xf32>
    %281 = tpu.matmul %276, %9, %cst_83 {dimension_numbers = #tpu.dot_dimension_numbers<[1], [0], [0], [1], [0, 0, 1, 1], [], []>} : vector<8x64xf32>, vector<64x256xf32>, vector<8x256xf32> -> vector<8x256xf32>
    %282 = vector.extract_strided_slice %281 {offsets = [0, 0], sizes = [8, 128], strides = [1, 1]} : vector<8x256xf32> to vector<8x128xf32>
    %283 = arith.addf %279, %282 : vector<8x128xf32>
    %284 = vector.extract_strided_slice %281 {offsets = [0, 128], sizes = [8, 128], strides = [1, 1]} : vector<8x256xf32> to vector<8x128xf32>
    %285 = arith.addf %280, %284 : vector<8x128xf32>
    %286 = arith.negf %283 : vector<8x128xf32>
    %287 = math.exp %286 : vector<8x128xf32>
    %cst_84 = arith.constant 1.000000e+00 : f32
    %288 = vector.broadcast %cst_84 : f32 to vector<8x128xf32>
    %289 = arith.addf %288, %287 : vector<8x128xf32>
    %290 = arith.divf %288, %289 : vector<8x128xf32>
    %291 = arith.negf %285 : vector<8x128xf32>
    %292 = math.exp %291 : vector<8x128xf32>
    %cst_85 = arith.constant 1.000000e+00 : f32
    %293 = vector.broadcast %cst_85 : f32 to vector<8x128xf32>
    %294 = arith.addf %293, %292 : vector<8x128xf32>
    %295 = arith.divf %293, %294 : vector<8x128xf32>
    %296 = vector.extract_strided_slice %283 {offsets = [0, 96], sizes = [8, 32], strides = [1, 1]} : vector<8x128xf32> to vector<8x32xf32>
    %297 = math.tanh %296 : vector<8x32xf32>
    %298 = vector.extract_strided_slice %285 {offsets = [0, 96], sizes = [8, 32], strides = [1, 1]} : vector<8x128xf32> to vector<8x32xf32>
    %299 = math.tanh %298 : vector<8x32xf32>
    %300 = vector.extract_strided_slice %290 {offsets = [0, 32], sizes = [8, 32], strides = [1, 1]} : vector<8x128xf32> to vector<8x32xf32>
    %301 = arith.mulf %300, %264 : vector<8x32xf32>
    %302 = vector.extract_strided_slice %290 {offsets = [0, 0], sizes = [8, 32], strides = [1, 1]} : vector<8x128xf32> to vector<8x32xf32>
    %303 = arith.mulf %302, %297 : vector<8x32xf32>
    %304 = arith.addf %301, %303 : vector<8x32xf32>
    %305 = vector.extract_strided_slice %295 {offsets = [0, 32], sizes = [8, 32], strides = [1, 1]} : vector<8x128xf32> to vector<8x32xf32>
    %306 = arith.mulf %305, %269 : vector<8x32xf32>
    %307 = vector.extract_strided_slice %295 {offsets = [0, 0], sizes = [8, 32], strides = [1, 1]} : vector<8x128xf32> to vector<8x32xf32>
    %308 = arith.mulf %307, %299 : vector<8x32xf32>
    %309 = arith.addf %306, %308 : vector<8x32xf32>
    %310 = vector.extract_strided_slice %290 {offsets = [0, 64], sizes = [8, 32], strides = [1, 1]} : vector<8x128xf32> to vector<8x32xf32>
    %311 = math.tanh %304 : vector<8x32xf32>
    %312 = arith.mulf %310, %311 : vector<8x32xf32>
    %313 = vector.extract_strided_slice %295 {offsets = [0, 64], sizes = [8, 32], strides = [1, 1]} : vector<8x128xf32> to vector<8x32xf32>
    %314 = math.tanh %309 : vector<8x32xf32>
    %315 = arith.mulf %313, %314 : vector<8x32xf32>
    %c56_86 = arith.constant 56 : index
    %c0_87 = arith.constant 0 : index
    %316 = vector.load %arg6[%c56_86, %c0_87] : memref<64x32xf32, #tpu.memory_space<vmem>>, vector<8x32xf32>
    tpu.vector_store %arg6[%c56_86, %c0_87], %312 {strides = array<i32>} : memref<64x32xf32, #tpu.memory_space<vmem>>, vector<8x32xf32>,
    %c0_88 = arith.constant 0 : index
    %c0_89 = arith.constant 0 : index
    %317 = vector.load %arg7[%c0_88, %c0_89] : memref<64x32xf32, #tpu.memory_space<vmem>>, vector<8x32xf32>
    tpu.vector_store %arg7[%c0_88, %c0_89], %315 {strides = array<i32>} : memref<64x32xf32, #tpu.memory_space<vmem>>, vector<8x32xf32>,
    %c3 = arith.constant 3 : index
    %c0_90 = arith.constant 0 : index
    %c0_91 = arith.constant 0 : index
    %318 = vector.load %arg2[%c3, %c0_90, %c0_91] : memref<6x64x256xf32, #tpu.memory_space<vmem>>, vector<1x64x256xf32>
    %319 = vector.shape_cast %318 : vector<1x64x256xf32> to vector<64x256xf32>
    %c0_92 = arith.constant 0 : index
    %c0_93 = arith.constant 0 : index
    %320 = vector.load %arg6[%c0_92, %c0_93] : memref<64x32xf32, #tpu.memory_space<vmem>>, vector<64x32xf32>
    %321 = vector.extract_strided_slice %319 {offsets = [0, 0], sizes = [32, 256], strides = [1, 1]} : vector<64x256xf32> to vector<32x256xf32>
    %cst_94 = arith.constant dense<0.000000e+00> : vector<64x256xf32>
    %322 = tpu.matmul %320, %321, %cst_94 {dimension_numbers = #tpu.dot_dimension_numbers<[1], [0], [0], [1], [0, 0, 1, 1], [], []>} : vector<64x32xf32>, vector<32x256xf32>, vector<64x256xf32> -> vector<64x256xf32>
    %c0_95 = arith.constant 0 : index
    %c0_96 = arith.constant 0 : index
    %323 = vector.load %arg7[%c0_95, %c0_96] : memref<64x32xf32, #tpu.memory_space<vmem>>, vector<64x32xf32>
    %324 = vector.extract_strided_slice %319 {offsets = [32, 0], sizes = [32, 256], strides = [1, 1]} : vector<64x256xf32> to vector<32x256xf32>
    %cst_97 = arith.constant dense<0.000000e+00> : vector<64x256xf32>
    %325 = tpu.matmul %323, %324, %cst_97 {dimension_numbers = #tpu.dot_dimension_numbers<[1], [0], [0], [1], [0, 0, 1, 1], [], []>} : vector<64x32xf32>, vector<32x256xf32>, vector<64x256xf32> -> vector<64x256xf32>
    %326 = arith.addf %322, %325 : vector<64x256xf32>
    %c1 = arith.constant 1 : index
    %c0_98 = arith.constant 0 : index
    %c0_99 = arith.constant 0 : index
    %327 = vector.load %arg3[%c1, %c0_98, %c0_99] : memref<4x1x256xf32, #tpu.memory_space<vmem>>, vector<1x1x256xf32>
    %328 = vector.shape_cast %327 : vector<1x1x256xf32> to vector<1x256xf32>
    %329 = vector.broadcast %328 : vector<1x256xf32> to vector<64x256xf32>
    %330 = arith.addf %326, %329 : vector<64x256xf32>
    %c0_100 = arith.constant 0 : index
    %c0_101 = arith.constant 0 : index
    %331 = vector.load %arg5[%c0_100, %c0_101] : memref<64x256xf32, #tpu.memory_space<vmem>>, vector<64x256xf32>
    tpu.vector_store %arg5[%c0_100, %c0_101], %330 {strides = array<i32>} : memref<64x256xf32, #tpu.memory_space<vmem>>, vector<64x256xf32>,
    %c1_102 = arith.constant 1 : index
    %c0_103 = arith.constant 0 : index
    %c0_104 = arith.constant 0 : index
    %332 = vector.load %arg2[%c1_102, %c0_103, %c0_104] : memref<6x64x256xf32, #tpu.memory_space<vmem>>, vector<1x64x256xf32>
    %333 = vector.shape_cast %332 : vector<1x64x256xf32> to vector<64x256xf32>
    %c0_105 = arith.constant 0 : index
    %c0_106 = arith.constant 0 : index
    %334 = vector.load %arg5[%c0_105, %c0_106] : memref<64x256xf32, #tpu.memory_space<vmem>>, vector<8x128xf32>
    %c56_107 = arith.constant 56 : index
    %c128_108 = arith.constant 128 : index
    %335 = vector.load %arg5[%c56_107, %c128_108] : memref<64x256xf32, #tpu.memory_space<vmem>>, vector<8x128xf32>
    %336 = arith.negf %334 : vector<8x128xf32>
    %337 = math.exp %336 : vector<8x128xf32>
    %cst_109 = arith.constant 1.000000e+00 : f32
    %338 = vector.broadcast %cst_109 : f32 to vector<8x128xf32>
    %339 = arith.addf %338, %337 : vector<8x128xf32>
    %340 = arith.divf %338, %339 : vector<8x128xf32>
    %341 = arith.negf %335 : vector<8x128xf32>
    %342 = math.exp %341 : vector<8x128xf32>
    %cst_110 = arith.constant 1.000000e+00 : f32
    %343 = vector.broadcast %cst_110 : f32 to vector<8x128xf32>
    %344 = arith.addf %343, %342 : vector<8x128xf32>
    %345 = arith.divf %343, %344 : vector<8x128xf32>
    %346 = vector.extract_strided_slice %334 {offsets = [0, 96], sizes = [8, 32], strides = [1, 1]} : vector<8x128xf32> to vector<8x32xf32>
    %347 = math.tanh %346 : vector<8x32xf32>
    %348 = vector.extract_strided_slice %335 {offsets = [0, 96], sizes = [8, 32], strides = [1, 1]} : vector<8x128xf32> to vector<8x32xf32>
    %349 = math.tanh %348 : vector<8x32xf32>
    %350 = vector.extract_strided_slice %340 {offsets = [0, 0], sizes = [8, 32], strides = [1, 1]} : vector<8x128xf32> to vector<8x32xf32>
    %351 = arith.mulf %350, %347 : vector<8x32xf32>
    %352 = vector.extract_strided_slice %345 {offsets = [0, 0], sizes = [8, 32], strides = [1, 1]} : vector<8x128xf32> to vector<8x32xf32>
    %353 = arith.mulf %352, %349 : vector<8x32xf32>
    %354 = vector.extract_strided_slice %340 {offsets = [0, 64], sizes = [8, 32], strides = [1, 1]} : vector<8x128xf32> to vector<8x32xf32>
    %355 = math.tanh %351 : vector<8x32xf32>
    %356 = arith.mulf %354, %355 : vector<8x32xf32>
    %357 = vector.extract_strided_slice %345 {offsets = [0, 64], sizes = [8, 32], strides = [1, 1]} : vector<8x128xf32> to vector<8x32xf32>
    %358 = math.tanh %353 : vector<8x32xf32>
    %359 = arith.mulf %357, %358 : vector<8x32xf32>
    %360 = tpu.concatenate %356, %359 in 1 : vector<8x32xf32>, vector<8x32xf32> -> vector<8x64xf32>
    %c0_111 = arith.constant 0 : index
    %c0_112 = arith.constant 0 : index
    %361 = vector.load %arg6[%c0_111, %c0_112] : memref<64x32xf32, #tpu.memory_space<vmem>>, vector<8x32xf32>
    tpu.vector_store %arg6[%c0_111, %c0_112], %356 {strides = array<i32>} : memref<64x32xf32, #tpu.memory_space<vmem>>, vector<8x32xf32>,
    %c56_113 = arith.constant 56 : index
    %c0_114 = arith.constant 0 : index
    %362 = vector.load %arg7[%c56_113, %c0_114] : memref<64x32xf32, #tpu.memory_space<vmem>>, vector<8x32xf32>
    tpu.vector_store %arg7[%c56_113, %c0_114], %359 {strides = array<i32>} : memref<64x32xf32, #tpu.memory_space<vmem>>, vector<8x32xf32>,
    %c8_115 = arith.constant 8 : index
    %c0_116 = arith.constant 0 : index
    %363 = vector.load %arg5[%c8_115, %c0_116] : memref<64x256xf32, #tpu.memory_space<vmem>>, vector<8x128xf32>
    %c48_117 = arith.constant 48 : index
    %c128_118 = arith.constant 128 : index
    %364 = vector.load %arg5[%c48_117, %c128_118] : memref<64x256xf32, #tpu.memory_space<vmem>>, vector<8x128xf32>
    %cst_119 = arith.constant dense<0.000000e+00> : vector<8x256xf32>
    %365 = tpu.matmul %360, %333, %cst_119 {dimension_numbers = #tpu.dot_dimension_numbers<[1], [0], [0], [1], [0, 0, 1, 1], [], []>} : vector<8x64xf32>, vector<64x256xf32>, vector<8x256xf32> -> vector<8x256xf32>
    %366 = vector.extract_strided_slice %365 {offsets = [0, 0], sizes = [8, 128], strides = [1, 1]} : vector<8x256xf32> to vector<8x128xf32>
    %367 = arith.addf %363, %366 : vector<8x128xf32>
    %368 = vector.extract_strided_slice %365 {offsets = [0, 128], sizes = [8, 128], strides = [1, 1]} : vector<8x256xf32> to vector<8x128xf32>
    %369 = arith.addf %364, %368 : vector<8x128xf32>
    %370 = arith.negf %367 : vector<8x128xf32>
    %371 = math.exp %370 : vector<8x128xf32>
    %cst_120 = arith.constant 1.000000e+00 : f32
    %372 = vector.broadcast %cst_120 : f32 to vector<8x128xf32>
    %373 = arith.addf %372, %371 : vector<8x128xf32>
    %374 = arith.divf %372, %373 : vector<8x128xf32>
    %375 = arith.negf %369 : vector<8x128xf32>
    %376 = math.exp %375 : vector<8x128xf32>
    %cst_121 = arith.constant 1.000000e+00 : f32
    %377 = vector.broadcast %cst_121 : f32 to vector<8x128xf32>
    %378 = arith.addf %377, %376 : vector<8x128xf32>
    %379 = arith.divf %377, %378 : vector<8x128xf32>
    %380 = vector.extract_strided_slice %367 {offsets = [0, 96], sizes = [8, 32], strides = [1, 1]} : vector<8x128xf32> to vector<8x32xf32>
    %381 = math.tanh %380 : vector<8x32xf32>
    %382 = vector.extract_strided_slice %369 {offsets = [0, 96], sizes = [8, 32], strides = [1, 1]} : vector<8x128xf32> to vector<8x32xf32>
    %383 = math.tanh %382 : vector<8x32xf32>
    %384 = vector.extract_strided_slice %374 {offsets = [0, 32], sizes = [8, 32], strides = [1, 1]} : vector<8x128xf32> to vector<8x32xf32>
    %385 = arith.mulf %384, %351 : vector<8x32xf32>
    %386 = vector.extract_strided_slice %374 {offsets = [0, 0], sizes = [8, 32], strides = [1, 1]} : vector<8x128xf32> to vector<8x32xf32>
    %387 = arith.mulf %386, %381 : vector<8x32xf32>
    %388 = arith.addf %385, %387 : vector<8x32xf32>
    %389 = vector.extract_strided_slice %379 {offsets = [0, 32], sizes = [8, 32], strides = [1, 1]} : vector<8x128xf32> to vector<8x32xf32>
    %390 = arith.mulf %389, %353 : vector<8x32xf32>
    %391 = vector.extract_strided_slice %379 {offsets = [0, 0], sizes = [8, 32], strides = [1, 1]} : vector<8x128xf32> to vector<8x32xf32>
    %392 = arith.mulf %391, %383 : vector<8x32xf32>
    %393 = arith.addf %390, %392 : vector<8x32xf32>
    %394 = vector.extract_strided_slice %374 {offsets = [0, 64], sizes = [8, 32], strides = [1, 1]} : vector<8x128xf32> to vector<8x32xf32>
    %395 = math.tanh %388 : vector<8x32xf32>
    %396 = arith.mulf %394, %395 : vector<8x32xf32>
    %397 = vector.extract_strided_slice %379 {offsets = [0, 64], sizes = [8, 32], strides = [1, 1]} : vector<8x128xf32> to vector<8x32xf32>
    %398 = math.tanh %393 : vector<8x32xf32>
    %399 = arith.mulf %397, %398 : vector<8x32xf32>
    %400 = tpu.concatenate %396, %399 in 1 : vector<8x32xf32>, vector<8x32xf32> -> vector<8x64xf32>
    %c8_122 = arith.constant 8 : index
    %c0_123 = arith.constant 0 : index
    %401 = vector.load %arg6[%c8_122, %c0_123] : memref<64x32xf32, #tpu.memory_space<vmem>>, vector<8x32xf32>
    tpu.vector_store %arg6[%c8_122, %c0_123], %396 {strides = array<i32>} : memref<64x32xf32, #tpu.memory_space<vmem>>, vector<8x32xf32>,
    %c48_124 = arith.constant 48 : index
    %c0_125 = arith.constant 0 : index
    %402 = vector.load %arg7[%c48_124, %c0_125] : memref<64x32xf32, #tpu.memory_space<vmem>>, vector<8x32xf32>
    tpu.vector_store %arg7[%c48_124, %c0_125], %399 {strides = array<i32>} : memref<64x32xf32, #tpu.memory_space<vmem>>, vector<8x32xf32>,
    %c16_126 = arith.constant 16 : index
    %c0_127 = arith.constant 0 : index
    %403 = vector.load %arg5[%c16_126, %c0_127] : memref<64x256xf32, #tpu.memory_space<vmem>>, vector<8x128xf32>
    %c40_128 = arith.constant 40 : index
    %c128_129 = arith.constant 128 : index
    %404 = vector.load %arg5[%c40_128, %c128_129] : memref<64x256xf32, #tpu.memory_space<vmem>>, vector<8x128xf32>
    %cst_130 = arith.constant dense<0.000000e+00> : vector<8x256xf32>
    %405 = tpu.matmul %400, %333, %cst_130 {dimension_numbers = #tpu.dot_dimension_numbers<[1], [0], [0], [1], [0, 0, 1, 1], [], []>} : vector<8x64xf32>, vector<64x256xf32>, vector<8x256xf32> -> vector<8x256xf32>
    %406 = vector.extract_strided_slice %405 {offsets = [0, 0], sizes = [8, 128], strides = [1, 1]} : vector<8x256xf32> to vector<8x128xf32>
    %407 = arith.addf %403, %406 : vector<8x128xf32>
    %408 = vector.extract_strided_slice %405 {offsets = [0, 128], sizes = [8, 128], strides = [1, 1]} : vector<8x256xf32> to vector<8x128xf32>
    %409 = arith.addf %404, %408 : vector<8x128xf32>
    %410 = arith.negf %407 : vector<8x128xf32>
    %411 = math.exp %410 : vector<8x128xf32>
    %cst_131 = arith.constant 1.000000e+00 : f32
    %412 = vector.broadcast %cst_131 : f32 to vector<8x128xf32>
    %413 = arith.addf %412, %411 : vector<8x128xf32>
    %414 = arith.divf %412, %413 : vector<8x128xf32>
    %415 = arith.negf %409 : vector<8x128xf32>
    %416 = math.exp %415 : vector<8x128xf32>
    %cst_132 = arith.constant 1.000000e+00 : f32
    %417 = vector.broadcast %cst_132 : f32 to vector<8x128xf32>
    %418 = arith.addf %417, %416 : vector<8x128xf32>
    %419 = arith.divf %417, %418 : vector<8x128xf32>
    %420 = vector.extract_strided_slice %407 {offsets = [0, 96], sizes = [8, 32], strides = [1, 1]} : vector<8x128xf32> to vector<8x32xf32>
    %421 = math.tanh %420 : vector<8x32xf32>
    %422 = vector.extract_strided_slice %409 {offsets = [0, 96], sizes = [8, 32], strides = [1, 1]} : vector<8x128xf32> to vector<8x32xf32>
    %423 = math.tanh %422 : vector<8x32xf32>
    %424 = vector.extract_strided_slice %414 {offsets = [0, 32], sizes = [8, 32], strides = [1, 1]} : vector<8x128xf32> to vector<8x32xf32>
    %425 = arith.mulf %424, %388 : vector<8x32xf32>
    %426 = vector.extract_strided_slice %414 {offsets = [0, 0], sizes = [8, 32], strides = [1, 1]} : vector<8x128xf32> to vector<8x32xf32>
    %427 = arith.mulf %426, %421 : vector<8x32xf32>
    %428 = arith.addf %425, %427 : vector<8x32xf32>
    %429 = vector.extract_strided_slice %419 {offsets = [0, 32], sizes = [8, 32], strides = [1, 1]} : vector<8x128xf32> to vector<8x32xf32>
    %430 = arith.mulf %429, %393 : vector<8x32xf32>
    %431 = vector.extract_strided_slice %419 {offsets = [0, 0], sizes = [8, 32], strides = [1, 1]} : vector<8x128xf32> to vector<8x32xf32>
    %432 = arith.mulf %431, %423 : vector<8x32xf32>
    %433 = arith.addf %430, %432 : vector<8x32xf32>
    %434 = vector.extract_strided_slice %414 {offsets = [0, 64], sizes = [8, 32], strides = [1, 1]} : vector<8x128xf32> to vector<8x32xf32>
    %435 = math.tanh %428 : vector<8x32xf32>
    %436 = arith.mulf %434, %435 : vector<8x32xf32>
    %437 = vector.extract_strided_slice %419 {offsets = [0, 64], sizes = [8, 32], strides = [1, 1]} : vector<8x128xf32> to vector<8x32xf32>
    %438 = math.tanh %433 : vector<8x32xf32>
    %439 = arith.mulf %437, %438 : vector<8x32xf32>
    %440 = tpu.concatenate %436, %439 in 1 : vector<8x32xf32>, vector<8x32xf32> -> vector<8x64xf32>
    %c16_133 = arith.constant 16 : index
    %c0_134 = arith.constant 0 : index
    %441 = vector.load %arg6[%c16_133, %c0_134] : memref<64x32xf32, #tpu.memory_space<vmem>>, vector<8x32xf32>
    tpu.vector_store %arg6[%c16_133, %c0_134], %436 {strides = array<i32>} : memref<64x32xf32, #tpu.memory_space<vmem>>, vector<8x32xf32>,
    %c40_135 = arith.constant 40 : index
    %c0_136 = arith.constant 0 : index
    %442 = vector.load %arg7[%c40_135, %c0_136] : memref<64x32xf32, #tpu.memory_space<vmem>>, vector<8x32xf32>
    tpu.vector_store %arg7[%c40_135, %c0_136], %439 {strides = array<i32>} : memref<64x32xf32, #tpu.memory_space<vmem>>, vector<8x32xf32>,
    %c24_137 = arith.constant 24 : index
    %c0_138 = arith.constant 0 : index
    %443 = vector.load %arg5[%c24_137, %c0_138] : memref<64x256xf32, #tpu.memory_space<vmem>>, vector<8x128xf32>
    %c32_139 = arith.constant 32 : index
    %c128_140 = arith.constant 128 : index
    %444 = vector.load %arg5[%c32_139, %c128_140] : memref<64x256xf32, #tpu.memory_space<vmem>>, vector<8x128xf32>
    %cst_141 = arith.constant dense<0.000000e+00> : vector<8x256xf32>
    %445 = tpu.matmul %440, %333, %cst_141 {dimension_numbers = #tpu.dot_dimension_numbers<[1], [0], [0], [1], [0, 0, 1, 1], [], []>} : vector<8x64xf32>, vector<64x256xf32>, vector<8x256xf32> -> vector<8x256xf32>
    %446 = vector.extract_strided_slice %445 {offsets = [0, 0], sizes = [8, 128], strides = [1, 1]} : vector<8x256xf32> to vector<8x128xf32>
    %447 = arith.addf %443, %446 : vector<8x128xf32>
    %448 = vector.extract_strided_slice %445 {offsets = [0, 128], sizes = [8, 128], strides = [1, 1]} : vector<8x256xf32> to vector<8x128xf32>
    %449 = arith.addf %444, %448 : vector<8x128xf32>
    %450 = arith.negf %447 : vector<8x128xf32>
    %451 = math.exp %450 : vector<8x128xf32>
    %cst_142 = arith.constant 1.000000e+00 : f32
    %452 = vector.broadcast %cst_142 : f32 to vector<8x128xf32>
    %453 = arith.addf %452, %451 : vector<8x128xf32>
    %454 = arith.divf %452, %453 : vector<8x128xf32>
    %455 = arith.negf %449 : vector<8x128xf32>
    %456 = math.exp %455 : vector<8x128xf32>
    %cst_143 = arith.constant 1.000000e+00 : f32
    %457 = vector.broadcast %cst_143 : f32 to vector<8x128xf32>
    %458 = arith.addf %457, %456 : vector<8x128xf32>
    %459 = arith.divf %457, %458 : vector<8x128xf32>
    %460 = vector.extract_strided_slice %447 {offsets = [0, 96], sizes = [8, 32], strides = [1, 1]} : vector<8x128xf32> to vector<8x32xf32>
    %461 = math.tanh %460 : vector<8x32xf32>
    %462 = vector.extract_strided_slice %449 {offsets = [0, 96], sizes = [8, 32], strides = [1, 1]} : vector<8x128xf32> to vector<8x32xf32>
    %463 = math.tanh %462 : vector<8x32xf32>
    %464 = vector.extract_strided_slice %454 {offsets = [0, 32], sizes = [8, 32], strides = [1, 1]} : vector<8x128xf32> to vector<8x32xf32>
    %465 = arith.mulf %464, %428 : vector<8x32xf32>
    %466 = vector.extract_strided_slice %454 {offsets = [0, 0], sizes = [8, 32], strides = [1, 1]} : vector<8x128xf32> to vector<8x32xf32>
    %467 = arith.mulf %466, %461 : vector<8x32xf32>
    %468 = arith.addf %465, %467 : vector<8x32xf32>
    %469 = vector.extract_strided_slice %459 {offsets = [0, 32], sizes = [8, 32], strides = [1, 1]} : vector<8x128xf32> to vector<8x32xf32>
    %470 = arith.mulf %469, %433 : vector<8x32xf32>
    %471 = vector.extract_strided_slice %459 {offsets = [0, 0], sizes = [8, 32], strides = [1, 1]} : vector<8x128xf32> to vector<8x32xf32>
    %472 = arith.mulf %471, %463 : vector<8x32xf32>
    %473 = arith.addf %470, %472 : vector<8x32xf32>
    %474 = vector.extract_strided_slice %454 {offsets = [0, 64], sizes = [8, 32], strides = [1, 1]} : vector<8x128xf32> to vector<8x32xf32>
    %475 = math.tanh %468 : vector<8x32xf32>
    %476 = arith.mulf %474, %475 : vector<8x32xf32>
    %477 = vector.extract_strided_slice %459 {offsets = [0, 64], sizes = [8, 32], strides = [1, 1]} : vector<8x128xf32> to vector<8x32xf32>
    %478 = math.tanh %473 : vector<8x32xf32>
    %479 = arith.mulf %477, %478 : vector<8x32xf32>
    %480 = tpu.concatenate %476, %479 in 1 : vector<8x32xf32>, vector<8x32xf32> -> vector<8x64xf32>
    %c24_144 = arith.constant 24 : index
    %c0_145 = arith.constant 0 : index
    %481 = vector.load %arg6[%c24_144, %c0_145] : memref<64x32xf32, #tpu.memory_space<vmem>>, vector<8x32xf32>
    tpu.vector_store %arg6[%c24_144, %c0_145], %476 {strides = array<i32>} : memref<64x32xf32, #tpu.memory_space<vmem>>, vector<8x32xf32>,
    %c32_146 = arith.constant 32 : index
    %c0_147 = arith.constant 0 : index
    %482 = vector.load %arg7[%c32_146, %c0_147] : memref<64x32xf32, #tpu.memory_space<vmem>>, vector<8x32xf32>
    tpu.vector_store %arg7[%c32_146, %c0_147], %479 {strides = array<i32>} : memref<64x32xf32, #tpu.memory_space<vmem>>, vector<8x32xf32>,
    %c32_148 = arith.constant 32 : index
    %c0_149 = arith.constant 0 : index
    %483 = vector.load %arg5[%c32_148, %c0_149] : memref<64x256xf32, #tpu.memory_space<vmem>>, vector<8x128xf32>
    %c24_150 = arith.constant 24 : index
    %c128_151 = arith.constant 128 : index
    %484 = vector.load %arg5[%c24_150, %c128_151] : memref<64x256xf32, #tpu.memory_space<vmem>>, vector<8x128xf32>
    %cst_152 = arith.constant dense<0.000000e+00> : vector<8x256xf32>
    %485 = tpu.matmul %480, %333, %cst_152 {dimension_numbers = #tpu.dot_dimension_numbers<[1], [0], [0], [1], [0, 0, 1, 1], [], []>} : vector<8x64xf32>, vector<64x256xf32>, vector<8x256xf32> -> vector<8x256xf32>
    %486 = vector.extract_strided_slice %485 {offsets = [0, 0], sizes = [8, 128], strides = [1, 1]} : vector<8x256xf32> to vector<8x128xf32>
    %487 = arith.addf %483, %486 : vector<8x128xf32>
    %488 = vector.extract_strided_slice %485 {offsets = [0, 128], sizes = [8, 128], strides = [1, 1]} : vector<8x256xf32> to vector<8x128xf32>
    %489 = arith.addf %484, %488 : vector<8x128xf32>
    %490 = arith.negf %487 : vector<8x128xf32>
    %491 = math.exp %490 : vector<8x128xf32>
    %cst_153 = arith.constant 1.000000e+00 : f32
    %492 = vector.broadcast %cst_153 : f32 to vector<8x128xf32>
    %493 = arith.addf %492, %491 : vector<8x128xf32>
    %494 = arith.divf %492, %493 : vector<8x128xf32>
    %495 = arith.negf %489 : vector<8x128xf32>
    %496 = math.exp %495 : vector<8x128xf32>
    %cst_154 = arith.constant 1.000000e+00 : f32
    %497 = vector.broadcast %cst_154 : f32 to vector<8x128xf32>
    %498 = arith.addf %497, %496 : vector<8x128xf32>
    %499 = arith.divf %497, %498 : vector<8x128xf32>
    %500 = vector.extract_strided_slice %487 {offsets = [0, 96], sizes = [8, 32], strides = [1, 1]} : vector<8x128xf32> to vector<8x32xf32>
    %501 = math.tanh %500 : vector<8x32xf32>
    %502 = vector.extract_strided_slice %489 {offsets = [0, 96], sizes = [8, 32], strides = [1, 1]} : vector<8x128xf32> to vector<8x32xf32>
    %503 = math.tanh %502 : vector<8x32xf32>
    %504 = vector.extract_strided_slice %494 {offsets = [0, 32], sizes = [8, 32], strides = [1, 1]} : vector<8x128xf32> to vector<8x32xf32>
    %505 = arith.mulf %504, %468 : vector<8x32xf32>
    %506 = vector.extract_strided_slice %494 {offsets = [0, 0], sizes = [8, 32], strides = [1, 1]} : vector<8x128xf32> to vector<8x32xf32>
    %507 = arith.mulf %506, %501 : vector<8x32xf32>
    %508 = arith.addf %505, %507 : vector<8x32xf32>
    %509 = vector.extract_strided_slice %499 {offsets = [0, 32], sizes = [8, 32], strides = [1, 1]} : vector<8x128xf32> to vector<8x32xf32>
    %510 = arith.mulf %509, %473 : vector<8x32xf32>
    %511 = vector.extract_strided_slice %499 {offsets = [0, 0], sizes = [8, 32], strides = [1, 1]} : vector<8x128xf32> to vector<8x32xf32>
    %512 = arith.mulf %511, %503 : vector<8x32xf32>
    %513 = arith.addf %510, %512 : vector<8x32xf32>
    %514 = vector.extract_strided_slice %494 {offsets = [0, 64], sizes = [8, 32], strides = [1, 1]} : vector<8x128xf32> to vector<8x32xf32>
    %515 = math.tanh %508 : vector<8x32xf32>
    %516 = arith.mulf %514, %515 : vector<8x32xf32>
    %517 = vector.extract_strided_slice %499 {offsets = [0, 64], sizes = [8, 32], strides = [1, 1]} : vector<8x128xf32> to vector<8x32xf32>
    %518 = math.tanh %513 : vector<8x32xf32>
    %519 = arith.mulf %517, %518 : vector<8x32xf32>
    %520 = tpu.concatenate %516, %519 in 1 : vector<8x32xf32>, vector<8x32xf32> -> vector<8x64xf32>
    %c32_155 = arith.constant 32 : index
    %c0_156 = arith.constant 0 : index
    %521 = vector.load %arg6[%c32_155, %c0_156] : memref<64x32xf32, #tpu.memory_space<vmem>>, vector<8x32xf32>
    tpu.vector_store %arg6[%c32_155, %c0_156], %516 {strides = array<i32>} : memref<64x32xf32, #tpu.memory_space<vmem>>, vector<8x32xf32>,
    %c24_157 = arith.constant 24 : index
    %c0_158 = arith.constant 0 : index
    %522 = vector.load %arg7[%c24_157, %c0_158] : memref<64x32xf32, #tpu.memory_space<vmem>>, vector<8x32xf32>
    tpu.vector_store %arg7[%c24_157, %c0_158], %519 {strides = array<i32>} : memref<64x32xf32, #tpu.memory_space<vmem>>, vector<8x32xf32>,
    %c40_159 = arith.constant 40 : index
    %c0_160 = arith.constant 0 : index
    %523 = vector.load %arg5[%c40_159, %c0_160] : memref<64x256xf32, #tpu.memory_space<vmem>>, vector<8x128xf32>
    %c16_161 = arith.constant 16 : index
    %c128_162 = arith.constant 128 : index
    %524 = vector.load %arg5[%c16_161, %c128_162] : memref<64x256xf32, #tpu.memory_space<vmem>>, vector<8x128xf32>
    %cst_163 = arith.constant dense<0.000000e+00> : vector<8x256xf32>
    %525 = tpu.matmul %520, %333, %cst_163 {dimension_numbers = #tpu.dot_dimension_numbers<[1], [0], [0], [1], [0, 0, 1, 1], [], []>} : vector<8x64xf32>, vector<64x256xf32>, vector<8x256xf32> -> vector<8x256xf32>
    %526 = vector.extract_strided_slice %525 {offsets = [0, 0], sizes = [8, 128], strides = [1, 1]} : vector<8x256xf32> to vector<8x128xf32>
    %527 = arith.addf %523, %526 : vector<8x128xf32>
    %528 = vector.extract_strided_slice %525 {offsets = [0, 128], sizes = [8, 128], strides = [1, 1]} : vector<8x256xf32> to vector<8x128xf32>
    %529 = arith.addf %524, %528 : vector<8x128xf32>
    %530 = arith.negf %527 : vector<8x128xf32>
    %531 = math.exp %530 : vector<8x128xf32>
    %cst_164 = arith.constant 1.000000e+00 : f32
    %532 = vector.broadcast %cst_164 : f32 to vector<8x128xf32>
    %533 = arith.addf %532, %531 : vector<8x128xf32>
    %534 = arith.divf %532, %533 : vector<8x128xf32>
    %535 = arith.negf %529 : vector<8x128xf32>
    %536 = math.exp %535 : vector<8x128xf32>
    %cst_165 = arith.constant 1.000000e+00 : f32
    %537 = vector.broadcast %cst_165 : f32 to vector<8x128xf32>
    %538 = arith.addf %537, %536 : vector<8x128xf32>
    %539 = arith.divf %537, %538 : vector<8x128xf32>
    %540 = vector.extract_strided_slice %527 {offsets = [0, 96], sizes = [8, 32], strides = [1, 1]} : vector<8x128xf32> to vector<8x32xf32>
    %541 = math.tanh %540 : vector<8x32xf32>
    %542 = vector.extract_strided_slice %529 {offsets = [0, 96], sizes = [8, 32], strides = [1, 1]} : vector<8x128xf32> to vector<8x32xf32>
    %543 = math.tanh %542 : vector<8x32xf32>
    %544 = vector.extract_strided_slice %534 {offsets = [0, 32], sizes = [8, 32], strides = [1, 1]} : vector<8x128xf32> to vector<8x32xf32>
    %545 = arith.mulf %544, %508 : vector<8x32xf32>
    %546 = vector.extract_strided_slice %534 {offsets = [0, 0], sizes = [8, 32], strides = [1, 1]} : vector<8x128xf32> to vector<8x32xf32>
    %547 = arith.mulf %546, %541 : vector<8x32xf32>
    %548 = arith.addf %545, %547 : vector<8x32xf32>
    %549 = vector.extract_strided_slice %539 {offsets = [0, 32], sizes = [8, 32], strides = [1, 1]} : vector<8x128xf32> to vector<8x32xf32>
    %550 = arith.mulf %549, %513 : vector<8x32xf32>
    %551 = vector.extract_strided_slice %539 {offsets = [0, 0], sizes = [8, 32], strides = [1, 1]} : vector<8x128xf32> to vector<8x32xf32>
    %552 = arith.mulf %551, %543 : vector<8x32xf32>
    %553 = arith.addf %550, %552 : vector<8x32xf32>
    %554 = vector.extract_strided_slice %534 {offsets = [0, 64], sizes = [8, 32], strides = [1, 1]} : vector<8x128xf32> to vector<8x32xf32>
    %555 = math.tanh %548 : vector<8x32xf32>
    %556 = arith.mulf %554, %555 : vector<8x32xf32>
    %557 = vector.extract_strided_slice %539 {offsets = [0, 64], sizes = [8, 32], strides = [1, 1]} : vector<8x128xf32> to vector<8x32xf32>
    %558 = math.tanh %553 : vector<8x32xf32>
    %559 = arith.mulf %557, %558 : vector<8x32xf32>
    %560 = tpu.concatenate %556, %559 in 1 : vector<8x32xf32>, vector<8x32xf32> -> vector<8x64xf32>
    %c40_166 = arith.constant 40 : index
    %c0_167 = arith.constant 0 : index
    %561 = vector.load %arg6[%c40_166, %c0_167] : memref<64x32xf32, #tpu.memory_space<vmem>>, vector<8x32xf32>
    tpu.vector_store %arg6[%c40_166, %c0_167], %556 {strides = array<i32>} : memref<64x32xf32, #tpu.memory_space<vmem>>, vector<8x32xf32>,
    %c16_168 = arith.constant 16 : index
    %c0_169 = arith.constant 0 : index
    %562 = vector.load %arg7[%c16_168, %c0_169] : memref<64x32xf32, #tpu.memory_space<vmem>>, vector<8x32xf32>
    tpu.vector_store %arg7[%c16_168, %c0_169], %559 {strides = array<i32>} : memref<64x32xf32, #tpu.memory_space<vmem>>, vector<8x32xf32>,
    %c48_170 = arith.constant 48 : index
    %c0_171 = arith.constant 0 : index
    %563 = vector.load %arg5[%c48_170, %c0_171] : memref<64x256xf32, #tpu.memory_space<vmem>>, vector<8x128xf32>
    %c8_172 = arith.constant 8 : index
    %c128_173 = arith.constant 128 : index
    %564 = vector.load %arg5[%c8_172, %c128_173] : memref<64x256xf32, #tpu.memory_space<vmem>>, vector<8x128xf32>
    %cst_174 = arith.constant dense<0.000000e+00> : vector<8x256xf32>
    %565 = tpu.matmul %560, %333, %cst_174 {dimension_numbers = #tpu.dot_dimension_numbers<[1], [0], [0], [1], [0, 0, 1, 1], [], []>} : vector<8x64xf32>, vector<64x256xf32>, vector<8x256xf32> -> vector<8x256xf32>
    %566 = vector.extract_strided_slice %565 {offsets = [0, 0], sizes = [8, 128], strides = [1, 1]} : vector<8x256xf32> to vector<8x128xf32>
    %567 = arith.addf %563, %566 : vector<8x128xf32>
    %568 = vector.extract_strided_slice %565 {offsets = [0, 128], sizes = [8, 128], strides = [1, 1]} : vector<8x256xf32> to vector<8x128xf32>
    %569 = arith.addf %564, %568 : vector<8x128xf32>
    %570 = arith.negf %567 : vector<8x128xf32>
    %571 = math.exp %570 : vector<8x128xf32>
    %cst_175 = arith.constant 1.000000e+00 : f32
    %572 = vector.broadcast %cst_175 : f32 to vector<8x128xf32>
    %573 = arith.addf %572, %571 : vector<8x128xf32>
    %574 = arith.divf %572, %573 : vector<8x128xf32>
    %575 = arith.negf %569 : vector<8x128xf32>
    %576 = math.exp %575 : vector<8x128xf32>
    %cst_176 = arith.constant 1.000000e+00 : f32
    %577 = vector.broadcast %cst_176 : f32 to vector<8x128xf32>
    %578 = arith.addf %577, %576 : vector<8x128xf32>
    %579 = arith.divf %577, %578 : vector<8x128xf32>
    %580 = vector.extract_strided_slice %567 {offsets = [0, 96], sizes = [8, 32], strides = [1, 1]} : vector<8x128xf32> to vector<8x32xf32>
    %581 = math.tanh %580 : vector<8x32xf32>
    %582 = vector.extract_strided_slice %569 {offsets = [0, 96], sizes = [8, 32], strides = [1, 1]} : vector<8x128xf32> to vector<8x32xf32>
    %583 = math.tanh %582 : vector<8x32xf32>
    %584 = vector.extract_strided_slice %574 {offsets = [0, 32], sizes = [8, 32], strides = [1, 1]} : vector<8x128xf32> to vector<8x32xf32>
    %585 = arith.mulf %584, %548 : vector<8x32xf32>
    %586 = vector.extract_strided_slice %574 {offsets = [0, 0], sizes = [8, 32], strides = [1, 1]} : vector<8x128xf32> to vector<8x32xf32>
    %587 = arith.mulf %586, %581 : vector<8x32xf32>
    %588 = arith.addf %585, %587 : vector<8x32xf32>
    %589 = vector.extract_strided_slice %579 {offsets = [0, 32], sizes = [8, 32], strides = [1, 1]} : vector<8x128xf32> to vector<8x32xf32>
    %590 = arith.mulf %589, %553 : vector<8x32xf32>
    %591 = vector.extract_strided_slice %579 {offsets = [0, 0], sizes = [8, 32], strides = [1, 1]} : vector<8x128xf32> to vector<8x32xf32>
    %592 = arith.mulf %591, %583 : vector<8x32xf32>
    %593 = arith.addf %590, %592 : vector<8x32xf32>
    %594 = vector.extract_strided_slice %574 {offsets = [0, 64], sizes = [8, 32], strides = [1, 1]} : vector<8x128xf32> to vector<8x32xf32>
    %595 = math.tanh %588 : vector<8x32xf32>
    %596 = arith.mulf %594, %595 : vector<8x32xf32>
    %597 = vector.extract_strided_slice %579 {offsets = [0, 64], sizes = [8, 32], strides = [1, 1]} : vector<8x128xf32> to vector<8x32xf32>
    %598 = math.tanh %593 : vector<8x32xf32>
    %599 = arith.mulf %597, %598 : vector<8x32xf32>
    %600 = tpu.concatenate %596, %599 in 1 : vector<8x32xf32>, vector<8x32xf32> -> vector<8x64xf32>
    %c48_177 = arith.constant 48 : index
    %c0_178 = arith.constant 0 : index
    %601 = vector.load %arg6[%c48_177, %c0_178] : memref<64x32xf32, #tpu.memory_space<vmem>>, vector<8x32xf32>
    tpu.vector_store %arg6[%c48_177, %c0_178], %596 {strides = array<i32>} : memref<64x32xf32, #tpu.memory_space<vmem>>, vector<8x32xf32>,
    %c8_179 = arith.constant 8 : index
    %c0_180 = arith.constant 0 : index
    %602 = vector.load %arg7[%c8_179, %c0_180] : memref<64x32xf32, #tpu.memory_space<vmem>>, vector<8x32xf32>
    tpu.vector_store %arg7[%c8_179, %c0_180], %599 {strides = array<i32>} : memref<64x32xf32, #tpu.memory_space<vmem>>, vector<8x32xf32>,
    %c56_181 = arith.constant 56 : index
    %c0_182 = arith.constant 0 : index
    %603 = vector.load %arg5[%c56_181, %c0_182] : memref<64x256xf32, #tpu.memory_space<vmem>>, vector<8x128xf32>
    %c0_183 = arith.constant 0 : index
    %c128_184 = arith.constant 128 : index
    %604 = vector.load %arg5[%c0_183, %c128_184] : memref<64x256xf32, #tpu.memory_space<vmem>>, vector<8x128xf32>
    %cst_185 = arith.constant dense<0.000000e+00> : vector<8x256xf32>
    %605 = tpu.matmul %600, %333, %cst_185 {dimension_numbers = #tpu.dot_dimension_numbers<[1], [0], [0], [1], [0, 0, 1, 1], [], []>} : vector<8x64xf32>, vector<64x256xf32>, vector<8x256xf32> -> vector<8x256xf32>
    %606 = vector.extract_strided_slice %605 {offsets = [0, 0], sizes = [8, 128], strides = [1, 1]} : vector<8x256xf32> to vector<8x128xf32>
    %607 = arith.addf %603, %606 : vector<8x128xf32>
    %608 = vector.extract_strided_slice %605 {offsets = [0, 128], sizes = [8, 128], strides = [1, 1]} : vector<8x256xf32> to vector<8x128xf32>
    %609 = arith.addf %604, %608 : vector<8x128xf32>
    %610 = arith.negf %607 : vector<8x128xf32>
    %611 = math.exp %610 : vector<8x128xf32>
    %cst_186 = arith.constant 1.000000e+00 : f32
    %612 = vector.broadcast %cst_186 : f32 to vector<8x128xf32>
    %613 = arith.addf %612, %611 : vector<8x128xf32>
    %614 = arith.divf %612, %613 : vector<8x128xf32>
    %615 = arith.negf %609 : vector<8x128xf32>
    %616 = math.exp %615 : vector<8x128xf32>
    %cst_187 = arith.constant 1.000000e+00 : f32
    %617 = vector.broadcast %cst_187 : f32 to vector<8x128xf32>
    %618 = arith.addf %617, %616 : vector<8x128xf32>
    %619 = arith.divf %617, %618 : vector<8x128xf32>
    %620 = vector.extract_strided_slice %607 {offsets = [0, 96], sizes = [8, 32], strides = [1, 1]} : vector<8x128xf32> to vector<8x32xf32>
    %621 = math.tanh %620 : vector<8x32xf32>
    %622 = vector.extract_strided_slice %609 {offsets = [0, 96], sizes = [8, 32], strides = [1, 1]} : vector<8x128xf32> to vector<8x32xf32>
    %623 = math.tanh %622 : vector<8x32xf32>
    %624 = vector.extract_strided_slice %614 {offsets = [0, 32], sizes = [8, 32], strides = [1, 1]} : vector<8x128xf32> to vector<8x32xf32>
    %625 = arith.mulf %624, %588 : vector<8x32xf32>
    %626 = vector.extract_strided_slice %614 {offsets = [0, 0], sizes = [8, 32], strides = [1, 1]} : vector<8x128xf32> to vector<8x32xf32>
    %627 = arith.mulf %626, %621 : vector<8x32xf32>
    %628 = arith.addf %625, %627 : vector<8x32xf32>
    %629 = vector.extract_strided_slice %619 {offsets = [0, 32], sizes = [8, 32], strides = [1, 1]} : vector<8x128xf32> to vector<8x32xf32>
    %630 = arith.mulf %629, %593 : vector<8x32xf32>
    %631 = vector.extract_strided_slice %619 {offsets = [0, 0], sizes = [8, 32], strides = [1, 1]} : vector<8x128xf32> to vector<8x32xf32>
    %632 = arith.mulf %631, %623 : vector<8x32xf32>
    %633 = arith.addf %630, %632 : vector<8x32xf32>
    %634 = vector.extract_strided_slice %614 {offsets = [0, 64], sizes = [8, 32], strides = [1, 1]} : vector<8x128xf32> to vector<8x32xf32>
    %635 = math.tanh %628 : vector<8x32xf32>
    %636 = arith.mulf %634, %635 : vector<8x32xf32>
    %637 = vector.extract_strided_slice %619 {offsets = [0, 64], sizes = [8, 32], strides = [1, 1]} : vector<8x128xf32> to vector<8x32xf32>
    %638 = math.tanh %633 : vector<8x32xf32>
    %639 = arith.mulf %637, %638 : vector<8x32xf32>
    %c56_188 = arith.constant 56 : index
    %c0_189 = arith.constant 0 : index
    %640 = vector.load %arg6[%c56_188, %c0_189] : memref<64x32xf32, #tpu.memory_space<vmem>>, vector<8x32xf32>
    tpu.vector_store %arg6[%c56_188, %c0_189], %636 {strides = array<i32>} : memref<64x32xf32, #tpu.memory_space<vmem>>, vector<8x32xf32>,
    %c0_190 = arith.constant 0 : index
    %c0_191 = arith.constant 0 : index
    %641 = vector.load %arg7[%c0_190, %c0_191] : memref<64x32xf32, #tpu.memory_space<vmem>>, vector<8x32xf32>
    tpu.vector_store %arg7[%c0_190, %c0_191], %639 {strides = array<i32>} : memref<64x32xf32, #tpu.memory_space<vmem>>, vector<8x32xf32>,
    %c4 = arith.constant 4 : index
    %c0_192 = arith.constant 0 : index
    %c0_193 = arith.constant 0 : index
    %642 = vector.load %arg2[%c4, %c0_192, %c0_193] : memref<6x64x256xf32, #tpu.memory_space<vmem>>, vector<1x64x256xf32>
    %643 = vector.shape_cast %642 : vector<1x64x256xf32> to vector<64x256xf32>
    %c0_194 = arith.constant 0 : index
    %c0_195 = arith.constant 0 : index
    %644 = vector.load %arg6[%c0_194, %c0_195] : memref<64x32xf32, #tpu.memory_space<vmem>>, vector<64x32xf32>
    %645 = vector.extract_strided_slice %643 {offsets = [0, 0], sizes = [32, 256], strides = [1, 1]} : vector<64x256xf32> to vector<32x256xf32>
    %cst_196 = arith.constant dense<0.000000e+00> : vector<64x256xf32>
    %646 = tpu.matmul %644, %645, %cst_196 {dimension_numbers = #tpu.dot_dimension_numbers<[1], [0], [0], [1], [0, 0, 1, 1], [], []>} : vector<64x32xf32>, vector<32x256xf32>, vector<64x256xf32> -> vector<64x256xf32>
    %c0_197 = arith.constant 0 : index
    %c0_198 = arith.constant 0 : index
    %647 = vector.load %arg7[%c0_197, %c0_198] : memref<64x32xf32, #tpu.memory_space<vmem>>, vector<64x32xf32>
    %648 = vector.extract_strided_slice %643 {offsets = [32, 0], sizes = [32, 256], strides = [1, 1]} : vector<64x256xf32> to vector<32x256xf32>
    %cst_199 = arith.constant dense<0.000000e+00> : vector<64x256xf32>
    %649 = tpu.matmul %647, %648, %cst_199 {dimension_numbers = #tpu.dot_dimension_numbers<[1], [0], [0], [1], [0, 0, 1, 1], [], []>} : vector<64x32xf32>, vector<32x256xf32>, vector<64x256xf32> -> vector<64x256xf32>
    %650 = arith.addf %646, %649 : vector<64x256xf32>
    %c2 = arith.constant 2 : index
    %c0_200 = arith.constant 0 : index
    %c0_201 = arith.constant 0 : index
    %651 = vector.load %arg3[%c2, %c0_200, %c0_201] : memref<4x1x256xf32, #tpu.memory_space<vmem>>, vector<1x1x256xf32>
    %652 = vector.shape_cast %651 : vector<1x1x256xf32> to vector<1x256xf32>
    %653 = vector.broadcast %652 : vector<1x256xf32> to vector<64x256xf32>
    %654 = arith.addf %650, %653 : vector<64x256xf32>
    %c0_202 = arith.constant 0 : index
    %c0_203 = arith.constant 0 : index
    %655 = vector.load %arg5[%c0_202, %c0_203] : memref<64x256xf32, #tpu.memory_space<vmem>>, vector<64x256xf32>
    tpu.vector_store %arg5[%c0_202, %c0_203], %654 {strides = array<i32>} : memref<64x256xf32, #tpu.memory_space<vmem>>, vector<64x256xf32>,
    %c2_204 = arith.constant 2 : index
    %c0_205 = arith.constant 0 : index
    %c0_206 = arith.constant 0 : index
    %656 = vector.load %arg2[%c2_204, %c0_205, %c0_206] : memref<6x64x256xf32, #tpu.memory_space<vmem>>, vector<1x64x256xf32>
    %657 = vector.shape_cast %656 : vector<1x64x256xf32> to vector<64x256xf32>
    %c0_207 = arith.constant 0 : index
    %c0_208 = arith.constant 0 : index
    %658 = vector.load %arg5[%c0_207, %c0_208] : memref<64x256xf32, #tpu.memory_space<vmem>>, vector<8x128xf32>
    %c56_209 = arith.constant 56 : index
    %c128_210 = arith.constant 128 : index
    %659 = vector.load %arg5[%c56_209, %c128_210] : memref<64x256xf32, #tpu.memory_space<vmem>>, vector<8x128xf32>
    %660 = arith.negf %658 : vector<8x128xf32>
    %661 = math.exp %660 : vector<8x128xf32>
    %cst_211 = arith.constant 1.000000e+00 : f32
    %662 = vector.broadcast %cst_211 : f32 to vector<8x128xf32>
    %663 = arith.addf %662, %661 : vector<8x128xf32>
    %664 = arith.divf %662, %663 : vector<8x128xf32>
    %665 = arith.negf %659 : vector<8x128xf32>
    %666 = math.exp %665 : vector<8x128xf32>
    %cst_212 = arith.constant 1.000000e+00 : f32
    %667 = vector.broadcast %cst_212 : f32 to vector<8x128xf32>
    %668 = arith.addf %667, %666 : vector<8x128xf32>
    %669 = arith.divf %667, %668 : vector<8x128xf32>
    %670 = vector.extract_strided_slice %658 {offsets = [0, 96], sizes = [8, 32], strides = [1, 1]} : vector<8x128xf32> to vector<8x32xf32>
    %671 = math.tanh %670 : vector<8x32xf32>
    %672 = vector.extract_strided_slice %659 {offsets = [0, 96], sizes = [8, 32], strides = [1, 1]} : vector<8x128xf32> to vector<8x32xf32>
    %673 = math.tanh %672 : vector<8x32xf32>
    %674 = vector.extract_strided_slice %664 {offsets = [0, 0], sizes = [8, 32], strides = [1, 1]} : vector<8x128xf32> to vector<8x32xf32>
    %675 = arith.mulf %674, %671 : vector<8x32xf32>
    %676 = vector.extract_strided_slice %669 {offsets = [0, 0], sizes = [8, 32], strides = [1, 1]} : vector<8x128xf32> to vector<8x32xf32>
    %677 = arith.mulf %676, %673 : vector<8x32xf32>
    %678 = vector.extract_strided_slice %664 {offsets = [0, 64], sizes = [8, 32], strides = [1, 1]} : vector<8x128xf32> to vector<8x32xf32>
    %679 = math.tanh %675 : vector<8x32xf32>
    %680 = arith.mulf %678, %679 : vector<8x32xf32>
    %681 = vector.extract_strided_slice %669 {offsets = [0, 64], sizes = [8, 32], strides = [1, 1]} : vector<8x128xf32> to vector<8x32xf32>
    %682 = math.tanh %677 : vector<8x32xf32>
    %683 = arith.mulf %681, %682 : vector<8x32xf32>
    %684 = tpu.concatenate %680, %683 in 1 : vector<8x32xf32>, vector<8x32xf32> -> vector<8x64xf32>
    %c0_213 = arith.constant 0 : index
    %c0_214 = arith.constant 0 : index
    %685 = vector.load %arg6[%c0_213, %c0_214] : memref<64x32xf32, #tpu.memory_space<vmem>>, vector<8x32xf32>
    tpu.vector_store %arg6[%c0_213, %c0_214], %680 {strides = array<i32>} : memref<64x32xf32, #tpu.memory_space<vmem>>, vector<8x32xf32>,
    %c56_215 = arith.constant 56 : index
    %c0_216 = arith.constant 0 : index
    %686 = vector.load %arg7[%c56_215, %c0_216] : memref<64x32xf32, #tpu.memory_space<vmem>>, vector<8x32xf32>
    tpu.vector_store %arg7[%c56_215, %c0_216], %683 {strides = array<i32>} : memref<64x32xf32, #tpu.memory_space<vmem>>, vector<8x32xf32>,
    %c8_217 = arith.constant 8 : index
    %c0_218 = arith.constant 0 : index
    %687 = vector.load %arg5[%c8_217, %c0_218] : memref<64x256xf32, #tpu.memory_space<vmem>>, vector<8x128xf32>
    %c48_219 = arith.constant 48 : index
    %c128_220 = arith.constant 128 : index
    %688 = vector.load %arg5[%c48_219, %c128_220] : memref<64x256xf32, #tpu.memory_space<vmem>>, vector<8x128xf32>
    %cst_221 = arith.constant dense<0.000000e+00> : vector<8x256xf32>
    %689 = tpu.matmul %684, %657, %cst_221 {dimension_numbers = #tpu.dot_dimension_numbers<[1], [0], [0], [1], [0, 0, 1, 1], [], []>} : vector<8x64xf32>, vector<64x256xf32>, vector<8x256xf32> -> vector<8x256xf32>
    %690 = vector.extract_strided_slice %689 {offsets = [0, 0], sizes = [8, 128], strides = [1, 1]} : vector<8x256xf32> to vector<8x128xf32>
    %691 = arith.addf %687, %690 : vector<8x128xf32>
    %692 = vector.extract_strided_slice %689 {offsets = [0, 128], sizes = [8, 128], strides = [1, 1]} : vector<8x256xf32> to vector<8x128xf32>
    %693 = arith.addf %688, %692 : vector<8x128xf32>
    %694 = arith.negf %691 : vector<8x128xf32>
    %695 = math.exp %694 : vector<8x128xf32>
    %cst_222 = arith.constant 1.000000e+00 : f32
    %696 = vector.broadcast %cst_222 : f32 to vector<8x128xf32>
    %697 = arith.addf %696, %695 : vector<8x128xf32>
    %698 = arith.divf %696, %697 : vector<8x128xf32>
    %699 = arith.negf %693 : vector<8x128xf32>
    %700 = math.exp %699 : vector<8x128xf32>
    %cst_223 = arith.constant 1.000000e+00 : f32
    %701 = vector.broadcast %cst_223 : f32 to vector<8x128xf32>
    %702 = arith.addf %701, %700 : vector<8x128xf32>
    %703 = arith.divf %701, %702 : vector<8x128xf32>
    %704 = vector.extract_strided_slice %691 {offsets = [0, 96], sizes = [8, 32], strides = [1, 1]} : vector<8x128xf32> to vector<8x32xf32>
    %705 = math.tanh %704 : vector<8x32xf32>
    %706 = vector.extract_strided_slice %693 {offsets = [0, 96], sizes = [8, 32], strides = [1, 1]} : vector<8x128xf32> to vector<8x32xf32>
    %707 = math.tanh %706 : vector<8x32xf32>
    %708 = vector.extract_strided_slice %698 {offsets = [0, 32], sizes = [8, 32], strides = [1, 1]} : vector<8x128xf32> to vector<8x32xf32>
    %709 = arith.mulf %708, %675 : vector<8x32xf32>
    %710 = vector.extract_strided_slice %698 {offsets = [0, 0], sizes = [8, 32], strides = [1, 1]} : vector<8x128xf32> to vector<8x32xf32>
    %711 = arith.mulf %710, %705 : vector<8x32xf32>
    %712 = arith.addf %709, %711 : vector<8x32xf32>
    %713 = vector.extract_strided_slice %703 {offsets = [0, 32], sizes = [8, 32], strides = [1, 1]} : vector<8x128xf32> to vector<8x32xf32>
    %714 = arith.mulf %713, %677 : vector<8x32xf32>
    %715 = vector.extract_strided_slice %703 {offsets = [0, 0], sizes = [8, 32], strides = [1, 1]} : vector<8x128xf32> to vector<8x32xf32>
    %716 = arith.mulf %715, %707 : vector<8x32xf32>
    %717 = arith.addf %714, %716 : vector<8x32xf32>
    %718 = vector.extract_strided_slice %698 {offsets = [0, 64], sizes = [8, 32], strides = [1, 1]} : vector<8x128xf32> to vector<8x32xf32>
    %719 = math.tanh %712 : vector<8x32xf32>
    %720 = arith.mulf %718, %719 : vector<8x32xf32>
    %721 = vector.extract_strided_slice %703 {offsets = [0, 64], sizes = [8, 32], strides = [1, 1]} : vector<8x128xf32> to vector<8x32xf32>
    %722 = math.tanh %717 : vector<8x32xf32>
    %723 = arith.mulf %721, %722 : vector<8x32xf32>
    %724 = tpu.concatenate %720, %723 in 1 : vector<8x32xf32>, vector<8x32xf32> -> vector<8x64xf32>
    %c8_224 = arith.constant 8 : index
    %c0_225 = arith.constant 0 : index
    %725 = vector.load %arg6[%c8_224, %c0_225] : memref<64x32xf32, #tpu.memory_space<vmem>>, vector<8x32xf32>
    tpu.vector_store %arg6[%c8_224, %c0_225], %720 {strides = array<i32>} : memref<64x32xf32, #tpu.memory_space<vmem>>, vector<8x32xf32>,
    %c48_226 = arith.constant 48 : index
    %c0_227 = arith.constant 0 : index
    %726 = vector.load %arg7[%c48_226, %c0_227] : memref<64x32xf32, #tpu.memory_space<vmem>>, vector<8x32xf32>
    tpu.vector_store %arg7[%c48_226, %c0_227], %723 {strides = array<i32>} : memref<64x32xf32, #tpu.memory_space<vmem>>, vector<8x32xf32>,
    %c16_228 = arith.constant 16 : index
    %c0_229 = arith.constant 0 : index
    %727 = vector.load %arg5[%c16_228, %c0_229] : memref<64x256xf32, #tpu.memory_space<vmem>>, vector<8x128xf32>
    %c40_230 = arith.constant 40 : index
    %c128_231 = arith.constant 128 : index
    %728 = vector.load %arg5[%c40_230, %c128_231] : memref<64x256xf32, #tpu.memory_space<vmem>>, vector<8x128xf32>
    %cst_232 = arith.constant dense<0.000000e+00> : vector<8x256xf32>
    %729 = tpu.matmul %724, %657, %cst_232 {dimension_numbers = #tpu.dot_dimension_numbers<[1], [0], [0], [1], [0, 0, 1, 1], [], []>} : vector<8x64xf32>, vector<64x256xf32>, vector<8x256xf32> -> vector<8x256xf32>
    %730 = vector.extract_strided_slice %729 {offsets = [0, 0], sizes = [8, 128], strides = [1, 1]} : vector<8x256xf32> to vector<8x128xf32>
    %731 = arith.addf %727, %730 : vector<8x128xf32>
    %732 = vector.extract_strided_slice %729 {offsets = [0, 128], sizes = [8, 128], strides = [1, 1]} : vector<8x256xf32> to vector<8x128xf32>
    %733 = arith.addf %728, %732 : vector<8x128xf32>
    %734 = arith.negf %731 : vector<8x128xf32>
    %735 = math.exp %734 : vector<8x128xf32>
    %cst_233 = arith.constant 1.000000e+00 : f32
    %736 = vector.broadcast %cst_233 : f32 to vector<8x128xf32>
    %737 = arith.addf %736, %735 : vector<8x128xf32>
    %738 = arith.divf %736, %737 : vector<8x128xf32>
    %739 = arith.negf %733 : vector<8x128xf32>
    %740 = math.exp %739 : vector<8x128xf32>
    %cst_234 = arith.constant 1.000000e+00 : f32
    %741 = vector.broadcast %cst_234 : f32 to vector<8x128xf32>
    %742 = arith.addf %741, %740 : vector<8x128xf32>
    %743 = arith.divf %741, %742 : vector<8x128xf32>
    %744 = vector.extract_strided_slice %731 {offsets = [0, 96], sizes = [8, 32], strides = [1, 1]} : vector<8x128xf32> to vector<8x32xf32>
    %745 = math.tanh %744 : vector<8x32xf32>
    %746 = vector.extract_strided_slice %733 {offsets = [0, 96], sizes = [8, 32], strides = [1, 1]} : vector<8x128xf32> to vector<8x32xf32>
    %747 = math.tanh %746 : vector<8x32xf32>
    %748 = vector.extract_strided_slice %738 {offsets = [0, 32], sizes = [8, 32], strides = [1, 1]} : vector<8x128xf32> to vector<8x32xf32>
    %749 = arith.mulf %748, %712 : vector<8x32xf32>
    %750 = vector.extract_strided_slice %738 {offsets = [0, 0], sizes = [8, 32], strides = [1, 1]} : vector<8x128xf32> to vector<8x32xf32>
    %751 = arith.mulf %750, %745 : vector<8x32xf32>
    %752 = arith.addf %749, %751 : vector<8x32xf32>
    %753 = vector.extract_strided_slice %743 {offsets = [0, 32], sizes = [8, 32], strides = [1, 1]} : vector<8x128xf32> to vector<8x32xf32>
    %754 = arith.mulf %753, %717 : vector<8x32xf32>
    %755 = vector.extract_strided_slice %743 {offsets = [0, 0], sizes = [8, 32], strides = [1, 1]} : vector<8x128xf32> to vector<8x32xf32>
    %756 = arith.mulf %755, %747 : vector<8x32xf32>
    %757 = arith.addf %754, %756 : vector<8x32xf32>
    %758 = vector.extract_strided_slice %738 {offsets = [0, 64], sizes = [8, 32], strides = [1, 1]} : vector<8x128xf32> to vector<8x32xf32>
    %759 = math.tanh %752 : vector<8x32xf32>
    %760 = arith.mulf %758, %759 : vector<8x32xf32>
    %761 = vector.extract_strided_slice %743 {offsets = [0, 64], sizes = [8, 32], strides = [1, 1]} : vector<8x128xf32> to vector<8x32xf32>
    %762 = math.tanh %757 : vector<8x32xf32>
    %763 = arith.mulf %761, %762 : vector<8x32xf32>
    %764 = tpu.concatenate %760, %763 in 1 : vector<8x32xf32>, vector<8x32xf32> -> vector<8x64xf32>
    %c16_235 = arith.constant 16 : index
    %c0_236 = arith.constant 0 : index
    %765 = vector.load %arg6[%c16_235, %c0_236] : memref<64x32xf32, #tpu.memory_space<vmem>>, vector<8x32xf32>
    tpu.vector_store %arg6[%c16_235, %c0_236], %760 {strides = array<i32>} : memref<64x32xf32, #tpu.memory_space<vmem>>, vector<8x32xf32>,
    %c40_237 = arith.constant 40 : index
    %c0_238 = arith.constant 0 : index
    %766 = vector.load %arg7[%c40_237, %c0_238] : memref<64x32xf32, #tpu.memory_space<vmem>>, vector<8x32xf32>
    tpu.vector_store %arg7[%c40_237, %c0_238], %763 {strides = array<i32>} : memref<64x32xf32, #tpu.memory_space<vmem>>, vector<8x32xf32>,
    %c24_239 = arith.constant 24 : index
    %c0_240 = arith.constant 0 : index
    %767 = vector.load %arg5[%c24_239, %c0_240] : memref<64x256xf32, #tpu.memory_space<vmem>>, vector<8x128xf32>
    %c32_241 = arith.constant 32 : index
    %c128_242 = arith.constant 128 : index
    %768 = vector.load %arg5[%c32_241, %c128_242] : memref<64x256xf32, #tpu.memory_space<vmem>>, vector<8x128xf32>
    %cst_243 = arith.constant dense<0.000000e+00> : vector<8x256xf32>
    %769 = tpu.matmul %764, %657, %cst_243 {dimension_numbers = #tpu.dot_dimension_numbers<[1], [0], [0], [1], [0, 0, 1, 1], [], []>} : vector<8x64xf32>, vector<64x256xf32>, vector<8x256xf32> -> vector<8x256xf32>
    %770 = vector.extract_strided_slice %769 {offsets = [0, 0], sizes = [8, 128], strides = [1, 1]} : vector<8x256xf32> to vector<8x128xf32>
    %771 = arith.addf %767, %770 : vector<8x128xf32>
    %772 = vector.extract_strided_slice %769 {offsets = [0, 128], sizes = [8, 128], strides = [1, 1]} : vector<8x256xf32> to vector<8x128xf32>
    %773 = arith.addf %768, %772 : vector<8x128xf32>
    %774 = arith.negf %771 : vector<8x128xf32>
    %775 = math.exp %774 : vector<8x128xf32>
    %cst_244 = arith.constant 1.000000e+00 : f32
    %776 = vector.broadcast %cst_244 : f32 to vector<8x128xf32>
    %777 = arith.addf %776, %775 : vector<8x128xf32>
    %778 = arith.divf %776, %777 : vector<8x128xf32>
    %779 = arith.negf %773 : vector<8x128xf32>
    %780 = math.exp %779 : vector<8x128xf32>
    %cst_245 = arith.constant 1.000000e+00 : f32
    %781 = vector.broadcast %cst_245 : f32 to vector<8x128xf32>
    %782 = arith.addf %781, %780 : vector<8x128xf32>
    %783 = arith.divf %781, %782 : vector<8x128xf32>
    %784 = vector.extract_strided_slice %771 {offsets = [0, 96], sizes = [8, 32], strides = [1, 1]} : vector<8x128xf32> to vector<8x32xf32>
    %785 = math.tanh %784 : vector<8x32xf32>
    %786 = vector.extract_strided_slice %773 {offsets = [0, 96], sizes = [8, 32], strides = [1, 1]} : vector<8x128xf32> to vector<8x32xf32>
    %787 = math.tanh %786 : vector<8x32xf32>
    %788 = vector.extract_strided_slice %778 {offsets = [0, 32], sizes = [8, 32], strides = [1, 1]} : vector<8x128xf32> to vector<8x32xf32>
    %789 = arith.mulf %788, %752 : vector<8x32xf32>
    %790 = vector.extract_strided_slice %778 {offsets = [0, 0], sizes = [8, 32], strides = [1, 1]} : vector<8x128xf32> to vector<8x32xf32>
    %791 = arith.mulf %790, %785 : vector<8x32xf32>
    %792 = arith.addf %789, %791 : vector<8x32xf32>
    %793 = vector.extract_strided_slice %783 {offsets = [0, 32], sizes = [8, 32], strides = [1, 1]} : vector<8x128xf32> to vector<8x32xf32>
    %794 = arith.mulf %793, %757 : vector<8x32xf32>
    %795 = vector.extract_strided_slice %783 {offsets = [0, 0], sizes = [8, 32], strides = [1, 1]} : vector<8x128xf32> to vector<8x32xf32>
    %796 = arith.mulf %795, %787 : vector<8x32xf32>
    %797 = arith.addf %794, %796 : vector<8x32xf32>
    %798 = vector.extract_strided_slice %778 {offsets = [0, 64], sizes = [8, 32], strides = [1, 1]} : vector<8x128xf32> to vector<8x32xf32>
    %799 = math.tanh %792 : vector<8x32xf32>
    %800 = arith.mulf %798, %799 : vector<8x32xf32>
    %801 = vector.extract_strided_slice %783 {offsets = [0, 64], sizes = [8, 32], strides = [1, 1]} : vector<8x128xf32> to vector<8x32xf32>
    %802 = math.tanh %797 : vector<8x32xf32>
    %803 = arith.mulf %801, %802 : vector<8x32xf32>
    %804 = tpu.concatenate %800, %803 in 1 : vector<8x32xf32>, vector<8x32xf32> -> vector<8x64xf32>
    %c24_246 = arith.constant 24 : index
    %c0_247 = arith.constant 0 : index
    %805 = vector.load %arg6[%c24_246, %c0_247] : memref<64x32xf32, #tpu.memory_space<vmem>>, vector<8x32xf32>
    tpu.vector_store %arg6[%c24_246, %c0_247], %800 {strides = array<i32>} : memref<64x32xf32, #tpu.memory_space<vmem>>, vector<8x32xf32>,
    %c32_248 = arith.constant 32 : index
    %c0_249 = arith.constant 0 : index
    %806 = vector.load %arg7[%c32_248, %c0_249] : memref<64x32xf32, #tpu.memory_space<vmem>>, vector<8x32xf32>
    tpu.vector_store %arg7[%c32_248, %c0_249], %803 {strides = array<i32>} : memref<64x32xf32, #tpu.memory_space<vmem>>, vector<8x32xf32>,
    %c32_250 = arith.constant 32 : index
    %c0_251 = arith.constant 0 : index
    %807 = vector.load %arg5[%c32_250, %c0_251] : memref<64x256xf32, #tpu.memory_space<vmem>>, vector<8x128xf32>
    %c24_252 = arith.constant 24 : index
    %c128_253 = arith.constant 128 : index
    %808 = vector.load %arg5[%c24_252, %c128_253] : memref<64x256xf32, #tpu.memory_space<vmem>>, vector<8x128xf32>
    %cst_254 = arith.constant dense<0.000000e+00> : vector<8x256xf32>
    %809 = tpu.matmul %804, %657, %cst_254 {dimension_numbers = #tpu.dot_dimension_numbers<[1], [0], [0], [1], [0, 0, 1, 1], [], []>} : vector<8x64xf32>, vector<64x256xf32>, vector<8x256xf32> -> vector<8x256xf32>
    %810 = vector.extract_strided_slice %809 {offsets = [0, 0], sizes = [8, 128], strides = [1, 1]} : vector<8x256xf32> to vector<8x128xf32>
    %811 = arith.addf %807, %810 : vector<8x128xf32>
    %812 = vector.extract_strided_slice %809 {offsets = [0, 128], sizes = [8, 128], strides = [1, 1]} : vector<8x256xf32> to vector<8x128xf32>
    %813 = arith.addf %808, %812 : vector<8x128xf32>
    %814 = arith.negf %811 : vector<8x128xf32>
    %815 = math.exp %814 : vector<8x128xf32>
    %cst_255 = arith.constant 1.000000e+00 : f32
    %816 = vector.broadcast %cst_255 : f32 to vector<8x128xf32>
    %817 = arith.addf %816, %815 : vector<8x128xf32>
    %818 = arith.divf %816, %817 : vector<8x128xf32>
    %819 = arith.negf %813 : vector<8x128xf32>
    %820 = math.exp %819 : vector<8x128xf32>
    %cst_256 = arith.constant 1.000000e+00 : f32
    %821 = vector.broadcast %cst_256 : f32 to vector<8x128xf32>
    %822 = arith.addf %821, %820 : vector<8x128xf32>
    %823 = arith.divf %821, %822 : vector<8x128xf32>
    %824 = vector.extract_strided_slice %811 {offsets = [0, 96], sizes = [8, 32], strides = [1, 1]} : vector<8x128xf32> to vector<8x32xf32>
    %825 = math.tanh %824 : vector<8x32xf32>
    %826 = vector.extract_strided_slice %813 {offsets = [0, 96], sizes = [8, 32], strides = [1, 1]} : vector<8x128xf32> to vector<8x32xf32>
    %827 = math.tanh %826 : vector<8x32xf32>
    %828 = vector.extract_strided_slice %818 {offsets = [0, 32], sizes = [8, 32], strides = [1, 1]} : vector<8x128xf32> to vector<8x32xf32>
    %829 = arith.mulf %828, %792 : vector<8x32xf32>
    %830 = vector.extract_strided_slice %818 {offsets = [0, 0], sizes = [8, 32], strides = [1, 1]} : vector<8x128xf32> to vector<8x32xf32>
    %831 = arith.mulf %830, %825 : vector<8x32xf32>
    %832 = arith.addf %829, %831 : vector<8x32xf32>
    %833 = vector.extract_strided_slice %823 {offsets = [0, 32], sizes = [8, 32], strides = [1, 1]} : vector<8x128xf32> to vector<8x32xf32>
    %834 = arith.mulf %833, %797 : vector<8x32xf32>
    %835 = vector.extract_strided_slice %823 {offsets = [0, 0], sizes = [8, 32], strides = [1, 1]} : vector<8x128xf32> to vector<8x32xf32>
    %836 = arith.mulf %835, %827 : vector<8x32xf32>
    %837 = arith.addf %834, %836 : vector<8x32xf32>
    %838 = vector.extract_strided_slice %818 {offsets = [0, 64], sizes = [8, 32], strides = [1, 1]} : vector<8x128xf32> to vector<8x32xf32>
    %839 = math.tanh %832 : vector<8x32xf32>
    %840 = arith.mulf %838, %839 : vector<8x32xf32>
    %841 = vector.extract_strided_slice %823 {offsets = [0, 64], sizes = [8, 32], strides = [1, 1]} : vector<8x128xf32> to vector<8x32xf32>
    %842 = math.tanh %837 : vector<8x32xf32>
    %843 = arith.mulf %841, %842 : vector<8x32xf32>
    %844 = tpu.concatenate %840, %843 in 1 : vector<8x32xf32>, vector<8x32xf32> -> vector<8x64xf32>
    %c32_257 = arith.constant 32 : index
    %c0_258 = arith.constant 0 : index
    %845 = vector.load %arg6[%c32_257, %c0_258] : memref<64x32xf32, #tpu.memory_space<vmem>>, vector<8x32xf32>
    tpu.vector_store %arg6[%c32_257, %c0_258], %840 {strides = array<i32>} : memref<64x32xf32, #tpu.memory_space<vmem>>, vector<8x32xf32>,
    %c24_259 = arith.constant 24 : index
    %c0_260 = arith.constant 0 : index
    %846 = vector.load %arg7[%c24_259, %c0_260] : memref<64x32xf32, #tpu.memory_space<vmem>>, vector<8x32xf32>
    tpu.vector_store %arg7[%c24_259, %c0_260], %843 {strides = array<i32>} : memref<64x32xf32, #tpu.memory_space<vmem>>, vector<8x32xf32>,
    %c40_261 = arith.constant 40 : index
    %c0_262 = arith.constant 0 : index
    %847 = vector.load %arg5[%c40_261, %c0_262] : memref<64x256xf32, #tpu.memory_space<vmem>>, vector<8x128xf32>
    %c16_263 = arith.constant 16 : index
    %c128_264 = arith.constant 128 : index
    %848 = vector.load %arg5[%c16_263, %c128_264] : memref<64x256xf32, #tpu.memory_space<vmem>>, vector<8x128xf32>
    %cst_265 = arith.constant dense<0.000000e+00> : vector<8x256xf32>
    %849 = tpu.matmul %844, %657, %cst_265 {dimension_numbers = #tpu.dot_dimension_numbers<[1], [0], [0], [1], [0, 0, 1, 1], [], []>} : vector<8x64xf32>, vector<64x256xf32>, vector<8x256xf32> -> vector<8x256xf32>
    %850 = vector.extract_strided_slice %849 {offsets = [0, 0], sizes = [8, 128], strides = [1, 1]} : vector<8x256xf32> to vector<8x128xf32>
    %851 = arith.addf %847, %850 : vector<8x128xf32>
    %852 = vector.extract_strided_slice %849 {offsets = [0, 128], sizes = [8, 128], strides = [1, 1]} : vector<8x256xf32> to vector<8x128xf32>
    %853 = arith.addf %848, %852 : vector<8x128xf32>
    %854 = arith.negf %851 : vector<8x128xf32>
    %855 = math.exp %854 : vector<8x128xf32>
    %cst_266 = arith.constant 1.000000e+00 : f32
    %856 = vector.broadcast %cst_266 : f32 to vector<8x128xf32>
    %857 = arith.addf %856, %855 : vector<8x128xf32>
    %858 = arith.divf %856, %857 : vector<8x128xf32>
    %859 = arith.negf %853 : vector<8x128xf32>
    %860 = math.exp %859 : vector<8x128xf32>
    %cst_267 = arith.constant 1.000000e+00 : f32
    %861 = vector.broadcast %cst_267 : f32 to vector<8x128xf32>
    %862 = arith.addf %861, %860 : vector<8x128xf32>
    %863 = arith.divf %861, %862 : vector<8x128xf32>
    %864 = vector.extract_strided_slice %851 {offsets = [0, 96], sizes = [8, 32], strides = [1, 1]} : vector<8x128xf32> to vector<8x32xf32>
    %865 = math.tanh %864 : vector<8x32xf32>
    %866 = vector.extract_strided_slice %853 {offsets = [0, 96], sizes = [8, 32], strides = [1, 1]} : vector<8x128xf32> to vector<8x32xf32>
    %867 = math.tanh %866 : vector<8x32xf32>
    %868 = vector.extract_strided_slice %858 {offsets = [0, 32], sizes = [8, 32], strides = [1, 1]} : vector<8x128xf32> to vector<8x32xf32>
    %869 = arith.mulf %868, %832 : vector<8x32xf32>
    %870 = vector.extract_strided_slice %858 {offsets = [0, 0], sizes = [8, 32], strides = [1, 1]} : vector<8x128xf32> to vector<8x32xf32>
    %871 = arith.mulf %870, %865 : vector<8x32xf32>
    %872 = arith.addf %869, %871 : vector<8x32xf32>
    %873 = vector.extract_strided_slice %863 {offsets = [0, 32], sizes = [8, 32], strides = [1, 1]} : vector<8x128xf32> to vector<8x32xf32>
    %874 = arith.mulf %873, %837 : vector<8x32xf32>
    %875 = vector.extract_strided_slice %863 {offsets = [0, 0], sizes = [8, 32], strides = [1, 1]} : vector<8x128xf32> to vector<8x32xf32>
    %876 = arith.mulf %875, %867 : vector<8x32xf32>
    %877 = arith.addf %874, %876 : vector<8x32xf32>
    %878 = vector.extract_strided_slice %858 {offsets = [0, 64], sizes = [8, 32], strides = [1, 1]} : vector<8x128xf32> to vector<8x32xf32>
    %879 = math.tanh %872 : vector<8x32xf32>
    %880 = arith.mulf %878, %879 : vector<8x32xf32>
    %881 = vector.extract_strided_slice %863 {offsets = [0, 64], sizes = [8, 32], strides = [1, 1]} : vector<8x128xf32> to vector<8x32xf32>
    %882 = math.tanh %877 : vector<8x32xf32>
    %883 = arith.mulf %881, %882 : vector<8x32xf32>
    %c40_268 = arith.constant 40 : index
    %c0_269 = arith.constant 0 : index
    %884 = vector.load %arg6[%c40_268, %c0_269] : memref<64x32xf32, #tpu.memory_space<vmem>>, vector<8x32xf32>
    tpu.vector_store %arg6[%c40_268, %c0_269], %880 {strides = array<i32>} : memref<64x32xf32, #tpu.memory_space<vmem>>, vector<8x32xf32>,
    %c16_270 = arith.constant 16 : index
    %c0_271 = arith.constant 0 : index
    %885 = vector.load %arg7[%c16_270, %c0_271] : memref<64x32xf32, #tpu.memory_space<vmem>>, vector<8x32xf32>
    tpu.vector_store %arg7[%c16_270, %c0_271], %883 {strides = array<i32>} : memref<64x32xf32, #tpu.memory_space<vmem>>, vector<8x32xf32>,
    %c40_272 = arith.constant 40 : index
    %c0_273 = arith.constant 0 : index
    %886 = vector.load %arg6[%c40_272, %c0_273] : memref<64x32xf32, #tpu.memory_space<vmem>>, vector<8x32xf32>
    %c40_274 = arith.constant 40 : index
    %c0_275 = arith.constant 0 : index
    %887 = vector.load %arg7[%c40_274, %c0_275] : memref<64x32xf32, #tpu.memory_space<vmem>>, vector<8x32xf32>
    %c5 = arith.constant 5 : index
    %c0_276 = arith.constant 0 : index
    %c0_277 = arith.constant 0 : index
    %888 = vector.load %arg2[%c5, %c0_276, %c0_277] : memref<6x64x256xf32, #tpu.memory_space<vmem>>, vector<1x64x256xf32>
    %889 = vector.shape_cast %888 : vector<1x64x256xf32> to vector<64x256xf32>
    %890 = vector.extract_strided_slice %889 {offsets = [0, 0], sizes = [32, 5], strides = [1, 1]} : vector<64x256xf32> to vector<32x5xf32>
    %cst_278 = arith.constant dense<0.000000e+00> : vector<8x5xf32>
    %891 = tpu.matmul %886, %890, %cst_278 {dimension_numbers = #tpu.dot_dimension_numbers<[1], [0], [0], [1], [0, 0, 1, 1], [], []>} : vector<8x32xf32>, vector<32x5xf32>, vector<8x5xf32> -> vector<8x5xf32>
    %892 = vector.extract_strided_slice %889 {offsets = [32, 0], sizes = [32, 5], strides = [1, 1]} : vector<64x256xf32> to vector<32x5xf32>
    %cst_279 = arith.constant dense<0.000000e+00> : vector<8x5xf32>
    %893 = tpu.matmul %887, %892, %cst_279 {dimension_numbers = #tpu.dot_dimension_numbers<[1], [0], [0], [1], [0, 0, 1, 1], [], []>} : vector<8x32xf32>, vector<32x5xf32>, vector<8x5xf32> -> vector<8x5xf32>
    %894 = arith.addf %891, %893 : vector<8x5xf32>
    %c3_280 = arith.constant 3 : index
    %c0_281 = arith.constant 0 : index
    %c0_282 = arith.constant 0 : index
    %895 = vector.load %arg3[%c3_280, %c0_281, %c0_282] : memref<4x1x256xf32, #tpu.memory_space<vmem>>, vector<1x1x256xf32>
    %896 = vector.shape_cast %895 : vector<1x1x256xf32> to vector<1x256xf32>
    %897 = vector.extract_strided_slice %896 {offsets = [0, 0], sizes = [1, 5], strides = [1, 1]} : vector<1x256xf32> to vector<1x5xf32>
    %898 = vector.broadcast %897 : vector<1x5xf32> to vector<8x5xf32>
    %899 = arith.addf %894, %898 : vector<8x5xf32>
    %cst_283 = arith.constant dense<0xFF800000> : vector<8xf32>
    %900 = vector.multi_reduction <maximumf>, %899, %cst_283 [1] : vector<8x5xf32> to vector<8xf32>
    %901 = vector.shape_cast %900 : vector<8xf32> to vector<8x1xf32>
    %902 = vector.broadcast %901 : vector<8x1xf32> to vector<8x5xf32>
    %903 = arith.subf %899, %902 : vector<8x5xf32>
    %904 = math.exp %903 : vector<8x5xf32>
    %cst_284 = arith.constant dense<0.000000e+00> : vector<8xf32>
    %905 = vector.multi_reduction <add>, %904, %cst_284 [1] : vector<8x5xf32> to vector<8xf32>
    %906 = vector.shape_cast %905 : vector<8xf32> to vector<8x1xf32>
    %907 = math.log %906 : vector<8x1xf32>
    %908 = arith.addf %907, %901 : vector<8x1xf32>
    %909 = vector.broadcast %908 : vector<8x1xf32> to vector<8x5xf32>
    %910 = arith.subf %899, %909 : vector<8x5xf32>
    %c0_285 = arith.constant 0 : index
    %c0_286 = arith.constant 0 : index
    %911 = vector.load %arg4[%c0_285, %c0_286] : memref<8x5xf32, #tpu.memory_space<vmem>>, vector<8x5xf32>
    tpu.vector_store %arg4[%c0_285, %c0_286], %910 {strides = array<i32>} : memref<8x5xf32, #tpu.memory_space<vmem>>, vector<8x5xf32>,
    return
  }
}

</mosaic_0001>

<bundles_post_ra>
// kernel: lstm_encoder_forward.1
= control target key start
LH: loop header
LB: loop body
LE: loop exit
PB: predicated region body
PF: predicated region fallthrough
CT: control target
= control target key end

     0   :  { %9 = vsyncpa [#allocation6], 0  ;;  %s4884_s15 = smov [#allocation5]   ;;  %s5785_s0 = inlined_call_operand.vmem [shape: f32[64,16], index: 0, kind: input, shape index: {}]   ;;  %s5786_s1 = inlined_call_operand.vmem [shape: f32[16,256], index: 1, kind: input, shape index: {}]   ;;  %s5787_s2 = inlined_call_operand.hbm [shape: f32[6,64,256], index: 2, kind: input, shape index: {}]   ;;  %s5788_s3 = inlined_call_operand.vmem [shape: f32[4,1,256], index: 3, kind: input, shape index: {}]   ;;  %s5789_s4 = inlined_call_operand.vmem [shape: f32[8,5], index: 4, kind: output, shape index: {}]  }
   0x1   :  { %s19_s16 = sshll.u32 %s4884_s15, 4  ;;  %s4860_s19 = scalar_lea.hbm %s5787_s2, 12288  ;;  %s20_s16 = int_to_ptr.vmem [resolvable:$true] %s19_s16 }
   0x2   :  { %p4861_p0 = scmp.ne.s32.totalorder %s5787_s2, %s4860_s19  ;;  %p4864_p1 = scmp.lt.u32.totalorder %s4860_s19, %s5787_s2 }
   0x4   :  { %p4866_p2 = pnand %p4864_p1, %p4861_p0 }
   0x6   :  { %4869 = shalt.err (!%p4866_p2)
}
   0x7   :  { %s4870_s24 = scalar_lea.vmem %s20_s16, 12288  ;;  %p4875_p4 = scmp.lt.s32.totalorder %s20_s16, %s20_s16 }
   0x8   :  { %p4871_p3 = scmp.ne.s32.totalorder %s20_s16, %s4870_s24  ;;  %p4876_p5 = scmp.lt.s32.totalorder %s4870_s24, %s4870_s24 }
   0xa   :  { %p4877_p6 = por %p4876_p5, %p4875_p4 }
   0xc   :  { %p4878_p7 = pnand %p4877_p6, %p4871_p3 }
   0xe   :  { %4881 = shalt.err (!%p4878_p7)
}
   0xf   :  { %s4885_s25 = smov 256   ;;  %s4886_s26 = smov 16  }
  0x10   :  { %25 = dma.hbm_to_vmem [thread:$0]  %s5787_s2, 12288, %s20_s16, [#allocation6], %s4885_s25, %s4885_s25, %s4886_s26  }
  0x11   :  { %4882 = dma.done.wait [#allocation6], 12288  }
  0x12   :  { %4883 = vsyncadd [#allocation6], 4294955008  ;;  %v4887_v0 = vmov 0.0   ;;  %v40_v1 = vld [vmem:[%s5786_s1 + $0x8] sm:$0xff]  ;;  %v42_v2 = vld [vmem:[%s5786_s1 + $0x18] sm:$0xff]  ;;  %vm55_vm0 = vcmask 130048   ;;  %v45_v15 = vlaneseq }
  0x13   :  { %144 = vmatprep.mubr.f32.mxu0 %v4887_v0  ;;  %348 = vmatprep.mubr.f32.mxu1 %v4887_v0  ;;  %v39_v3 = vld [vmem:[%s5786_s1] sm:$0xff]  ;;  %v4119_v4 = vpack.c.bf16 %v42_v2, %v40_v1  ;;  %v41_v5 = vld [vmem:[%s5786_s1 + $0x10] sm:$0xff]  ;;  %v32_v8 = vld [vmem:[%s5785_s0 + $0x8] sm:$0xff]  ;;  %s4889_s27 = smov 64   ;;  %s4890_s28 = smov 96   ;;  %vm271_vm1 = vcmask 261120  }
  0x14   :  { %v4121_v6 = vpack.c.bf16 %v41_v5, %v39_v3  ;;  %v31_v7 = vld [vmem:[%s5785_s0] sm:$0xff]  ;;  %v33_v9 = vld [vmem:[%s5785_s0 + $0x10] sm:$0xff]  ;;  %v34_v10 = vld [vmem:[%s5785_s0 + $0x18] sm:$0xff]  ;;  %v46_v16 = vshrl.u32 %v45_v15, 7  ;;  %vm280_vm2 = vcmask 523264   ;;  %vm4892_vm3 = vmmov 0  }
  0x15   :  { %4120 = vmatprep.subr.bf16.mxu0 %v4119_v4  ;;  %v35_v11 = vld [vmem:[%s5785_s0 + $0x20] sm:$0xff]  ;;  %v36_v12 = vld [vmem:[%s5785_s0 + $0x28] sm:$0xff]  ;;  %v37_v13 = vld [vmem:[%s5785_s0 + $0x30] sm:$0xff]  ;;  %vm3959_vm4 = vcmask 39936  }
  0x16   :  { %4122 = vmatpush1.bf16.msra.mxu0 %v4121_v6  ;;  %v38_v14 = vld [vmem:[%s5785_s0 + $0x38] sm:$0xff]  ;;  %v4984_v17 = vsub.s32 0, %v46_v16  ;;  %v43_v18 = vld [vmem:[%s5788_s3] sm:$0x3]  ;;  %v4989_v19 = vsub.s32 1, %v46_v16  ;;  %s4888_s0 = smov 32  }
  0x17   :  { %v213_v16 = vld [vmem:[#allocation5 + $0x20] sm:$0xff] }
  0x18   :  { %v48_v20 = vrot.slane %v43_v18, %v4984_v17  ;;  %v52_v21 = vrot.slane %v43_v18, %v4989_v19  ;;  %v215_v18 = vld [vmem:[#allocation5 + $0x30] sm:$0xff] }
  0x19   :  { %3979 = vmatmul.mubr.msk.f32.vlgmr.msra.gmra.mrb[0].mxu0 %vm55_vm0, %v31_v7  ;;  %v210_v7 = vld [vmem:[#allocation5 + $0x8] sm:$0xff] }
  0x1a   :  { %150 = vmatprep.mubr.f32.mxu0 %v4887_v0 }
  0x1d   :  { %3980 = vmatmul.mubr.msk.f32.gmra.mrb[2].mxu0 %vm55_vm0, %v32_v8  ;;  %v212_v8 = vld [vmem:[#allocation5 + $0x18] sm:$0xff] }
  0x1e   :  { %156 = vmatprep.mubr.f32.mxu0 %v4887_v0 }
  0x21   :  { %3981 = vmatmul.mubr.msk.f32.gmra.mrb[4].mxu0 %vm55_vm0, %v33_v9  ;;  %v209_v9 = vld [vmem:[#allocation5] sm:$0xff] }
  0x22   :  { %162 = vmatprep.mubr.f32.mxu0 %v4887_v0 }
  0x25   :  { %3982 = vmatmul.mubr.msk.f32.gmra.mrb[6].mxu0 %vm55_vm0, %v34_v10  ;;  %v5031_v10 = vpack.c.bf16 %v212_v8, %v210_v7 }
  0x26   :  { %168 = vmatprep.mubr.f32.mxu0 %v4887_v0 }
  0x27   :  { %4124 = vmatprep.subr.bf16.mxu1 %v5031_v10  ;;  %4156 = vmatprep.subr.bf16.mxu0 %v5031_v10 }
  0x29   :  { %3983 = vmatmul.mubr.msk.f32.gmra.mrb[8].mxu0 %vm55_vm0, %v35_v11  ;;  %v211_v11 = vld [vmem:[#allocation5 + $0x10] sm:$0xff] }
  0x2a   :  { %174 = vmatprep.mubr.f32.mxu0 %v4887_v0 }
  0x2d   :  { %3984 = vmatmul.mubr.msk.f32.gmra.mrb[10].mxu0 %vm55_vm0, %v36_v12  ;;  %v214_v12 = vld [vmem:[#allocation5 + $0x28] sm:$0xff] }
  0x2e   :  { %180 = vmatprep.mubr.f32.mxu0 %v4887_v0 }
  0x31   :  { %3985 = vmatmul.mubr.msk.f32.gmra.mrb[12].mxu0 %vm55_vm0, %v37_v13  ;;  %v216_v13 = vld [vmem:[#allocation5 + $0x38] sm:$0xff] }
  0x32   :  { %186 = vmatprep.mubr.f32.mxu0 %v4887_v0  ;;  %v5035_v15 = vpack.c.bf16 %v216_v13, %v214_v12 }
  0x35   :  { %3986 = vmatmul.mubr.msk.f32.gmra.mrb[14].mxu0 %vm55_vm0, %v38_v14  ;;  %v5033_v14 = vpack.c.bf16 %v211_v11, %v209_v9 }
  0x36   :  { %636 = vmatprep.mubr.f32.mxu0 %v4887_v0 }
  0x37   :  { %4126 = vmatpush1.bf16.msra.mxu1 %v5033_v14  ;;  %4158 = vmatpush1.bf16.msra.mxu0 %v5033_v14 }
  0x38   :  { %4128 = vmatprep.subr.bf16.mxu1 %v5035_v15  ;;  %4160 = vmatprep.subr.bf16.mxu0 %v5035_v15 }
  0xec   :  { %v146_v22 = vpop.f32.mrb[0].mxu0 }
  0xed   :  { %v147_v23 = vadd.f32 %v146_v22, %v48_v20  ;;  %v148_v24 = vpop.f32.mrb[1].mxu0  ;;  %v5040_v22 = vpack.c.bf16 %v215_v18, %v213_v16 }
  0xee   :  { %v4993_v25 = vadd.f32 %v148_v24, %v52_v21  ;;  %v217_v24 = vld [vmem:[#allocation5 + $0x40] sm:$0xff] }
  0xef   :  { %4504 = vtanh.f32 %v147_v23  ;;  %v3987_v56 = vmul.f32 -1.442695, %v147_v23  ;;  %4130 = vmatpush1.bf16.msra.mxu1 %v5040_v22  ;;  %4162 = vmatpush1.bf16.msra.mxu0 %v5040_v22 }
  0xf0   :  { %v152_v26 = vpop.f32.mrb[2].mxu0 }
  0xf1   :  { %v4995_v27 = vadd.f32 %v152_v26, %v48_v20  ;;  %v154_v28 = vpop.f32.mrb[3].mxu0  ;;  %v219_v26 = vld [vmem:[#allocation5 + $0x50] sm:$0xff] }
  0xf2   :  { %v4997_v29 = vadd.f32 %v154_v28, %v52_v21  ;;  %v222_v28 = vld [vmem:[#allocation5 + $0x68] sm:$0xff] }
  0xf4   :  { %v158_v30 = vpop.f32.mrb[4].mxu0 }
  0xf5   :  { %v4999_v31 = vadd.f32 %v158_v30, %v48_v20  ;;  %v160_v32 = vpop.f32.mrb[5].mxu0  ;;  %v224_v30 = vld [vmem:[#allocation5 + $0x78] sm:$0xff] }
  0xf6   :  { %v5001_v33 = vadd.f32 %v160_v32, %v52_v21  ;;  %v5048_v32 = vpack.c.bf16 %v219_v26, %v217_v24 }
  0xf8   :  { %v164_v34 = vpop.f32.mrb[6].mxu0 }
  0xf9   :  { %v4505_v35 = vpop.eup %4504  ;;  %v5003_v36 = vadd.f32 %v164_v34, %v48_v20  ;;  %v166_v37 = vpop.f32.mrb[7].mxu0  ;;  %v5052_v34 = vpack.c.bf16 %v224_v30, %v222_v28 }
  0xfa   :  { %v5005_v38 = vadd.f32 %v166_v37, %v52_v21  ;;  %242 = vrot.lane.b32.xlu0 %v4505_v35, %s4888_s0  ;;  %v221_v35 = vld [vmem:[#allocation5 + $0x60] sm:$0xff]  ;;  %v223_v37 = vld [vmem:[#allocation5 + $0x70] sm:$0xff] }
  0xfc   :  { %v170_v39 = vpop.f32.mrb[8].mxu0 }
  0xfd   :  { %v5008_v40 = vadd.f32 %v170_v39, %v48_v20  ;;  %v172_v41 = vpop.f32.mrb[9].mxu0 }
  0xfe   :  { %v5010_v42 = vadd.f32 %v172_v41, %v52_v21 }
 0x100   :  { %v176_v43 = vpop.f32.mrb[10].mxu0 }
 0x101   :  { %v5012_v44 = vadd.f32 %v176_v43, %v48_v20  ;;  %v178_v45 = vpop.f32.mrb[11].mxu0  ;;  %v5056_v43 = vpack.c.bf16 %v223_v37, %v221_v35 }
 0x102   :  { %v5014_v46 = vadd.f32 %v178_v45, %v52_v21 }
 0x104   :  { %v182_v47 = vpop.f32.mrb[12].mxu0 }
 0x105   :  { %v5016_v48 = vadd.f32 %v182_v47, %v48_v20  ;;  %v184_v49 = vpop.f32.mrb[13].mxu0 }
 0x106   :  { %v5018_v50 = vadd.f32 %v184_v49, %v52_v21 }
 0x108   :  { %v188_v51 = vpop.f32.mrb[14].mxu0 }
 0x109   :  { %v5020_v52 = vadd.f32 %v188_v51, %v48_v20  ;;  %v190_v53 = vpop.f32.mrb[15].mxu0  ;;  %v218_v20 = vld [vmem:[#allocation5 + $0x48] sm:$0xff] }
 0x10a   :  { %v191_v54 = vadd.f32 %v190_v53, %v52_v21  ;;  %v220_v21 = vld [vmem:[#allocation5 + $0x58] sm:$0xff] }
 0x10b   :  { %v5044_v23 = vpack.c.bf16 %v220_v21, %v218_v20 }
 0x10c   :  { %4506 = vtanh.f32 %v191_v54  ;;  %v3988_v59 = vmul.f32 -1.442695, %v191_v54 }
 0x10d   :  { %4508 = vpow2.f32 %v3987_v56  ;;  %4132 = vmatprep.subr.bf16.mxu1 %v5044_v23  ;;  %4164 = vmatprep.subr.bf16.mxu0 %v5044_v23 }
 0x10e   :  { %4134 = vmatpush1.bf16.msra.mxu1 %v5048_v32  ;;  %4166 = vmatpush1.bf16.msra.mxu0 %v5048_v32 }
 0x10f   :  { %4136 = vmatprep.subr.bf16.mxu1 %v5052_v34  ;;  %4168 = vmatprep.subr.bf16.mxu0 %v5052_v34 }
 0x112   :  { %4138 = vmatpush1.bf16.msra.mxu1 %v5056_v43  ;;  %4170 = vmatpush1.bf16.msra.mxu0 %v5056_v43 }
 0x113   :  { %4140 = vmatprep.subr.bf16.mxu1 %v5031_v10  ;;  %4188 = vmatprep.subr.bf16.mxu0 %v5031_v10 }
 0x116   :  { %v4507_v55 = vpop.eup %4506 }
 0x117   :  { %247 = vrot.lane.b32.xlu0 %v4507_v55, %s4888_s0  ;;  %v4509_v57 = vpop.eup %4508 }
 0x118   :  { %v230_v58 = vadd.f32 1.0, %v4509_v57 }
 0x11a   :  { %4510 = vrcp.f32 %v230_v58 }
 0x11b   :  { %4512 = vpow2.f32 %v3988_v59 }
 0x124   :  { %v4511_v60 = vpop.eup %4510 }
 0x125   :  { %v4513_v63 = vpop.eup %4512 }
 0x126   :  { %v236_v2 = vadd.f32 1.0, %v4513_v63 }
 0x16c   :  { %v243_v61 = vpop.permute.xlu0 %242 }
 0x16d   :  { %v5023_v62 = vmul.f32 %v4511_v60, %v243_v61 }
 0x16f   :  { %4514 = vtanh.f32 %v5023_v62 }
 0x170   :  { %4516 = vrcp.f32 %v236_v2 }
 0x179   :  { %v4515_v1 = vpop.eup %4514 }
 0x17a   :  { %253 = vrot.lane.b32.xlu1 %v4515_v1, %s4889_s27  ;;  %v4517_v3 = vpop.eup %4516 }
 0x189   :  { %v248_v4 = vpop.permute.xlu0 %247 }
 0x18a   :  { %v5027_v5 = vmul.f32 %v4517_v3, %v248_v4 }
 0x18c   :  { %4518 = vtanh.f32 %v5027_v5 }
 0x196   :  { %v4519_v6 = vpop.eup %4518 }
 0x197   :  { %259 = vrot.lane.b32.xlu1 %v4519_v6, %s4889_s27 }
 0x1ec   :  { %v254_v39 = vpop.permute.xlu1 %253 }
 0x1ed   :  { %v256_v41 = vmul.f32 %v4511_v60, %v254_v39 }
 0x1ef   :  { %264 = vrot.lane.b32.xlu0 %v256_v41, %s4889_s27 }
 0x209   :  { %v260_v45 = vpop.permute.xlu1 %259 }
 0x20a   :  { %v5066_v47 = vmul.f32 %v4517_v3, %v260_v45 }
 0x20c   :  { %268 = vrot.lane.b32.xlu1 %v5066_v47, %s4890_s28 }
 0x261   :  { %v265_v49 = vpop.permute.xlu0 %264 }
 0x262   :  { %273 = vst.msk [vmem:[#allocation3] sm:$0xff] %vm271_vm1, %v265_v49 }
 0x27e   :  { %v269_v51 = vpop.permute.xlu1 %268 }
 0x27f   :  { %v272_v53 = vsel %vm271_vm1, %v265_v49, %v269_v51 }
 0x280   :  { %3989 = vmatmul.mubr.msk.f32.vlgmr.msra.gmra.mrb[0].mxu1 %vm280_vm2, %v272_v53 }
 0x281   :  { %4142 = vmatpush1.bf16.msra.mxu1 %v5033_v14  ;;  %496 = vmatprep.mubr.f32.mxu1 %v4887_v0 }
 0x282   :  { %4144 = vmatprep.subr.bf16.mxu1 %v5035_v15 }
 0x285   :  { %4146 = vmatpush1.bf16.msra.mxu1 %v5040_v22 }
 0x286   :  { %4148 = vmatprep.subr.bf16.mxu1 %v5044_v23 }
 0x289   :  { %4150 = vmatpush1.bf16.msra.mxu1 %v5048_v32 }
 0x28a   :  { %4152 = vmatprep.subr.bf16.mxu1 %v5052_v34 }
 0x28d   :  { %4154 = vmatpush1.bf16.msra.mxu1 %v5056_v43 }
 0x28e   :  { %4172 = vmatprep.subr.bf16.mxu1 %v5031_v10 }
 0x353   :  { %v350_v54 = vpop.f32.mrb[0].mxu1 }
 0x354   :  { %v355_v55 = vadd.f32 %v350_v54, %v4995_v27  ;;  %v352_v56 = vpop.f32.mrb[1].mxu1 }
 0x355   :  { %v356_v57 = vadd.f32 %v352_v56, %v5018_v50 }
 0x356   :  { %4520 = vtanh.f32 %v355_v55  ;;  %v3990_v60 = vmul.f32 -1.442695, %v355_v55 }
 0x357   :  { %4522 = vtanh.f32 %v356_v57  ;;  %v3991_v61 = vmul.f32 -1.442695, %v356_v57 }
 0x358   :  { %4524 = vpow2.f32 %v3990_v60 }
 0x359   :  { %4526 = vpow2.f32 %v3991_v61 }
 0x360   :  { %v4521_v58 = vpop.eup %4520 }
 0x361   :  { %v4523_v59 = vpop.eup %4522  ;;  %377 = vrot.lane.b32.xlu0 %v4521_v58, %s4888_s0 }
 0x362   :  { %392 = vrot.lane.b32.xlu1 %v4523_v59, %s4888_s0  ;;  %v4525_v27 = vpop.eup %4524 }
 0x363   :  { %v4527_v50 = vpop.eup %4526  ;;  %v360_v63 = vadd.f32 1.0, %v4525_v27 }
 0x364   :  { %v366_v1 = vadd.f32 1.0, %v4527_v50 }
 0x365   :  { %372 = vrot.lane.b32.xlu0 %v5023_v62, %s4888_s0  ;;  %4528 = vrcp.f32 %v360_v63 }
 0x366   :  { %387 = vrot.lane.b32.xlu1 %v5027_v5, %s4888_s0  ;;  %4530 = vrcp.f32 %v366_v1 }
 0x36f   :  { %v4529_v2 = vpop.eup %4528 }
 0x370   :  { %v4531_v4 = vpop.eup %4530 }
 0x3d3   :  { %v378_v3 = vpop.permute.xlu0 %377 }
 0x3d4   :  { %v380_v6 = vmul.f32 %v4529_v2, %v378_v3  ;;  %v393_v7 = vpop.permute.xlu1 %392 }
 0x3d5   :  { %v395_v8 = vmul.f32 %v4531_v4, %v393_v7 }
 0x3d6   :  { %382 = vrot.lane.b32.xlu0 %v380_v6, %s4888_s0 }
 0x3d7   :  { %397 = vrot.lane.b32.xlu1 %v395_v8, %s4888_s0  ;;  %v373_v62 = vpop.permute.xlu0 %372 }
 0x3d8   :  { %v388_v5 = vpop.permute.xlu1 %387  ;;  %v375_v9 = vmul.f32 %v4529_v2, %v373_v62 }
 0x3d9   :  { %v390_v11 = vmul.f32 %v4531_v4, %v388_v5 }
 0x448   :  { %v383_v12 = vpop.permute.xlu0 %382 }
 0x449   :  { %v385_v13 = vadd.f32 %v383_v12, %v375_v9  ;;  %v398_v16 = vpop.permute.xlu1 %397 }
 0x44a   :  { %v400_v18 = vadd.f32 %v398_v16, %v390_v11 }
 0x44b   :  { %4532 = vtanh.f32 %v385_v13 }
 0x44c   :  { %4534 = vtanh.f32 %v400_v18 }
 0x455   :  { %v4533_v20 = vpop.eup %4532 }
 0x456   :  { %v4535_v21 = vpop.eup %4534  ;;  %403 = vrot.lane.b32.xlu0 %v4533_v20, %s4888_s0 }
 0x457   :  { %409 = vrot.lane.b32.xlu1 %v4535_v21, %s4888_s0 }
 0x4c8   :  { %v404_v24 = vpop.permute.xlu0 %403 }
 0x4c9   :  { %v406_v26 = vmul.f32 %v4529_v2, %v404_v24  ;;  %v410_v28 = vpop.permute.xlu1 %409 }
 0x4ca   :  { %v5094_v30 = vmul.f32 %v4531_v4, %v410_v28 }
 0x4cb   :  { %414 = vrot.lane.b32.xlu0 %v406_v26, %s4889_s27 }
 0x4cc   :  { %418 = vrot.lane.b32.xlu1 %v5094_v30, %s4890_s28 }
 0x53d   :  { %v415_v35 = vpop.permute.xlu0 %414 }
 0x53e   :  { %422 = vst.msk [vmem:[#allocation3 + $0x8] sm:$0xff] %vm271_vm1, %v415_v35  ;;  %v419_v37 = vpop.permute.xlu1 %418 }
 0x53f   :  { %v421_v39 = vsel %vm271_vm1, %v415_v35, %v419_v37 }
 0x540   :  { %3992 = vmatmul.mubr.msk.f32.vlgmr.msra.gmra.mrb[2].mxu1 %vm280_vm2, %v421_v39 }
 0x541   :  { %4174 = vmatpush1.bf16.msra.mxu1 %v5033_v14  ;;  %776 = vmatprep.mubr.f32.mxu1 %v4887_v0 }
 0x542   :  { %4176 = vmatprep.subr.bf16.mxu1 %v5035_v15 }
 0x545   :  { %4178 = vmatpush1.bf16.msra.mxu1 %v5040_v22 }
 0x546   :  { %4180 = vmatprep.subr.bf16.mxu1 %v5044_v23 }
 0x549   :  { %4182 = vmatpush1.bf16.msra.mxu1 %v5048_v32 }
 0x54a   :  { %4184 = vmatprep.subr.bf16.mxu1 %v5052_v34 }
 0x54d   :  { %4186 = vmatpush1.bf16.msra.mxu1 %v5056_v43 }
 0x54e   :  { %4204 = vmatprep.subr.bf16.mxu1 %v5031_v10 }
 0x613   :  { %v498_v41 = vpop.f32.mrb[2].mxu1 }
 0x614   :  { %v503_v45 = vadd.f32 %v498_v41, %v4999_v31  ;;  %v500_v49 = vpop.f32.mrb[3].mxu1 }
 0x615   :  { %v504_v51 = vadd.f32 %v500_v49, %v5014_v46 }
 0x616   :  { %4536 = vtanh.f32 %v503_v45  ;;  %v3993_v55 = vmul.f32 -1.442695, %v503_v45 }
 0x617   :  { %4538 = vtanh.f32 %v504_v51  ;;  %v3994_v56 = vmul.f32 -1.442695, %v504_v51 }
 0x618   :  { %4540 = vpow2.f32 %v3993_v55 }
 0x619   :  { %4542 = vpow2.f32 %v3994_v56 }
 0x620   :  { %v4537_v53 = vpop.eup %4536 }
 0x621   :  { %v4539_v54 = vpop.eup %4538  ;;  %521 = vrot.lane.b32.xlu0 %v4537_v53, %s4888_s0 }
 0x622   :  { %532 = vrot.lane.b32.xlu1 %v4539_v54, %s4888_s0  ;;  %v4541_v57 = vpop.eup %4540 }
 0x623   :  { %v4543_v58 = vpop.eup %4542  ;;  %v508_v59 = vadd.f32 1.0, %v4541_v57 }
 0x624   :  { %v514_v60 = vadd.f32 1.0, %v4543_v58 }
 0x625   :  { %4544 = vrcp.f32 %v508_v59 }
 0x626   :  { %4546 = vrcp.f32 %v514_v60 }
 0x62f   :  { %v4545_v31 = vpop.eup %4544 }
 0x630   :  { %v4547_v61 = vpop.eup %4546  ;;  %v519_v1 = vmul.f32 %v4545_v31, %v385_v13 }
 0x631   :  { %v530_v3 = vmul.f32 %v4547_v61, %v400_v18 }
 0x693   :  { %v522_v46 = vpop.permute.xlu0 %521 }
 0x694   :  { %v524_v27 = vmul.f32 %v4545_v31, %v522_v46  ;;  %v533_v50 = vpop.permute.xlu1 %532 }
 0x695   :  { %v535_v63 = vmul.f32 %v4547_v61, %v533_v50 }
 0x696   :  { %526 = vrot.lane.b32.xlu0 %v524_v27, %s4888_s0 }
 0x697   :  { %537 = vrot.lane.b32.xlu1 %v535_v63, %s4888_s0 }
 0x708   :  { %v527_v2 = vpop.permute.xlu0 %526 }
 0x709   :  { %v529_v4 = vadd.f32 %v527_v2, %v519_v1  ;;  %v538_v6 = vpop.permute.xlu1 %537 }
 0x70a   :  { %v540_v7 = vadd.f32 %v538_v6, %v530_v3 }
 0x70b   :  { %4548 = vtanh.f32 %v529_v4 }
 0x70c   :  { %4550 = vtanh.f32 %v540_v7 }
 0x715   :  { %v4549_v8 = vpop.eup %4548 }
 0x716   :  { %v4551_v62 = vpop.eup %4550  ;;  %543 = vrot.lane.b32.xlu0 %v4549_v8, %s4888_s0 }
 0x717   :  { %549 = vrot.lane.b32.xlu1 %v4551_v62, %s4888_s0 }
 0x788   :  { %v544_v5 = vpop.permute.xlu0 %543 }
 0x789   :  { %v546_v9 = vmul.f32 %v4545_v31, %v544_v5  ;;  %v550_v11 = vpop.permute.xlu1 %549 }
 0x78a   :  { %v5119_v12 = vmul.f32 %v4547_v61, %v550_v11 }
 0x78b   :  { %554 = vrot.lane.b32.xlu0 %v546_v9, %s4889_s27 }
 0x78c   :  { %558 = vrot.lane.b32.xlu1 %v5119_v12, %s4890_s28 }
 0x7fd   :  { %v555_v13 = vpop.permute.xlu0 %554 }
 0x7fe   :  { %562 = vst.msk [vmem:[#allocation3 + $0x10] sm:$0xff] %vm271_vm1, %v555_v13  ;;  %v559_v16 = vpop.permute.xlu1 %558 }
 0x7ff   :  { %v561_v18 = vsel %vm271_vm1, %v555_v13, %v559_v16 }
 0x800   :  { %3995 = vmatmul.mubr.msk.f32.vlgmr.msra.gmra.mrb[16].mxu0 %vm280_vm2, %v561_v18 }
 0x801   :  { %4190 = vmatpush1.bf16.msra.mxu0 %v5033_v14  ;;  %916 = vmatprep.mubr.f32.mxu0 %v4887_v0 }
 0x802   :  { %4192 = vmatprep.subr.bf16.mxu0 %v5035_v15 }
 0x805   :  { %4194 = vmatpush1.bf16.msra.mxu0 %v5040_v22 }
 0x806   :  { %4196 = vmatprep.subr.bf16.mxu0 %v5044_v23 }
 0x809   :  { %4198 = vmatpush1.bf16.msra.mxu0 %v5048_v32 }
 0x80a   :  { %4200 = vmatprep.subr.bf16.mxu0 %v5052_v34 }
 0x80d   :  { %4202 = vmatpush1.bf16.msra.mxu0 %v5056_v43 }
 0x80e   :  { %4220 = vmatprep.subr.bf16.mxu0 %v5031_v10 }
 0x8d3   :  { %v638_v20 = vpop.f32.mrb[16].mxu0 }
 0x8d4   :  { %v643_v21 = vadd.f32 %v638_v20, %v5003_v36  ;;  %v640_v24 = vpop.f32.mrb[17].mxu0 }
 0x8d5   :  { %v644_v26 = vadd.f32 %v640_v24, %v5010_v42 }
 0x8d6   :  { %4552 = vtanh.f32 %v643_v21  ;;  %v3996_v37 = vmul.f32 -1.442695, %v643_v21 }
 0x8d7   :  { %4554 = vtanh.f32 %v644_v26  ;;  %v3997_v39 = vmul.f32 -1.442695, %v644_v26 }
 0x8d8   :  { %4556 = vpow2.f32 %v3996_v37 }
 0x8d9   :  { %4558 = vpow2.f32 %v3997_v39 }
 0x8e0   :  { %v4553_v28 = vpop.eup %4552 }
 0x8e1   :  { %v4555_v35 = vpop.eup %4554  ;;  %661 = vrot.lane.b32.xlu0 %v4553_v28, %s4888_s0 }
 0x8e2   :  { %672 = vrot.lane.b32.xlu1 %v4555_v35, %s4888_s0  ;;  %v4557_v41 = vpop.eup %4556 }
 0x8e3   :  { %v4559_v10 = vpop.eup %4558  ;;  %v648_v45 = vadd.f32 1.0, %v4557_v41 }
 0x8e4   :  { %v654_v49 = vadd.f32 1.0, %v4559_v10 }
 0x8e5   :  { %4560 = vrcp.f32 %v648_v45 }
 0x8e6   :  { %4562 = vrcp.f32 %v654_v49 }
 0x8ef   :  { %v4561_v36 = vpop.eup %4560 }
 0x8f0   :  { %v4563_v51 = vpop.eup %4562  ;;  %v659_v56 = vmul.f32 %v4561_v36, %v529_v4 }
 0x8f1   :  { %v670_v58 = vmul.f32 %v4563_v51, %v540_v7 }
 0x953   :  { %v662_v42 = vpop.permute.xlu0 %661 }
 0x954   :  { %v664_v53 = vmul.f32 %v4561_v36, %v662_v42  ;;  %v673_v54 = vpop.permute.xlu1 %672 }
 0x955   :  { %v675_v55 = vmul.f32 %v4563_v51, %v673_v54 }
 0x956   :  { %666 = vrot.lane.b32.xlu0 %v664_v53, %s4888_s0 }
 0x957   :  { %677 = vrot.lane.b32.xlu1 %v675_v55, %s4888_s0 }
 0x9c8   :  { %v667_v57 = vpop.permute.xlu0 %666 }
 0x9c9   :  { %v669_v59 = vadd.f32 %v667_v57, %v659_v56  ;;  %v678_v60 = vpop.permute.xlu1 %677 }
 0x9ca   :  { %v680_v31 = vadd.f32 %v678_v60, %v670_v58 }
 0x9cb   :  { %4564 = vtanh.f32 %v669_v59 }
 0x9cc   :  { %4566 = vtanh.f32 %v680_v31 }
 0x9d5   :  { %v4565_v46 = vpop.eup %4564 }
 0x9d6   :  { %v4567_v61 = vpop.eup %4566  ;;  %683 = vrot.lane.b32.xlu0 %v4565_v46, %s4888_s0 }
 0x9d7   :  { %689 = vrot.lane.b32.xlu1 %v4567_v61, %s4888_s0 }
 0xa48   :  { %v684_v27 = vpop.permute.xlu0 %683 }
 0xa49   :  { %v686_v50 = vmul.f32 %v4561_v36, %v684_v27  ;;  %v690_v63 = vpop.permute.xlu1 %689 }
 0xa4a   :  { %v5144_v1 = vmul.f32 %v4563_v51, %v690_v63 }
 0xa4b   :  { %694 = vrot.lane.b32.xlu0 %v686_v50, %s4889_s27 }
 0xa4c   :  { %698 = vrot.lane.b32.xlu1 %v5144_v1, %s4890_s28 }
 0xabd   :  { %v695_v2 = vpop.permute.xlu0 %694 }
 0xabe   :  { %702 = vst.msk [vmem:[#allocation3 + $0x18] sm:$0xff] %vm271_vm1, %v695_v2  ;;  %v699_v3 = vpop.permute.xlu1 %698 }
 0xabf   :  { %v701_v4 = vsel %vm271_vm1, %v695_v2, %v699_v3 }
 0xac0   :  { %3998 = vmatmul.mubr.msk.f32.vlgmr.msra.gmra.mrb[4].mxu1 %vm280_vm2, %v701_v4 }
 0xac1   :  { %4206 = vmatpush1.bf16.msra.mxu1 %v5033_v14  ;;  %1056 = vmatprep.mubr.f32.mxu1 %v4887_v0 }
 0xac2   :  { %4208 = vmatprep.subr.bf16.mxu1 %v5035_v15 }
 0xac5   :  { %4210 = vmatpush1.bf16.msra.mxu1 %v5040_v22 }
 0xac6   :  { %4212 = vmatprep.subr.bf16.mxu1 %v5044_v23 }
 0xac9   :  { %4214 = vmatpush1.bf16.msra.mxu1 %v5048_v32 }
 0xaca   :  { %4216 = vmatprep.subr.bf16.mxu1 %v5052_v34 }
 0xacd   :  { %4218 = vmatpush1.bf16.msra.mxu1 %v5056_v43 }
 0xb93   :  { %v778_v6 = vpop.f32.mrb[4].mxu1 }
 0xb94   :  { %v783_v7 = vadd.f32 %v778_v6, %v5008_v40  ;;  %v780_v8 = vpop.f32.mrb[5].mxu1 }
 0xb95   :  { %v784_v62 = vadd.f32 %v780_v8, %v5005_v38 }
 0xb96   :  { %4568 = vtanh.f32 %v783_v7  ;;  %v3999_v11 = vmul.f32 -1.442695, %v783_v7 }
 0xb97   :  { %4570 = vtanh.f32 %v784_v62  ;;  %v4000_v13 = vmul.f32 -1.442695, %v784_v62 }
 0xb98   :  { %4572 = vpow2.f32 %v3999_v11 }
 0xb99   :  { %4574 = vpow2.f32 %v4000_v13 }
 0xba0   :  { %v4569_v5 = vpop.eup %4568 }
 0xba1   :  { %v4571_v9 = vpop.eup %4570  ;;  %801 = vrot.lane.b32.xlu0 %v4569_v5, %s4888_s0 }
 0xba2   :  { %812 = vrot.lane.b32.xlu1 %v4571_v9, %s4888_s0  ;;  %v4573_v16 = vpop.eup %4572 }
 0xba3   :  { %v4575_v18 = vpop.eup %4574  ;;  %v788_v20 = vadd.f32 1.0, %v4573_v16 }
 0xba4   :  { %v794_v21 = vadd.f32 1.0, %v4575_v18 }
 0xba5   :  { %4576 = vrcp.f32 %v788_v20 }
 0xba6   :  { %4578 = vrcp.f32 %v794_v21 }
 0xbaf   :  { %v4577_v40 = vpop.eup %4576 }
 0xbb0   :  { %v4579_v24 = vpop.eup %4578  ;;  %v799_v37 = vmul.f32 %v4577_v40, %v669_v59 }
 0xbb1   :  { %v810_v41 = vmul.f32 %v4579_v24, %v680_v31 }
 0xc13   :  { %v802_v38 = vpop.permute.xlu0 %801 }
 0xc14   :  { %v804_v26 = vmul.f32 %v4577_v40, %v802_v38  ;;  %v813_v28 = vpop.permute.xlu1 %812 }
 0xc15   :  { %v815_v35 = vmul.f32 %v4579_v24, %v813_v28 }
 0xc16   :  { %806 = vrot.lane.b32.xlu0 %v804_v26, %s4888_s0 }
 0xc17   :  { %817 = vrot.lane.b32.xlu1 %v815_v35, %s4888_s0 }
 0xc88   :  { %v807_v39 = vpop.permute.xlu0 %806 }
 0xc89   :  { %v809_v10 = vadd.f32 %v807_v39, %v799_v37  ;;  %v818_v45 = vpop.permute.xlu1 %817 }
 0xc8a   :  { %v820_v49 = vadd.f32 %v818_v45, %v810_v41 }
 0xc8b   :  { %4580 = vtanh.f32 %v809_v10 }
 0xc8c   :  { %4582 = vtanh.f32 %v820_v49 }
 0xc95   :  { %v4581_v36 = vpop.eup %4580 }
 0xc96   :  { %v4583_v42 = vpop.eup %4582  ;;  %823 = vrot.lane.b32.xlu0 %v4581_v36, %s4888_s0 }
 0xc97   :  { %829 = vrot.lane.b32.xlu1 %v4583_v42, %s4888_s0 }
 0xd08   :  { %v824_v51 = vpop.permute.xlu0 %823 }
 0xd09   :  { %v826_v53 = vmul.f32 %v4577_v40, %v824_v51  ;;  %v830_v54 = vpop.permute.xlu1 %829 }
 0xd0a   :  { %v5168_v55 = vmul.f32 %v4579_v24, %v830_v54 }
 0xd0b   :  { %834 = vrot.lane.b32.xlu0 %v826_v53, %s4889_s27 }
 0xd0c   :  { %838 = vrot.lane.b32.xlu1 %v5168_v55, %s4890_s28 }
 0xd7d   :  { %v835_v56 = vpop.permute.xlu0 %834 }
 0xd7e   :  { %842 = vst.msk [vmem:[#allocation3 + $0x20] sm:$0xff] %vm271_vm1, %v835_v56  ;;  %v839_v57 = vpop.permute.xlu1 %838 }
 0xd7f   :  { %v841_v58 = vsel %vm271_vm1, %v835_v56, %v839_v57 }
 0xd80   :  { %4001 = vmatmul.mubr.msk.f32.vlgmr.msra.gmra.mrb[18].mxu0 %vm280_vm2, %v841_v58 }
 0xd81   :  { %4222 = vmatpush1.bf16.msra.mxu0 %v5033_v14  ;;  %1196 = vmatprep.mubr.f32.mxu0 %v4887_v0 }
 0xd82   :  { %4224 = vmatprep.subr.bf16.mxu0 %v5035_v15 }
 0xd85   :  { %4226 = vmatpush1.bf16.msra.mxu0 %v5040_v22 }
 0xd86   :  { %4228 = vmatprep.subr.bf16.mxu0 %v5044_v23 }
 0xd89   :  { %4230 = vmatpush1.bf16.msra.mxu0 %v5048_v32 }
 0xd8a   :  { %4232 = vmatprep.subr.bf16.mxu0 %v5052_v34 }
 0xd8d   :  { %4234 = vmatpush1.bf16.msra.mxu0 %v5056_v43 }
 0xe53   :  { %v918_v59 = vpop.f32.mrb[18].mxu0 }
 0xe54   :  { %v923_v60 = vadd.f32 %v918_v59, %v5012_v44  ;;  %v920_v31 = vpop.f32.mrb[19].mxu0 }
 0xe55   :  { %v924_v14 = vadd.f32 %v920_v31, %v5001_v33 }
 0xe56   :  { %4584 = vtanh.f32 %v923_v60  ;;  %v4002_v22 = vmul.f32 -1.442695, %v923_v60 }
 0xe57   :  { %4586 = vtanh.f32 %v924_v14  ;;  %v4003_v23 = vmul.f32 -1.442695, %v924_v14 }
 0xe58   :  { %4588 = vpow2.f32 %v4002_v22 }
 0xe59   :  { %4590 = vpow2.f32 %v4003_v23 }
 0xe60   :  { %v4585_v46 = vpop.eup %4584 }
 0xe61   :  { %v4587_v15 = vpop.eup %4586  ;;  %941 = vrot.lane.b32.xlu0 %v4585_v46, %s4888_s0 }
 0xe62   :  { %952 = vrot.lane.b32.xlu1 %v4587_v15, %s4888_s0  ;;  %v4589_v32 = vpop.eup %4588 }
 0xe63   :  { %v4591_v34 = vpop.eup %4590  ;;  %v928_v43 = vadd.f32 1.0, %v4589_v32 }
 0xe64   :  { %v934_v61 = vadd.f32 1.0, %v4591_v34 }
 0xe65   :  { %4592 = vrcp.f32 %v928_v43 }
 0xe66   :  { %4594 = vrcp.f32 %v934_v61 }
 0xe6f   :  { %v4593_v44 = vpop.eup %4592 }
 0xe70   :  { %v4595_v27 = vpop.eup %4594  ;;  %v939_v3 = vmul.f32 %v4593_v44, %v809_v10 }
 0xe71   :  { %v950_v6 = vmul.f32 %v4595_v27, %v820_v49 }
 0xed3   :  { %v942_v33 = vpop.permute.xlu0 %941 }
 0xed4   :  { %v944_v50 = vmul.f32 %v4593_v44, %v942_v33  ;;  %v953_v63 = vpop.permute.xlu1 %952 }
 0xed5   :  { %v955_v2 = vmul.f32 %v4595_v27, %v953_v63 }
 0xed6   :  { %946 = vrot.lane.b32.xlu0 %v944_v50, %s4888_s0 }
 0xed7   :  { %957 = vrot.lane.b32.xlu1 %v955_v2, %s4888_s0 }
 0xf48   :  { %v947_v4 = vpop.permute.xlu0 %946 }
 0xf49   :  { %v949_v7 = vadd.f32 %v947_v4, %v939_v3  ;;  %v958_v8 = vpop.permute.xlu1 %957 }
 0xf4a   :  { %v960_v62 = vadd.f32 %v958_v8, %v950_v6 }
 0xf4b   :  { %4596 = vtanh.f32 %v949_v7 }
 0xf4c   :  { %4598 = vtanh.f32 %v960_v62 }
 0xf55   :  { %v4597_v5 = vpop.eup %4596 }
 0xf56   :  { %v4599_v9 = vpop.eup %4598  ;;  %963 = vrot.lane.b32.xlu0 %v4597_v5, %s4888_s0 }
 0xf57   :  { %969 = vrot.lane.b32.xlu1 %v4599_v9, %s4888_s0 }
 0xfc8   :  { %v964_v11 = vpop.permute.xlu0 %963 }
 0xfc9   :  { %v966_v13 = vmul.f32 %v4593_v44, %v964_v11  ;;  %v970_v16 = vpop.permute.xlu1 %969 }
 0xfca   :  { %v5192_v18 = vmul.f32 %v4595_v27, %v970_v16 }
 0xfcb   :  { %974 = vrot.lane.b32.xlu0 %v966_v13, %s4889_s27 }
 0xfcc   :  { %978 = vrot.lane.b32.xlu1 %v5192_v18, %s4890_s28 }
0x103d   :  { %v975_v20 = vpop.permute.xlu0 %974 }
0x103e   :  { %982 = vst.msk [vmem:[#allocation3 + $0x28] sm:$0xff] %vm271_vm1, %v975_v20  ;;  %v979_v21 = vpop.permute.xlu1 %978 }
0x103f   :  { %v981_v40 = vsel %vm271_vm1, %v975_v20, %v979_v21 }
0x1040   :  { %4004 = vmatmul.mubr.msk.f32.vlgmr.msra.gmra.mrb[6].mxu1 %vm280_vm2, %v981_v40 }
0x1041   :  { %1384 = vmatprep.mubr.f32.mxu1 %v4887_v0 }
0x1113   :  { %v1058_v38 = vpop.f32.mrb[6].mxu1 }
0x1114   :  { %v1063_v24 = vadd.f32 %v1058_v38, %v5016_v48  ;;  %v1060_v26 = vpop.f32.mrb[7].mxu1 }
0x1115   :  { %v1064_v28 = vadd.f32 %v1060_v26, %v4997_v29 }
0x1116   :  { %4600 = vtanh.f32 %v1063_v24  ;;  %v4005_v39 = vmul.f32 -1.442695, %v1063_v24 }
0x1117   :  { %4602 = vtanh.f32 %v1064_v28  ;;  %v4006_v41 = vmul.f32 -1.442695, %v1064_v28 }
0x1118   :  { %4604 = vpow2.f32 %v4005_v39 }
0x1119   :  { %4606 = vpow2.f32 %v4006_v41  ;;  %v1272_v41 = vld [vmem:[#allocation5 + $0x1c0] sm:$0xff] }
0x1120   :  { %v4601_v35 = vpop.eup %4600 }
0x1121   :  { %v4603_v37 = vpop.eup %4602  ;;  %1081 = vrot.lane.b32.xlu0 %v4601_v35, %s4888_s0  ;;  %v1273_v35 = vld [vmem:[#allocation5 + $0x1c8] sm:$0xff] }
0x1122   :  { %1092 = vrot.lane.b32.xlu1 %v4603_v37, %s4888_s0  ;;  %v4605_v10 = vpop.eup %4604  ;;  %v1275_v37 = vld [vmem:[#allocation5 + $0x1d8] sm:$0xff] }
0x1123   :  { %v4607_v45 = vpop.eup %4606  ;;  %v1068_v49 = vadd.f32 1.0, %v4605_v10  ;;  %v4235_v39 = vpack.c.bf16 %v1275_v37, %v1273_v35  ;;  %v1274_v10 = vld [vmem:[#allocation5 + $0x1d0] sm:$0xff] }
0x1124   :  { %v1074_v36 = vadd.f32 1.0, %v4607_v45  ;;  %v4237_v45 = vpack.c.bf16 %v1274_v10, %v1272_v41 }
0x1125   :  { %4608 = vrcp.f32 %v1068_v49  ;;  %4236 = vmatprep.subr.bf16.mxu1 %v4235_v39  ;;  %v1277_v49 = vld [vmem:[#allocation5 + $0x1e8] sm:$0xff] }
0x1126   :  { %4610 = vrcp.f32 %v1074_v36  ;;  %v1279_v36 = vld [vmem:[#allocation5 + $0x1f8] sm:$0xff]  ;;  %4238 = vmatpush1.bf16.msra.mxu1 %v4237_v45 }
0x112f   :  { %v4609_v48 = vpop.eup %4608 }
0x1130   :  { %v4611_v42 = vpop.eup %4610  ;;  %v1079_v56 = vmul.f32 %v4609_v48, %v949_v7 }
0x1131   :  { %v1090_v58 = vmul.f32 %v4611_v42, %v960_v62 }
0x1193   :  { %v1082_v29 = vpop.permute.xlu0 %1081 }
0x1194   :  { %v1084_v51 = vmul.f32 %v4609_v48, %v1082_v29  ;;  %v1093_v53 = vpop.permute.xlu1 %1092  ;;  %v1276_v29 = vld [vmem:[#allocation5 + $0x1e0] sm:$0xff] }
0x1195   :  { %v1095_v54 = vmul.f32 %v4611_v42, %v1093_v53  ;;  %v1265_v53 = vld [vmem:[#allocation5 + $0x188] sm:$0xff] }
0x1196   :  { %1086 = vrot.lane.b32.xlu0 %v1084_v51, %s4888_s0 }
0x1197   :  { %1097 = vrot.lane.b32.xlu1 %v1095_v54, %s4888_s0 }
0x1208   :  { %v1087_v57 = vpop.permute.xlu0 %1086 }
0x1209   :  { %v1089_v59 = vadd.f32 %v1087_v57, %v1079_v56  ;;  %v1098_v60 = vpop.permute.xlu1 %1097 }
0x120a   :  { %v1100_v31 = vadd.f32 %v1098_v60, %v1090_v58 }
0x120b   :  { %4612 = vtanh.f32 %v1089_v59 }
0x120c   :  { %4614 = vtanh.f32 %v1100_v31 }
0x1215   :  { %v4613_v14 = vpop.eup %4612 }
0x1216   :  { %v4615_v46 = vpop.eup %4614  ;;  %1103 = vrot.lane.b32.xlu0 %v4613_v14, %s4888_s0 }
0x1217   :  { %1109 = vrot.lane.b32.xlu1 %v4615_v46, %s4888_s0  ;;  %v1266_v46 = vld [vmem:[#allocation5 + $0x190] sm:$0xff] }
0x1288   :  { %v1104_v15 = vpop.permute.xlu0 %1103 }
0x1289   :  { %v1106_v22 = vmul.f32 %v4609_v48, %v1104_v15  ;;  %v1110_v23 = vpop.permute.xlu1 %1109  ;;  %v4239_v48 = vpack.c.bf16 %v1279_v36, %v1277_v49 }
0x128a   :  { %v1112_v32 = vmul.f32 %v4611_v42, %v1110_v23  ;;  %v1278_v42 = vld [vmem:[#allocation5 + $0x1f0] sm:$0xff]  ;;  %v1271_v23 = vld [vmem:[#allocation5 + $0x1b8] sm:$0xff] }
0x128b   :  { %1114 = vrot.lane.b32.xlu0 %v1106_v22, %s4889_s27  ;;  %4240 = vmatprep.subr.bf16.mxu1 %v4239_v48  ;;  %v4241_v51 = vpack.c.bf16 %v1278_v42, %v1276_v29  ;;  %v1269_v22 = vld [vmem:[#allocation5 + $0x1a8] sm:$0xff] }
0x128c   :  { %1118 = vrot.lane.b32.xlu1 %v1112_v32, %s4890_s28 }
0x128d   :  { %4242 = vmatpush1.bf16.msra.mxu1 %v4241_v51 }
0x12fd   :  { %v1115_v34 = vpop.permute.xlu0 %1114 }
0x12fe   :  { %1122 = vst.msk [vmem:[#allocation3 + $0x30] sm:$0xff] %vm271_vm1, %v1115_v34  ;;  %v1119_v43 = vpop.permute.xlu1 %1118 }
0x12ff   :  { %v1121_v61 = vsel %vm271_vm1, %v1115_v34, %v1119_v43  ;;  %v1268_v34 = vld [vmem:[#allocation5 + $0x1a0] sm:$0xff]  ;;  %v1270_v43 = vld [vmem:[#allocation5 + $0x1b0] sm:$0xff] }
0x1300   :  { %4007 = vmatmul.mubr.msk.f32.vlgmr.msra.gmra.mrb[20].mxu0 %vm280_vm2, %v1121_v61 }
0x1301   :  { %1753 = vmatprep.mubr.f32.mxu0 %v4887_v0 }
0x13d3   :  { %v1198_v44 = vpop.f32.mrb[20].mxu0 }
0x13d4   :  { %v1203_v33 = vadd.f32 %v1198_v44, %v5020_v52  ;;  %v1200_v27 = vpop.f32.mrb[21].mxu0  ;;  %v4249_v44 = vpack.c.bf16 %v1270_v43, %v1268_v34 }
0x13d5   :  { %v1204_v50 = vadd.f32 %v1200_v27, %v4993_v25 }
0x13d6   :  { %4616 = vtanh.f32 %v1203_v33  ;;  %v4008_v3 = vmul.f32 -1.442695, %v1203_v33 }
0x13d7   :  { %4618 = vtanh.f32 %v1204_v50  ;;  %v4009_v4 = vmul.f32 -1.442695, %v1204_v50 }
0x13d8   :  { %4620 = vpow2.f32 %v4008_v3 }
0x13d9   :  { %4622 = vpow2.f32 %v4009_v4 }
0x13e0   :  { %v4617_v63 = vpop.eup %4616 }
0x13e1   :  { %v4619_v2 = vpop.eup %4618  ;;  %1221 = vrot.lane.b32.xlu1 %v4617_v63, %s4888_s0 }
0x13e2   :  { %1232 = vrot.lane.b32.xlu0 %v4619_v2, %s4888_s0  ;;  %v4621_v6 = vpop.eup %4620 }
0x13e3   :  { %v4623_v7 = vpop.eup %4622  ;;  %v1208_v8 = vadd.f32 1.0, %v4621_v6 }
0x13e4   :  { %v1214_v62 = vadd.f32 1.0, %v4623_v7 }
0x13e5   :  { %4624 = vrcp.f32 %v1208_v8  ;;  %v1280_v8 = vld [vmem:[#allocation3] sm:$0xff] }
0x13e6   :  { %4626 = vrcp.f32 %v1214_v62  ;;  %v1281_v62 = vld [vmem:[#allocation3 + $0x8] sm:$0xff] }
0x13ef   :  { %v4625_v52 = vpop.eup %4624 }
0x13f0   :  { %v4627_v5 = vpop.eup %4626  ;;  %v1219_v16 = vmul.f32 %v4625_v52, %v1089_v59 }
0x13f1   :  { %v1230_v21 = vmul.f32 %v4627_v5, %v1100_v31 }
0x1453   :  { %v1222_v25 = vpop.permute.xlu1 %1221 }
0x1454   :  { %v1224_v9 = vmul.f32 %v4625_v52, %v1222_v25  ;;  %v1233_v11 = vpop.permute.xlu0 %1232  ;;  %v1283_v25 = vld [vmem:[#allocation3 + $0x18] sm:$0xff] }
0x1455   :  { %v1235_v13 = vmul.f32 %v4627_v5, %v1233_v11  ;;  %v1286_v11 = vld [vmem:[#allocation3 + $0x30] sm:$0xff] }
0x1456   :  { %1226 = vrot.lane.b32.xlu1 %v1224_v9, %s4888_s0  ;;  %v1285_v9 = vld [vmem:[#allocation3 + $0x28] sm:$0xff] }
0x1457   :  { %1237 = vrot.lane.b32.xlu0 %v1235_v13, %s4888_s0 }
0x14c8   :  { %v1227_v20 = vpop.permute.xlu1 %1226 }
0x14c9   :  { %v1229_v40 = vadd.f32 %v1227_v20, %v1219_v16  ;;  %v1238_v38 = vpop.permute.xlu0 %1237  ;;  %v4026_v16 = vld [vmem:[%s5788_s3 + $0x2] sm:$0x3] }
0x14ca   :  { %v1240_v24 = vadd.f32 %v1238_v38, %v1230_v21  ;;  %v1576_v20 = vrot.slane %v4026_v16, %v4984_v17  ;;  %v1580_v21 = vrot.slane %v4026_v16, %v4989_v19  ;;  %v1622_v16 = vld [vmem:[#allocation5 + $0xb0] sm:$0xff] }
0x14cb   :  { %4628 = vtanh.f32 %v1229_v40 }
0x14cc   :  { %4630 = vtanh.f32 %v1240_v24 }
0x14d5   :  { %v4629_v26 = vpop.eup %4628 }
0x14d6   :  { %v4631_v28 = vpop.eup %4630  ;;  %1243 = vrot.lane.b32.xlu1 %v4629_v26, %s4888_s0 }
0x14d7   :  { %1249 = vrot.lane.b32.xlu0 %v4631_v28, %s4888_s0 }
0x14da   :  { %1123 = vrot.lane.b32.xlu1 %v1112_v32, %s4889_s27  ;;  %v4247_v32 = vpack.c.bf16 %v1271_v23, %v1269_v22 }
0x14de   :  { %843 = vrot.lane.b32.xlu1 %v5168_v55, %s4889_s27  ;;  %v1267_v55 = vld [vmem:[#allocation5 + $0x198] sm:$0xff] }
0x14df   :  { %v4243_v54 = vpack.c.bf16 %v1267_v55, %v1265_v53 }
0x14e1   :  { %4244 = vmatprep.subr.bf16.mxu1 %v4243_v54 }
0x14e2   :  { %563 = vrot.lane.b32.xlu1 %v5119_v12, %s4889_s27 }
0x14e6   :  { %274 = vrot.lane.b32.xlu1 %v5066_v47, %s4889_s27 }
0x1548   :  { %v1244_v12 = vpop.permute.xlu1 %1243 }
0x1549   :  { %v1250_v56 = vpop.permute.xlu0 %1249  ;;  %v1246_v31 = vmul.f32 %v4625_v52, %v1244_v12  ;;  %v1282_v52 = vld [vmem:[#allocation3 + $0x10] sm:$0xff] }
0x154a   :  { %v1252_v57 = vmul.f32 %v4627_v5, %v1250_v56  ;;  %v1284_v5 = vld [vmem:[#allocation3 + $0x20] sm:$0xff] }
0x154c   :  { %v1124_v47 = vpop.permute.xlu1 %1123  ;;  %1259 = vrot.lane.b32.xlu0 %v1252_v57, %s4889_s27 }
0x154d   :  { %1126 = vst.msk [vmem:[#allocation4 + $0x8] sm:$0xff] %vm271_vm1, %v1124_v47 }
0x1550   :  { %v844_v58 = vpop.permute.xlu1 %843  ;;  %983 = vrot.lane.b32.xlu0 %v5192_v18, %s4889_s27  ;;  %v1264_v18 = vld [vmem:[#allocation5 + $0x180] sm:$0xff] }
0x1551   :  { %846 = vst.msk [vmem:[#allocation4 + $0x18] sm:$0xff] %vm271_vm1, %v844_v58 }
0x1554   :  { %v564_v59 = vpop.permute.xlu1 %563  ;;  %703 = vrot.lane.b32.xlu0 %v5144_v1, %s4889_s27  ;;  %v4245_v1 = vpack.c.bf16 %v1266_v46, %v1264_v18  ;;  %v1289_v27 = vld [vmem:[#allocation4 + $0x8] sm:$0xff] }
0x1555   :  { %566 = vst.msk [vmem:[#allocation4 + $0x28] sm:$0xff] %vm271_vm1, %v564_v59 }
0x1558   :  { %v275_v60 = vpop.permute.xlu1 %274  ;;  %423 = vrot.lane.b32.xlu0 %v5094_v30, %s4889_s27  ;;  %v1291_v2 = vld [vmem:[#allocation4 + $0x18] sm:$0xff] }
0x1559   :  { %277 = vst.msk [vmem:[#allocation4 + $0x38] sm:$0xff] %vm271_vm1, %v275_v60 }
0x155c   :  { %1254 = vrot.lane.b32.xlu0 %v1246_v31, %s4889_s27  ;;  %v1293_v4 = vld [vmem:[#allocation4 + $0x28] sm:$0xff] }
0x1560   :  { %v1295_v7 = vld [vmem:[#allocation4 + $0x38] sm:$0xff] }
0x15be   :  { %v1260_v14 = vpop.permute.xlu0 %1259 }
0x15bf   :  { %1262 = vst.msk [vmem:[#allocation4] sm:$0xff] %vm271_vm1, %v1260_v14 }
0x15c2   :  { %v984_v15 = vpop.permute.xlu0 %983 }
0x15c3   :  { %986 = vst.msk [vmem:[#allocation4 + $0x10] sm:$0xff] %vm271_vm1, %v984_v15 }
0x15c6   :  { %v704_v30 = vpop.permute.xlu0 %703  ;;  %v1288_v61 = vld [vmem:[#allocation4] sm:$0xff] }
0x15c7   :  { %706 = vst.msk [vmem:[#allocation4 + $0x20] sm:$0xff] %vm271_vm1, %v704_v30  ;;  %4010 = vmatmul.mubr.msk.f32.vlgmr.msra.gmra.mrb[8].mxu1 %vm271_vm1, %v1288_v61 }
0x15c8   :  { %4246 = vmatpush1.bf16.msra.mxu1 %v4245_v1  ;;  %1390 = vmatprep.mubr.f32.mxu1 %v4887_v0 }
0x15c9   :  { %4248 = vmatprep.subr.bf16.mxu1 %v4247_v32 }
0x15ca   :  { %v424_v33 = vpop.permute.xlu0 %423  ;;  %v1290_v63 = vld [vmem:[#allocation4 + $0x10] sm:$0xff] }
0x15cb   :  { %426 = vst.msk [vmem:[#allocation4 + $0x30] sm:$0xff] %vm271_vm1, %v424_v33  ;;  %4011 = vmatmul.mubr.msk.f32.gmra.mrb[10].mxu1 %vm271_vm1, %v1289_v27 }
0x15cc   :  { %1396 = vmatprep.mubr.f32.mxu1 %v4887_v0  ;;  %4250 = vmatpush1.bf16.msra.mxu1 %v4249_v44 }
0x15ce   :  { %v1255_v50 = vpop.permute.xlu0 %1254  ;;  %v1292_v3 = vld [vmem:[#allocation4 + $0x20] sm:$0xff] }
0x15cf   :  { %1257 = vst.msk [vmem:[#allocation3 + $0x38] sm:$0xff] %vm271_vm1, %v1255_v50  ;;  %4012 = vmatmul.mubr.msk.f32.gmra.mrb[12].mxu1 %vm271_vm1, %v1290_v63 }
0x15d0   :  { %1402 = vmatprep.mubr.f32.mxu1 %v4887_v0 }
0x15d2   :  { %v1294_v6 = vld [vmem:[#allocation4 + $0x30] sm:$0xff] }
0x15d3   :  { %4013 = vmatmul.mubr.msk.f32.gmra.mrb[14].mxu1 %vm271_vm1, %v1291_v2 }
0x15d4   :  { %1408 = vmatprep.mubr.f32.mxu1 %v4887_v0 }
0x15d6   :  { %v1287_v13 = vld [vmem:[#allocation3 + $0x38] sm:$0xff] }
0x15d7   :  { %4014 = vmatmul.mubr.msk.f32.gmra.mrb[16].mxu1 %vm271_vm1, %v1292_v3 }
0x15d8   :  { %1414 = vmatprep.mubr.f32.mxu1 %v4887_v0 }
0x15db   :  { %4015 = vmatmul.mubr.msk.f32.gmra.mrb[18].mxu1 %vm271_vm1, %v1293_v4 }
0x15dc   :  { %1420 = vmatprep.mubr.f32.mxu1 %v4887_v0 }
0x15df   :  { %4016 = vmatmul.mubr.msk.f32.gmra.mrb[20].mxu1 %vm271_vm1, %v1294_v6  ;;  %v1617_v6 = vld [vmem:[#allocation5 + $0x88] sm:$0xff] }
0x15e0   :  { %1426 = vmatprep.mubr.f32.mxu1 %v4887_v0 }
0x15e3   :  { %4017 = vmatmul.mubr.msk.f32.gmra.mrb[22].mxu1 %vm271_vm1, %v1295_v7  ;;  %v1619_v7 = vld [vmem:[#allocation5 + $0x98] sm:$0xff] }
0x15e4   :  { %1521 = vmatprep.mubr.f32.mxu1 %v4887_v0 }
0x15e7   :  { %4018 = vmatmul.mubr.msk.f32.vlgmr.msra.gmra.mrb[8].mxu1 %vm271_vm1, %v1280_v8  ;;  %v1616_v8 = vld [vmem:[#allocation5 + $0x80] sm:$0xff] }
0x15e8   :  { %1527 = vmatprep.mubr.f32.mxu1 %v4887_v0 }
0x15eb   :  { %4019 = vmatmul.mubr.msk.f32.gmra.mrb[10].mxu1 %vm271_vm1, %v1281_v62  ;;  %v5322_v62 = vpack.c.bf16 %v1619_v7, %v1617_v6 }
0x15ec   :  { %1533 = vmatprep.mubr.f32.mxu1 %v4887_v0 }
0x15ed   :  { %4252 = vmatprep.subr.bf16.mxu0 %v5322_v62  ;;  %4316 = vmatprep.subr.bf16.mxu1 %v5322_v62 }
0x15ef   :  { %4020 = vmatmul.mubr.msk.f32.gmra.mrb[12].mxu1 %vm271_vm1, %v1282_v52  ;;  %v1618_v52 = vld [vmem:[#allocation5 + $0x90] sm:$0xff] }
0x15f0   :  { %1539 = vmatprep.mubr.f32.mxu1 %v4887_v0 }
0x15f3   :  { %4021 = vmatmul.mubr.msk.f32.gmra.mrb[14].mxu1 %vm271_vm1, %v1283_v25  ;;  %v1621_v25 = vld [vmem:[#allocation5 + $0xa8] sm:$0xff] }
0x15f4   :  { %1545 = vmatprep.mubr.f32.mxu1 %v4887_v0 }
0x15f7   :  { %4022 = vmatmul.mubr.msk.f32.gmra.mrb[16].mxu1 %vm271_vm1, %v1284_v5  ;;  %v1623_v5 = vld [vmem:[#allocation5 + $0xb8] sm:$0xff] }
0x15f8   :  { %1551 = vmatprep.mubr.f32.mxu1 %v4887_v0 }
0x15fb   :  { %4023 = vmatmul.mubr.msk.f32.gmra.mrb[18].mxu1 %vm271_vm1, %v1285_v9  ;;  %v5324_v9 = vpack.c.bf16 %v1618_v52, %v1616_v8 }
0x15fc   :  { %1557 = vmatprep.mubr.f32.mxu1 %v4887_v0 }
0x15fd   :  { %4254 = vmatpush1.bf16.msra.mxu0 %v5324_v9  ;;  %4318 = vmatpush1.bf16.msra.mxu1 %v5324_v9 }
0x15ff   :  { %4024 = vmatmul.mubr.msk.f32.gmra.mrb[20].mxu1 %vm271_vm1, %v1286_v11  ;;  %v5326_v11 = vpack.c.bf16 %v1623_v5, %v1621_v25 }
0x1600   :  { %1563 = vmatprep.mubr.f32.mxu1 %v4887_v0 }
0x1601   :  { %4256 = vmatprep.subr.bf16.mxu0 %v5326_v11  ;;  %4320 = vmatprep.subr.bf16.mxu1 %v5326_v11 }
0x1603   :  { %4025 = vmatmul.mubr.msk.f32.gmra.mrb[22].mxu1 %vm271_vm1, %v1287_v13  ;;  %v1620_v13 = vld [vmem:[#allocation5 + $0xa0] sm:$0xff] }
0x1604   :  { %2321 = vmatprep.mubr.f32.mxu1 %v4887_v0 }
0x16ba   :  { %v1523_v40 = vpop.f32.mrb[8].mxu1 }
0x16bb   :  { %v1583_v38 = vadd.f32 %v1576_v20, %v1523_v40  ;;  %v1525_v24 = vpop.f32.mrb[9].mxu1  ;;  %v5331_v40 = vpack.c.bf16 %v1622_v16, %v1620_v13 }
0x16bc   :  { %v5284_v26 = vadd.f32 %v1580_v21, %v1525_v24  ;;  %v1624_v24 = vld [vmem:[#allocation5 + $0xc0] sm:$0xff] }
0x16bd   :  { %4632 = vtanh.f32 %v1583_v38  ;;  %v4027_v1 = vmul.f32 -1.442695, %v1583_v38  ;;  %4258 = vmatpush1.bf16.msra.mxu0 %v5331_v40  ;;  %4322 = vmatpush1.bf16.msra.mxu1 %v5331_v40 }
0x16be   :  { %v1529_v28 = vpop.f32.mrb[10].mxu1 }
0x16bf   :  { %v5286_v35 = vadd.f32 %v1576_v20, %v1529_v28  ;;  %v1531_v37 = vpop.f32.mrb[11].mxu1  ;;  %v1626_v28 = vld [vmem:[#allocation5 + $0xd0] sm:$0xff] }
0x16c0   :  { %v5288_v39 = vadd.f32 %v1580_v21, %v1531_v37  ;;  %v1629_v37 = vld [vmem:[#allocation5 + $0xe8] sm:$0xff] }
0x16c2   :  { %v1535_v41 = vpop.f32.mrb[12].mxu1 }
0x16c3   :  { %v5290_v10 = vadd.f32 %v1576_v20, %v1535_v41  ;;  %v1537_v45 = vpop.f32.mrb[13].mxu1  ;;  %v1631_v41 = vld [vmem:[#allocation5 + $0xf8] sm:$0xff] }
0x16c4   :  { %v5292_v49 = vadd.f32 %v1580_v21, %v1537_v45  ;;  %v5339_v45 = vpack.c.bf16 %v1626_v28, %v1624_v24 }
0x16c6   :  { %v1541_v36 = vpop.f32.mrb[14].mxu1 }
0x16c7   :  { %v4633_v48 = vpop.eup %4632  ;;  %v5294_v29 = vadd.f32 %v1576_v20, %v1541_v36  ;;  %v1543_v42 = vpop.f32.mrb[15].mxu1  ;;  %v5343_v36 = vpack.c.bf16 %v1631_v41, %v1629_v37 }
0x16c8   :  { %v5296_v51 = vadd.f32 %v1580_v21, %v1543_v42  ;;  %1649 = vrot.lane.b32.xlu1 %v4633_v48, %s4888_s0  ;;  %v1628_v48 = vld [vmem:[#allocation5 + $0xe0] sm:$0xff]  ;;  %v1630_v42 = vld [vmem:[#allocation5 + $0xf0] sm:$0xff] }
0x16ca   :  { %v1547_v53 = vpop.f32.mrb[16].mxu1 }
0x16cb   :  { %v5299_v55 = vadd.f32 %v1576_v20, %v1547_v53  ;;  %v1549_v54 = vpop.f32.mrb[17].mxu1 }
0x16cc   :  { %v5301_v12 = vadd.f32 %v1580_v21, %v1549_v54 }
0x16ce   :  { %v1553_v56 = vpop.f32.mrb[18].mxu1 }
0x16cf   :  { %v5303_v57 = vadd.f32 %v1576_v20, %v1553_v56  ;;  %v1555_v47 = vpop.f32.mrb[19].mxu1  ;;  %v5347_v56 = vpack.c.bf16 %v1630_v42, %v1628_v48 }
0x16d0   :  { %v5305_v58 = vadd.f32 %v1580_v21, %v1555_v47 }
0x16d2   :  { %v1559_v59 = vpop.f32.mrb[20].mxu1 }
0x16d3   :  { %v5307_v60 = vadd.f32 %v1576_v20, %v1559_v59  ;;  %v1561_v31 = vpop.f32.mrb[21].mxu1 }
0x16d4   :  { %v5309_v14 = vadd.f32 %v1580_v21, %v1561_v31 }
0x16d6   :  { %v1565_v18 = vpop.f32.mrb[22].mxu1 }
0x16d7   :  { %v5311_v46 = vadd.f32 %v1576_v20, %v1565_v18  ;;  %v1567_v15 = vpop.f32.mrb[23].mxu1  ;;  %v1625_v20 = vld [vmem:[#allocation5 + $0xc8] sm:$0xff] }
0x16d8   :  { %v1598_v22 = vadd.f32 %v1580_v21, %v1567_v15  ;;  %v1627_v21 = vld [vmem:[#allocation5 + $0xd8] sm:$0xff] }
0x16d9   :  { %v5335_v38 = vpack.c.bf16 %v1627_v21, %v1625_v20 }
0x16da   :  { %4634 = vtanh.f32 %v1598_v22  ;;  %v4028_v43 = vmul.f32 -1.442695, %v1598_v22 }
0x16db   :  { %4636 = vpow2.f32 %v4027_v1  ;;  %4260 = vmatprep.subr.bf16.mxu0 %v5335_v38  ;;  %4324 = vmatprep.subr.bf16.mxu1 %v5335_v38 }
0x16dc   :  { %4262 = vmatpush1.bf16.msra.mxu0 %v5339_v45  ;;  %4326 = vmatpush1.bf16.msra.mxu1 %v5339_v45 }
0x16dd   :  { %4264 = vmatprep.subr.bf16.mxu0 %v5343_v36  ;;  %4328 = vmatprep.subr.bf16.mxu1 %v5343_v36 }
0x16e0   :  { %4266 = vmatpush1.bf16.msra.mxu0 %v5347_v56  ;;  %4330 = vmatpush1.bf16.msra.mxu1 %v5347_v56 }
0x16e1   :  { %4268 = vmatprep.subr.bf16.mxu0 %v5322_v62  ;;  %4348 = vmatprep.subr.bf16.mxu1 %v5322_v62 }
0x16e4   :  { %v4635_v23 = vpop.eup %4634 }
0x16e5   :  { %1654 = vrot.lane.b32.xlu0 %v4635_v23, %s4888_s0  ;;  %v4637_v32 = vpop.eup %4636 }
0x16e6   :  { %v1637_v34 = vadd.f32 1.0, %v4637_v32 }
0x16e8   :  { %4638 = vrcp.f32 %v1637_v34 }
0x16e9   :  { %4640 = vpow2.f32 %v4028_v43 }
0x16f2   :  { %v4639_v30 = vpop.eup %4638 }
0x16f3   :  { %v4641_v33 = vpop.eup %4640 }
0x16f4   :  { %v1643_v50 = vadd.f32 1.0, %v4641_v33 }
0x173a   :  { %v1650_v61 = vpop.permute.xlu1 %1649 }
0x173b   :  { %v5314_v44 = vmul.f32 %v4639_v30, %v1650_v61 }
0x173d   :  { %4642 = vtanh.f32 %v5314_v44 }
0x173e   :  { %4644 = vrcp.f32 %v1643_v50 }
0x1747   :  { %v4643_v27 = vpop.eup %4642 }
0x1748   :  { %1660 = vrot.lane.b32.xlu1 %v4643_v27, %s4889_s27  ;;  %v4645_v63 = vpop.eup %4644 }
0x1757   :  { %v1655_v2 = vpop.permute.xlu0 %1654 }
0x1758   :  { %v5318_v3 = vmul.f32 %v4645_v63, %v1655_v2 }
0x175a   :  { %4646 = vtanh.f32 %v5318_v3 }
0x1764   :  { %v4647_v4 = vpop.eup %4646 }
0x1765   :  { %1666 = vrot.lane.b32.xlu0 %v4647_v4, %s4889_s27 }
0x17ba   :  { %v1661_v53 = vpop.permute.xlu1 %1660 }
0x17bb   :  { %v1663_v54 = vmul.f32 %v4639_v30, %v1661_v53 }
0x17bd   :  { %1671 = vrot.lane.b32.xlu1 %v1663_v54, %s4889_s27 }
0x17d7   :  { %v1667_v47 = vpop.permute.xlu0 %1666 }
0x17d8   :  { %v5357_v59 = vmul.f32 %v4645_v63, %v1667_v47 }
0x17da   :  { %1675 = vrot.lane.b32.xlu0 %v5357_v59, %s4890_s28 }
0x182f   :  { %v1672_v31 = vpop.permute.xlu1 %1671 }
0x1830   :  { %1679 = vst.msk [vmem:[#allocation3] sm:$0xff] %vm271_vm1, %v1672_v31 }
0x184c   :  { %v1676_v18 = vpop.permute.xlu0 %1675 }
0x184d   :  { %v1678_v15 = vsel %vm271_vm1, %v1672_v31, %v1676_v18 }
0x184e   :  { %4029 = vmatmul.mubr.msk.f32.vlgmr.msra.gmra.mrb[22].mxu0 %vm280_vm2, %v1678_v15 }
0x184f   :  { %4270 = vmatpush1.bf16.msra.mxu0 %v5324_v9  ;;  %1901 = vmatprep.mubr.f32.mxu0 %v4887_v0 }
0x1850   :  { %4272 = vmatprep.subr.bf16.mxu0 %v5326_v11 }
0x1853   :  { %4274 = vmatpush1.bf16.msra.mxu0 %v5331_v40 }
0x1854   :  { %4276 = vmatprep.subr.bf16.mxu0 %v5335_v38 }
0x1857   :  { %4278 = vmatpush1.bf16.msra.mxu0 %v5339_v45 }
0x1858   :  { %4280 = vmatprep.subr.bf16.mxu0 %v5343_v36 }
0x185b   :  { %4282 = vmatpush1.bf16.msra.mxu0 %v5347_v56 }
0x185c   :  { %4284 = vmatprep.subr.bf16.mxu0 %v5322_v62 }
0x1921   :  { %v1755_v22 = vpop.f32.mrb[22].mxu0 }
0x1922   :  { %v1760_v23 = vadd.f32 %v1755_v22, %v5286_v35  ;;  %v1757_v1 = vpop.f32.mrb[23].mxu0 }
0x1923   :  { %v1761_v32 = vadd.f32 %v1757_v1, %v5309_v14 }
0x1924   :  { %4648 = vtanh.f32 %v1760_v23  ;;  %v4030_v30 = vmul.f32 -1.442695, %v1760_v23 }
0x1925   :  { %4650 = vtanh.f32 %v1761_v32  ;;  %v4031_v61 = vmul.f32 -1.442695, %v1761_v32 }
0x1926   :  { %4652 = vpow2.f32 %v4030_v30 }
0x1927   :  { %4654 = vpow2.f32 %v4031_v61 }
0x192e   :  { %v4649_v34 = vpop.eup %4648 }
0x192f   :  { %v4651_v43 = vpop.eup %4650  ;;  %1782 = vrot.lane.b32.xlu1 %v4649_v34, %s4888_s0 }
0x1930   :  { %1797 = vrot.lane.b32.xlu0 %v4651_v43, %s4888_s0  ;;  %v4653_v35 = vpop.eup %4652 }
0x1931   :  { %v4655_v14 = vpop.eup %4654  ;;  %v1765_v33 = vadd.f32 1.0, %v4653_v35 }
0x1932   :  { %v1771_v27 = vadd.f32 1.0, %v4655_v14 }
0x1933   :  { %1777 = vrot.lane.b32.xlu1 %v5314_v44, %s4888_s0  ;;  %4656 = vrcp.f32 %v1765_v33 }
0x1934   :  { %1792 = vrot.lane.b32.xlu0 %v5318_v3, %s4888_s0  ;;  %4658 = vrcp.f32 %v1771_v27 }
0x193d   :  { %v4657_v50 = vpop.eup %4656 }
0x193e   :  { %v4659_v2 = vpop.eup %4658 }
0x19a1   :  { %v1783_v63 = vpop.permute.xlu1 %1782 }
0x19a2   :  { %v1785_v4 = vmul.f32 %v4657_v50, %v1783_v63  ;;  %v1798_v6 = vpop.permute.xlu0 %1797 }
0x19a3   :  { %v1800_v7 = vmul.f32 %v4659_v2, %v1798_v6 }
0x19a4   :  { %1787 = vrot.lane.b32.xlu1 %v1785_v4, %s4888_s0 }
0x19a5   :  { %1802 = vrot.lane.b32.xlu0 %v1800_v7, %s4888_s0  ;;  %v1778_v44 = vpop.permute.xlu1 %1777 }
0x19a6   :  { %v1793_v3 = vpop.permute.xlu0 %1792  ;;  %v1780_v8 = vmul.f32 %v4657_v50, %v1778_v44 }
0x19a7   :  { %v1795_v52 = vmul.f32 %v4659_v2, %v1793_v3 }
0x1a16   :  { %v1788_v25 = vpop.permute.xlu1 %1787 }
0x1a17   :  { %v1790_v5 = vadd.f32 %v1788_v25, %v1780_v8  ;;  %v1803_v13 = vpop.permute.xlu0 %1802 }
0x1a18   :  { %v1805_v16 = vadd.f32 %v1803_v13, %v1795_v52 }
0x1a19   :  { %4660 = vtanh.f32 %v1790_v5 }
0x1a1a   :  { %4662 = vtanh.f32 %v1805_v16 }
0x1a23   :  { %v4661_v20 = vpop.eup %4660 }
0x1a24   :  { %v4663_v21 = vpop.eup %4662  ;;  %1808 = vrot.lane.b32.xlu1 %v4661_v20, %s4888_s0 }
0x1a25   :  { %1814 = vrot.lane.b32.xlu0 %v4663_v21, %s4888_s0 }
0x1a96   :  { %v1809_v24 = vpop.permute.xlu1 %1808 }
0x1a97   :  { %v1811_v28 = vmul.f32 %v4657_v50, %v1809_v24  ;;  %v1815_v37 = vpop.permute.xlu0 %1814 }
0x1a98   :  { %v5385_v41 = vmul.f32 %v4659_v2, %v1815_v37 }
0x1a99   :  { %1819 = vrot.lane.b32.xlu1 %v1811_v28, %s4889_s27 }
0x1a9a   :  { %1823 = vrot.lane.b32.xlu0 %v5385_v41, %s4890_s28 }
0x1b0b   :  { %v1820_v48 = vpop.permute.xlu1 %1819 }
0x1b0c   :  { %1827 = vst.msk [vmem:[#allocation3 + $0x8] sm:$0xff] %vm271_vm1, %v1820_v48  ;;  %v1824_v42 = vpop.permute.xlu0 %1823 }
0x1b0d   :  { %v1826_v53 = vsel %vm271_vm1, %v1820_v48, %v1824_v42 }
0x1b0e   :  { %4032 = vmatmul.mubr.msk.f32.vlgmr.msra.gmra.mrb[24].mxu0 %vm280_vm2, %v1826_v53 }
0x1b0f   :  { %4286 = vmatpush1.bf16.msra.mxu0 %v5324_v9  ;;  %2041 = vmatprep.mubr.f32.mxu0 %v4887_v0 }
0x1b10   :  { %4288 = vmatprep.subr.bf16.mxu0 %v5326_v11 }
0x1b13   :  { %4290 = vmatpush1.bf16.msra.mxu0 %v5331_v40 }
0x1b14   :  { %4292 = vmatprep.subr.bf16.mxu0 %v5335_v38 }
0x1b17   :  { %4294 = vmatpush1.bf16.msra.mxu0 %v5339_v45 }
0x1b18   :  { %4296 = vmatprep.subr.bf16.mxu0 %v5343_v36 }
0x1b1b   :  { %4298 = vmatpush1.bf16.msra.mxu0 %v5347_v56 }
0x1b1c   :  { %4300 = vmatprep.subr.bf16.mxu0 %v5322_v62 }
0x1be1   :  { %v1903_v54 = vpop.f32.mrb[24].mxu0 }
0x1be2   :  { %v1908_v47 = vadd.f32 %v1903_v54, %v5290_v10  ;;  %v1905_v31 = vpop.f32.mrb[25].mxu0 }
0x1be3   :  { %v1909_v18 = vadd.f32 %v1905_v31, %v5305_v58 }
0x1be4   :  { %4664 = vtanh.f32 %v1908_v47  ;;  %v4033_v23 = vmul.f32 -1.442695, %v1908_v47 }
0x1be5   :  { %4666 = vtanh.f32 %v1909_v18  ;;  %v4034_v1 = vmul.f32 -1.442695, %v1909_v18 }
0x1be6   :  { %4668 = vpow2.f32 %v4033_v23 }
0x1be7   :  { %4670 = vpow2.f32 %v4034_v1 }
0x1bee   :  { %v4665_v15 = vpop.eup %4664 }
0x1bef   :  { %v4667_v22 = vpop.eup %4666  ;;  %1926 = vrot.lane.b32.xlu1 %v4665_v15, %s4888_s0 }
0x1bf0   :  { %1937 = vrot.lane.b32.xlu0 %v4667_v22, %s4888_s0  ;;  %v4669_v32 = vpop.eup %4668 }
0x1bf1   :  { %v4671_v34 = vpop.eup %4670  ;;  %v1913_v43 = vadd.f32 1.0, %v4669_v32 }
0x1bf2   :  { %v1919_v30 = vadd.f32 1.0, %v4671_v34 }
0x1bf3   :  { %4672 = vrcp.f32 %v1913_v43 }
0x1bf4   :  { %4674 = vrcp.f32 %v1919_v30 }
0x1bfd   :  { %v4673_v10 = vpop.eup %4672 }
0x1bfe   :  { %v4675_v61 = vpop.eup %4674  ;;  %v1924_v27 = vmul.f32 %v4673_v10, %v1790_v5 }
0x1bff   :  { %v1935_v63 = vmul.f32 %v4675_v61, %v1805_v16 }
0x1c61   :  { %v1927_v58 = vpop.permute.xlu1 %1926 }
0x1c62   :  { %v1929_v35 = vmul.f32 %v4673_v10, %v1927_v58  ;;  %v1938_v14 = vpop.permute.xlu0 %1937 }
0x1c63   :  { %v1940_v33 = vmul.f32 %v4675_v61, %v1938_v14 }
0x1c64   :  { %1931 = vrot.lane.b32.xlu1 %v1929_v35, %s4888_s0 }
0x1c65   :  { %1942 = vrot.lane.b32.xlu0 %v1940_v33, %s4888_s0 }
0x1cd6   :  { %v1932_v50 = vpop.permute.xlu1 %1931 }
0x1cd7   :  { %v1934_v2 = vadd.f32 %v1932_v50, %v1924_v27  ;;  %v1943_v4 = vpop.permute.xlu0 %1942 }
0x1cd8   :  { %v1945_v6 = vadd.f32 %v1943_v4, %v1935_v63 }
0x1cd9   :  { %4676 = vtanh.f32 %v1934_v2 }
0x1cda   :  { %4678 = vtanh.f32 %v1945_v6 }
0x1ce3   :  { %v4677_v7 = vpop.eup %4676 }
0x1ce4   :  { %v4679_v44 = vpop.eup %4678  ;;  %1948 = vrot.lane.b32.xlu1 %v4677_v7, %s4888_s0 }
0x1ce5   :  { %1954 = vrot.lane.b32.xlu0 %v4679_v44, %s4888_s0 }
0x1d56   :  { %v1949_v3 = vpop.permute.xlu1 %1948 }
0x1d57   :  { %v1951_v8 = vmul.f32 %v4673_v10, %v1949_v3  ;;  %v1955_v52 = vpop.permute.xlu0 %1954 }
0x1d58   :  { %v5410_v25 = vmul.f32 %v4675_v61, %v1955_v52 }
0x1d59   :  { %1959 = vrot.lane.b32.xlu1 %v1951_v8, %s4889_s27 }
0x1d5a   :  { %1963 = vrot.lane.b32.xlu0 %v5410_v25, %s4890_s28 }
0x1dcb   :  { %v1960_v5 = vpop.permute.xlu1 %1959 }
0x1dcc   :  { %1967 = vst.msk [vmem:[#allocation3 + $0x10] sm:$0xff] %vm271_vm1, %v1960_v5  ;;  %v1964_v13 = vpop.permute.xlu0 %1963 }
0x1dcd   :  { %v1966_v16 = vsel %vm271_vm1, %v1960_v5, %v1964_v13 }
0x1dce   :  { %4035 = vmatmul.mubr.msk.f32.vlgmr.msra.gmra.mrb[26].mxu0 %vm280_vm2, %v1966_v16 }
0x1dcf   :  { %4302 = vmatpush1.bf16.msra.mxu0 %v5324_v9  ;;  %2181 = vmatprep.mubr.f32.mxu0 %v4887_v0 }
0x1dd0   :  { %4304 = vmatprep.subr.bf16.mxu0 %v5326_v11 }
0x1dd3   :  { %4306 = vmatpush1.bf16.msra.mxu0 %v5331_v40 }
0x1dd4   :  { %4308 = vmatprep.subr.bf16.mxu0 %v5335_v38 }
0x1dd7   :  { %4310 = vmatpush1.bf16.msra.mxu0 %v5339_v45 }
0x1dd8   :  { %4312 = vmatprep.subr.bf16.mxu0 %v5343_v36 }
0x1ddb   :  { %4314 = vmatpush1.bf16.msra.mxu0 %v5347_v56 }
0x1ddc   :  { %4332 = vmatprep.subr.bf16.mxu0 %v5322_v62 }
0x1ea1   :  { %v2043_v20 = vpop.f32.mrb[26].mxu0 }
0x1ea2   :  { %v2048_v21 = vadd.f32 %v2043_v20, %v5294_v29  ;;  %v2045_v24 = vpop.f32.mrb[27].mxu0 }
0x1ea3   :  { %v2049_v28 = vadd.f32 %v2045_v24, %v5301_v12 }
0x1ea4   :  { %4680 = vtanh.f32 %v2048_v21  ;;  %v4036_v42 = vmul.f32 -1.442695, %v2048_v21 }
0x1ea5   :  { %4682 = vtanh.f32 %v2049_v28  ;;  %v4037_v53 = vmul.f32 -1.442695, %v2049_v28 }
0x1ea6   :  { %4684 = vpow2.f32 %v4036_v42 }
0x1ea7   :  { %4686 = vpow2.f32 %v4037_v53 }
0x1eae   :  { %v4681_v37 = vpop.eup %4680 }
0x1eaf   :  { %v4683_v48 = vpop.eup %4682  ;;  %2066 = vrot.lane.b32.xlu1 %v4681_v37, %s4888_s0 }
0x1eb0   :  { %2077 = vrot.lane.b32.xlu0 %v4683_v48, %s4888_s0  ;;  %v4685_v54 = vpop.eup %4684 }
0x1eb1   :  { %v4687_v62 = vpop.eup %4686  ;;  %v2053_v47 = vadd.f32 1.0, %v4685_v54 }
0x1eb2   :  { %v2059_v31 = vadd.f32 1.0, %v4687_v62 }
0x1eb3   :  { %4688 = vrcp.f32 %v2053_v47 }
0x1eb4   :  { %4690 = vrcp.f32 %v2059_v31 }
0x1ebd   :  { %v4689_v29 = vpop.eup %4688 }
0x1ebe   :  { %v4691_v18 = vpop.eup %4690  ;;  %v2064_v1 = vmul.f32 %v4689_v29, %v1934_v2 }
0x1ebf   :  { %v2075_v34 = vmul.f32 %v4691_v18, %v1945_v6 }
0x1f21   :  { %v2067_v12 = vpop.permute.xlu1 %2066 }
0x1f22   :  { %v2069_v15 = vmul.f32 %v4689_v29, %v2067_v12  ;;  %v2078_v22 = vpop.permute.xlu0 %2077 }
0x1f23   :  { %v2080_v23 = vmul.f32 %v4691_v18, %v2078_v22 }
0x1f24   :  { %2071 = vrot.lane.b32.xlu1 %v2069_v15, %s4888_s0 }
0x1f25   :  { %2082 = vrot.lane.b32.xlu0 %v2080_v23, %s4888_s0 }
0x1f96   :  { %v2072_v32 = vpop.permute.xlu1 %2071 }
0x1f97   :  { %v2074_v43 = vadd.f32 %v2072_v32, %v2064_v1  ;;  %v2083_v30 = vpop.permute.xlu0 %2082 }
0x1f98   :  { %v2085_v10 = vadd.f32 %v2083_v30, %v2075_v34 }
0x1f99   :  { %4692 = vtanh.f32 %v2074_v43 }
0x1f9a   :  { %4694 = vtanh.f32 %v2085_v10 }
0x1fa3   :  { %v4693_v58 = vpop.eup %4692 }
0x1fa4   :  { %v4695_v61 = vpop.eup %4694  ;;  %2088 = vrot.lane.b32.xlu1 %v4693_v58, %s4888_s0 }
0x1fa5   :  { %2094 = vrot.lane.b32.xlu0 %v4695_v61, %s4888_s0 }
0x2016   :  { %v2089_v35 = vpop.permute.xlu1 %2088 }
0x2017   :  { %v2091_v14 = vmul.f32 %v4689_v29, %v2089_v35  ;;  %v2095_v33 = vpop.permute.xlu0 %2094 }
0x2018   :  { %v5435_v27 = vmul.f32 %v4691_v18, %v2095_v33 }
0x2019   :  { %2099 = vrot.lane.b32.xlu1 %v2091_v14, %s4889_s27 }
0x201a   :  { %2103 = vrot.lane.b32.xlu0 %v5435_v27, %s4890_s28 }
0x208b   :  { %v2100_v50 = vpop.permute.xlu1 %2099 }
0x208c   :  { %2107 = vst.msk [vmem:[#allocation3 + $0x18] sm:$0xff] %vm271_vm1, %v2100_v50  ;;  %v2104_v63 = vpop.permute.xlu0 %2103 }
0x208d   :  { %v2106_v2 = vsel %vm271_vm1, %v2100_v50, %v2104_v63 }
0x208e   :  { %4038 = vmatmul.mubr.msk.f32.vlgmr.msra.gmra.mrb[28].mxu0 %vm280_vm2, %v2106_v2 }
0x208f   :  { %4334 = vmatpush1.bf16.msra.mxu0 %v5324_v9  ;;  %2461 = vmatprep.mubr.f32.mxu0 %v4887_v0 }
0x2090   :  { %4336 = vmatprep.subr.bf16.mxu0 %v5326_v11 }
0x2093   :  { %4338 = vmatpush1.bf16.msra.mxu0 %v5331_v40 }
0x2094   :  { %4340 = vmatprep.subr.bf16.mxu0 %v5335_v38 }
0x2097   :  { %4342 = vmatpush1.bf16.msra.mxu0 %v5339_v45 }
0x2098   :  { %4344 = vmatprep.subr.bf16.mxu0 %v5343_v36 }
0x209b   :  { %4346 = vmatpush1.bf16.msra.mxu0 %v5347_v56 }
0x2161   :  { %v2183_v4 = vpop.f32.mrb[28].mxu0 }
0x2162   :  { %v2188_v6 = vadd.f32 %v2183_v4, %v5299_v55  ;;  %v2185_v7 = vpop.f32.mrb[29].mxu0 }
0x2163   :  { %v2189_v44 = vadd.f32 %v2185_v7, %v5296_v51 }
0x2164   :  { %4696 = vtanh.f32 %v2188_v6  ;;  %v4039_v52 = vmul.f32 -1.442695, %v2188_v6 }
0x2165   :  { %4698 = vtanh.f32 %v2189_v44  ;;  %v4040_v5 = vmul.f32 -1.442695, %v2189_v44 }
0x2166   :  { %4700 = vpow2.f32 %v4039_v52 }
0x2167   :  { %4702 = vpow2.f32 %v4040_v5 }
0x216e   :  { %v4697_v3 = vpop.eup %4696 }
0x216f   :  { %v4699_v8 = vpop.eup %4698  ;;  %2206 = vrot.lane.b32.xlu1 %v4697_v3, %s4888_s0 }
0x2170   :  { %2217 = vrot.lane.b32.xlu0 %v4699_v8, %s4888_s0  ;;  %v4701_v13 = vpop.eup %4700 }
0x2171   :  { %v4703_v16 = vpop.eup %4702  ;;  %v2193_v20 = vadd.f32 1.0, %v4701_v13 }
0x2172   :  { %v2199_v21 = vadd.f32 1.0, %v4703_v16 }
0x2173   :  { %4704 = vrcp.f32 %v2193_v20 }
0x2174   :  { %4706 = vrcp.f32 %v2199_v21 }
0x217d   :  { %v4705_v55 = vpop.eup %4704 }
0x217e   :  { %v4707_v24 = vpop.eup %4706  ;;  %v2204_v42 = vmul.f32 %v4705_v55, %v2074_v43 }
0x217f   :  { %v2215_v54 = vmul.f32 %v4707_v24, %v2085_v10 }
0x21e1   :  { %v2207_v51 = vpop.permute.xlu1 %2206 }
0x21e2   :  { %v2209_v28 = vmul.f32 %v4705_v55, %v2207_v51  ;;  %v2218_v37 = vpop.permute.xlu0 %2217 }
0x21e3   :  { %v2220_v48 = vmul.f32 %v4707_v24, %v2218_v37 }
0x21e4   :  { %2211 = vrot.lane.b32.xlu1 %v2209_v28, %s4888_s0 }
0x21e5   :  { %2222 = vrot.lane.b32.xlu0 %v2220_v48, %s4888_s0 }
0x2256   :  { %v2212_v53 = vpop.permute.xlu1 %2211 }
0x2257   :  { %v2214_v62 = vadd.f32 %v2212_v53, %v2204_v42  ;;  %v2223_v47 = vpop.permute.xlu0 %2222 }
0x2258   :  { %v2225_v31 = vadd.f32 %v2223_v47, %v2215_v54 }
0x2259   :  { %4708 = vtanh.f32 %v2214_v62 }
0x225a   :  { %4710 = vtanh.f32 %v2225_v31 }
0x2263   :  { %v4709_v29 = vpop.eup %4708 }
0x2264   :  { %v4711_v12 = vpop.eup %4710  ;;  %2228 = vrot.lane.b32.xlu1 %v4709_v29, %s4888_s0 }
0x2265   :  { %2234 = vrot.lane.b32.xlu0 %v4711_v12, %s4888_s0 }
0x22d6   :  { %v2229_v18 = vpop.permute.xlu1 %2228 }
0x22d7   :  { %v2231_v15 = vmul.f32 %v4705_v55, %v2229_v18  ;;  %v2235_v22 = vpop.permute.xlu0 %2234 }
0x22d8   :  { %v5459_v23 = vmul.f32 %v4707_v24, %v2235_v22 }
0x22d9   :  { %2239 = vrot.lane.b32.xlu1 %v2231_v15, %s4889_s27 }
0x22da   :  { %2243 = vrot.lane.b32.xlu0 %v5459_v23, %s4890_s28 }
0x234b   :  { %v2240_v1 = vpop.permute.xlu1 %2239 }
0x234c   :  { %2247 = vst.msk [vmem:[#allocation3 + $0x20] sm:$0xff] %vm271_vm1, %v2240_v1  ;;  %v2244_v32 = vpop.permute.xlu0 %2243 }
0x234d   :  { %v2246_v34 = vsel %vm271_vm1, %v2240_v1, %v2244_v32 }
0x234e   :  { %4041 = vmatmul.mubr.msk.f32.vlgmr.msra.gmra.mrb[24].mxu1 %vm280_vm2, %v2246_v34 }
0x234f   :  { %4350 = vmatpush1.bf16.msra.mxu1 %v5324_v9  ;;  %2601 = vmatprep.mubr.f32.mxu1 %v4887_v0 }
0x2350   :  { %4352 = vmatprep.subr.bf16.mxu1 %v5326_v11 }
0x2353   :  { %4354 = vmatpush1.bf16.msra.mxu1 %v5331_v40 }
0x2354   :  { %4356 = vmatprep.subr.bf16.mxu1 %v5335_v38 }
0x2357   :  { %4358 = vmatpush1.bf16.msra.mxu1 %v5339_v45 }
0x2358   :  { %4360 = vmatprep.subr.bf16.mxu1 %v5343_v36 }
0x235b   :  { %4362 = vmatpush1.bf16.msra.mxu1 %v5347_v56 }
0x2421   :  { %v2323_v43 = vpop.f32.mrb[24].mxu1 }
0x2422   :  { %v2328_v30 = vadd.f32 %v2323_v43, %v5303_v57  ;;  %v2325_v10 = vpop.f32.mrb[25].mxu1 }
0x2423   :  { %v2329_v9 = vadd.f32 %v2325_v10, %v5292_v49 }
0x2424   :  { %4712 = vtanh.f32 %v2328_v30  ;;  %v4042_v40 = vmul.f32 -1.442695, %v2328_v30 }
0x2425   :  { %4714 = vtanh.f32 %v2329_v9  ;;  %v4043_v38 = vmul.f32 -1.442695, %v2329_v9 }
0x2426   :  { %4716 = vpow2.f32 %v4042_v40 }
0x2427   :  { %4718 = vpow2.f32 %v4043_v38 }
0x242e   :  { %v4713_v58 = vpop.eup %4712 }
0x242f   :  { %v4715_v11 = vpop.eup %4714  ;;  %2346 = vrot.lane.b32.xlu1 %v4713_v58, %s4888_s0 }
0x2430   :  { %2357 = vrot.lane.b32.xlu0 %v4715_v11, %s4888_s0  ;;  %v4717_v45 = vpop.eup %4716 }
0x2431   :  { %v4719_v36 = vpop.eup %4718  ;;  %v2333_v56 = vadd.f32 1.0, %v4717_v45 }
0x2432   :  { %v2339_v61 = vadd.f32 1.0, %v4719_v36 }
0x2433   :  { %4720 = vrcp.f32 %v2333_v56 }
0x2434   :  { %4722 = vrcp.f32 %v2339_v61 }
0x243d   :  { %v4721_v57 = vpop.eup %4720 }
0x243e   :  { %v4723_v35 = vpop.eup %4722  ;;  %v2344_v63 = vmul.f32 %v4721_v57, %v2214_v62 }
0x243f   :  { %v2355_v4 = vmul.f32 %v4723_v35, %v2225_v31 }
0x24a1   :  { %v2347_v49 = vpop.permute.xlu1 %2346 }
0x24a2   :  { %v2349_v14 = vmul.f32 %v4721_v57, %v2347_v49  ;;  %v2358_v33 = vpop.permute.xlu0 %2357 }
0x24a3   :  { %v2360_v50 = vmul.f32 %v4723_v35, %v2358_v33 }
0x24a4   :  { %2351 = vrot.lane.b32.xlu1 %v2349_v14, %s4888_s0 }
0x24a5   :  { %2362 = vrot.lane.b32.xlu0 %v2360_v50, %s4888_s0 }
0x2516   :  { %v2352_v2 = vpop.permute.xlu1 %2351 }
0x2517   :  { %v2354_v6 = vadd.f32 %v2352_v2, %v2344_v63  ;;  %v2363_v7 = vpop.permute.xlu0 %2362 }
0x2518   :  { %v2365_v44 = vadd.f32 %v2363_v7, %v2355_v4 }
0x2519   :  { %4724 = vtanh.f32 %v2354_v6 }
0x251a   :  { %4726 = vtanh.f32 %v2365_v44 }
0x2523   :  { %v4725_v3 = vpop.eup %4724 }
0x2524   :  { %v4727_v8 = vpop.eup %4726  ;;  %2368 = vrot.lane.b32.xlu1 %v4725_v3, %s4888_s0 }
0x2525   :  { %2374 = vrot.lane.b32.xlu0 %v4727_v8, %s4888_s0 }
0x2596   :  { %v2369_v52 = vpop.permute.xlu1 %2368 }
0x2597   :  { %v2371_v5 = vmul.f32 %v4721_v57, %v2369_v52  ;;  %v2375_v13 = vpop.permute.xlu0 %2374 }
0x2598   :  { %v5483_v16 = vmul.f32 %v4723_v35, %v2375_v13 }
0x2599   :  { %2379 = vrot.lane.b32.xlu1 %v2371_v5, %s4889_s27 }
0x259a   :  { %2383 = vrot.lane.b32.xlu0 %v5483_v16, %s4890_s28 }
0x260b   :  { %v2380_v20 = vpop.permute.xlu1 %2379 }
0x260c   :  { %2387 = vst.msk [vmem:[#allocation3 + $0x28] sm:$0xff] %vm271_vm1, %v2380_v20  ;;  %v2384_v21 = vpop.permute.xlu0 %2383 }
0x260d   :  { %v2386_v55 = vsel %vm271_vm1, %v2380_v20, %v2384_v21 }
0x260e   :  { %4044 = vmatmul.mubr.msk.f32.vlgmr.msra.gmra.mrb[30].mxu0 %vm280_vm2, %v2386_v55 }
0x260f   :  { %2789 = vmatprep.mubr.f32.mxu0 %v4887_v0 }
0x26e1   :  { %v2463_v51 = vpop.f32.mrb[30].mxu0 }
0x26e2   :  { %v2468_v24 = vadd.f32 %v2463_v51, %v5307_v60  ;;  %v2465_v28 = vpop.f32.mrb[31].mxu0 }
0x26e3   :  { %v2469_v37 = vadd.f32 %v2465_v28, %v5288_v39 }
0x26e4   :  { %4728 = vtanh.f32 %v2468_v24  ;;  %v4045_v53 = vmul.f32 -1.442695, %v2468_v24 }
0x26e5   :  { %4730 = vtanh.f32 %v2469_v37  ;;  %v4046_v54 = vmul.f32 -1.442695, %v2469_v37 }
0x26e6   :  { %4732 = vpow2.f32 %v4045_v53 }
0x26e7   :  { %4734 = vpow2.f32 %v4046_v54  ;;  %v2677_v54 = vld [vmem:[#allocation5 + $0x240] sm:$0xff] }
0x26ee   :  { %v4729_v48 = vpop.eup %4728 }
0x26ef   :  { %v4731_v42 = vpop.eup %4730  ;;  %2486 = vrot.lane.b32.xlu1 %v4729_v48, %s4888_s0  ;;  %v2678_v48 = vld [vmem:[#allocation5 + $0x248] sm:$0xff] }
0x26f0   :  { %2497 = vrot.lane.b32.xlu0 %v4731_v42, %s4888_s0  ;;  %v4733_v62 = vpop.eup %4732  ;;  %v2680_v42 = vld [vmem:[#allocation5 + $0x258] sm:$0xff] }
0x26f1   :  { %v4735_v47 = vpop.eup %4734  ;;  %v2473_v31 = vadd.f32 1.0, %v4733_v62  ;;  %v4363_v53 = vpack.c.bf16 %v2680_v42, %v2678_v48  ;;  %v2679_v62 = vld [vmem:[#allocation5 + $0x250] sm:$0xff] }
0x26f2   :  { %v2479_v29 = vadd.f32 1.0, %v4735_v47  ;;  %v4365_v47 = vpack.c.bf16 %v2679_v62, %v2677_v54 }
0x26f3   :  { %4736 = vrcp.f32 %v2473_v31  ;;  %4364 = vmatprep.subr.bf16.mxu0 %v4363_v53  ;;  %v2682_v31 = vld [vmem:[#allocation5 + $0x268] sm:$0xff] }
0x26f4   :  { %4738 = vrcp.f32 %v2479_v29  ;;  %v2684_v29 = vld [vmem:[#allocation5 + $0x278] sm:$0xff]  ;;  %4366 = vmatpush1.bf16.msra.mxu0 %v4365_v47 }
0x26fd   :  { %v4737_v60 = vpop.eup %4736 }
0x26fe   :  { %v4739_v12 = vpop.eup %4738  ;;  %v2484_v1 = vmul.f32 %v4737_v60, %v2354_v6 }
0x26ff   :  { %v2495_v34 = vmul.f32 %v4739_v12, %v2365_v44 }
0x2761   :  { %v2487_v39 = vpop.permute.xlu1 %2486 }
0x2762   :  { %v2489_v18 = vmul.f32 %v4737_v60, %v2487_v39  ;;  %v2498_v15 = vpop.permute.xlu0 %2497  ;;  %v2681_v39 = vld [vmem:[#allocation5 + $0x260] sm:$0xff] }
0x2763   :  { %v2500_v22 = vmul.f32 %v4739_v12, %v2498_v15  ;;  %v2670_v15 = vld [vmem:[#allocation5 + $0x208] sm:$0xff] }
0x2764   :  { %2491 = vrot.lane.b32.xlu1 %v2489_v18, %s4888_s0 }
0x2765   :  { %2502 = vrot.lane.b32.xlu0 %v2500_v22, %s4888_s0 }
0x27d6   :  { %v2492_v32 = vpop.permute.xlu1 %2491 }
0x27d7   :  { %v2494_v43 = vadd.f32 %v2492_v32, %v2484_v1  ;;  %v2503_v30 = vpop.permute.xlu0 %2502 }
0x27d8   :  { %v2505_v10 = vadd.f32 %v2503_v30, %v2495_v34 }
0x27d9   :  { %4740 = vtanh.f32 %v2494_v43 }
0x27da   :  { %4742 = vtanh.f32 %v2505_v10 }
0x27e3   :  { %v4741_v9 = vpop.eup %4740 }
0x27e4   :  { %v4743_v58 = vpop.eup %4742  ;;  %2508 = vrot.lane.b32.xlu1 %v4741_v9, %s4888_s0 }
0x27e5   :  { %2514 = vrot.lane.b32.xlu0 %v4743_v58, %s4888_s0  ;;  %v2671_v58 = vld [vmem:[#allocation5 + $0x210] sm:$0xff] }
0x2856   :  { %v2509_v11 = vpop.permute.xlu1 %2508 }
0x2857   :  { %v2511_v40 = vmul.f32 %v4737_v60, %v2509_v11  ;;  %v2515_v38 = vpop.permute.xlu0 %2514  ;;  %v4367_v60 = vpack.c.bf16 %v2684_v29, %v2682_v31 }
0x2858   :  { %v2517_v45 = vmul.f32 %v4739_v12, %v2515_v38  ;;  %v2683_v12 = vld [vmem:[#allocation5 + $0x270] sm:$0xff]  ;;  %v2676_v38 = vld [vmem:[#allocation5 + $0x238] sm:$0xff] }
0x2859   :  { %2519 = vrot.lane.b32.xlu1 %v2511_v40, %s4889_s27  ;;  %4368 = vmatprep.subr.bf16.mxu0 %v4367_v60  ;;  %v4369_v18 = vpack.c.bf16 %v2683_v12, %v2681_v39  ;;  %v2674_v40 = vld [vmem:[#allocation5 + $0x228] sm:$0xff] }
0x285a   :  { %2523 = vrot.lane.b32.xlu0 %v2517_v45, %s4890_s28 }
0x285b   :  { %4370 = vmatpush1.bf16.msra.mxu0 %v4369_v18 }
0x28cb   :  { %v2520_v36 = vpop.permute.xlu1 %2519 }
0x28cc   :  { %2527 = vst.msk [vmem:[#allocation3 + $0x30] sm:$0xff] %vm271_vm1, %v2520_v36  ;;  %v2524_v56 = vpop.permute.xlu0 %2523 }
0x28cd   :  { %v2526_v61 = vsel %vm271_vm1, %v2520_v36, %v2524_v56  ;;  %v2673_v36 = vld [vmem:[#allocation5 + $0x220] sm:$0xff]  ;;  %v2675_v56 = vld [vmem:[#allocation5 + $0x230] sm:$0xff] }
0x28ce   :  { %4047 = vmatmul.mubr.msk.f32.vlgmr.msra.gmra.mrb[26].mxu1 %vm280_vm2, %v2526_v61 }
0x28cf   :  { %3158 = vmatprep.mubr.f32.mxu1 %v4887_v0 }
0x29a1   :  { %v2603_v57 = vpop.f32.mrb[26].mxu1 }
0x29a2   :  { %v2608_v49 = vadd.f32 %v2603_v57, %v5311_v46  ;;  %v2605_v35 = vpop.f32.mrb[27].mxu1  ;;  %v4377_v57 = vpack.c.bf16 %v2675_v56, %v2673_v36 }
0x29a3   :  { %v2609_v14 = vadd.f32 %v2605_v35, %v5284_v26 }
0x29a4   :  { %4744 = vtanh.f32 %v2608_v49  ;;  %v4048_v63 = vmul.f32 -1.442695, %v2608_v49 }
0x29a5   :  { %4746 = vtanh.f32 %v2609_v14  ;;  %v4049_v2 = vmul.f32 -1.442695, %v2609_v14 }
0x29a6   :  { %4748 = vpow2.f32 %v4048_v63 }
0x29a7   :  { %4750 = vpow2.f32 %v4049_v2 }
0x29ae   :  { %v4745_v33 = vpop.eup %4744 }
0x29af   :  { %v4747_v50 = vpop.eup %4746  ;;  %2626 = vrot.lane.b32.xlu0 %v4745_v33, %s4888_s0 }
0x29b0   :  { %2637 = vrot.lane.b32.xlu1 %v4747_v50, %s4888_s0  ;;  %v4749_v4 = vpop.eup %4748 }
0x29b1   :  { %v4751_v6 = vpop.eup %4750  ;;  %v2613_v7 = vadd.f32 1.0, %v4749_v4 }
0x29b2   :  { %v2619_v44 = vadd.f32 1.0, %v4751_v6 }
0x29b3   :  { %4752 = vrcp.f32 %v2613_v7  ;;  %v2685_v7 = vld [vmem:[#allocation3] sm:$0xff] }
0x29b4   :  { %4754 = vrcp.f32 %v2619_v44  ;;  %v2686_v44 = vld [vmem:[#allocation3 + $0x8] sm:$0xff] }
0x29bd   :  { %v4753_v46 = vpop.eup %4752 }
0x29be   :  { %v4755_v3 = vpop.eup %4754  ;;  %v2624_v13 = vmul.f32 %v4753_v46, %v2494_v43 }
0x29bf   :  { %v2635_v21 = vmul.f32 %v4755_v3, %v2505_v10 }
0x2a21   :  { %v2627_v26 = vpop.permute.xlu0 %2626 }
0x2a22   :  { %v2629_v8 = vmul.f32 %v4753_v46, %v2627_v26  ;;  %v2638_v52 = vpop.permute.xlu1 %2637  ;;  %v2688_v26 = vld [vmem:[#allocation3 + $0x18] sm:$0xff] }
0x2a23   :  { %v2640_v5 = vmul.f32 %v4755_v3, %v2638_v52  ;;  %v2691_v52 = vld [vmem:[#allocation3 + $0x30] sm:$0xff] }
0x2a24   :  { %2631 = vrot.lane.b32.xlu0 %v2629_v8, %s4888_s0  ;;  %v2690_v8 = vld [vmem:[#allocation3 + $0x28] sm:$0xff] }
0x2a25   :  { %2642 = vrot.lane.b32.xlu1 %v2640_v5, %s4888_s0 }
0x2a96   :  { %v2632_v20 = vpop.permute.xlu0 %2631 }
0x2a97   :  { %v2634_v55 = vadd.f32 %v2632_v20, %v2624_v13  ;;  %v2643_v51 = vpop.permute.xlu1 %2642 }
0x2a98   :  { %v2645_v24 = vadd.f32 %v2643_v51, %v2635_v21 }
0x2a99   :  { %4756 = vtanh.f32 %v2634_v55 }
0x2a9a   :  { %4758 = vtanh.f32 %v2645_v24 }
0x2aa3   :  { %v4757_v28 = vpop.eup %4756 }
0x2aa4   :  { %v4759_v37 = vpop.eup %4758  ;;  %2648 = vrot.lane.b32.xlu0 %v4757_v28, %s4888_s0 }
0x2aa5   :  { %2654 = vrot.lane.b32.xlu1 %v4759_v37, %s4888_s0  ;;  %v4066_v37 = vld [vmem:[%s5788_s3 + $0x4] sm:$0x3] }
0x2aa6   :  { %v2981_v42 = vrot.slane %v4066_v37, %v4984_v17  ;;  %v2985_v39 = vrot.slane %v4066_v37, %v4989_v19  ;;  %v3027_v37 = vld [vmem:[#allocation5 + $0x130] sm:$0xff] }
0x2aa8   :  { %2528 = vrot.lane.b32.xlu0 %v2517_v45, %s4889_s27  ;;  %v4375_v45 = vpack.c.bf16 %v2676_v38, %v2674_v40 }
0x2aac   :  { %2248 = vrot.lane.b32.xlu0 %v5459_v23, %s4889_s27  ;;  %v2672_v23 = vld [vmem:[#allocation5 + $0x218] sm:$0xff] }
0x2aad   :  { %v4371_v22 = vpack.c.bf16 %v2672_v23, %v2670_v15 }
0x2aaf   :  { %4372 = vmatprep.subr.bf16.mxu0 %v4371_v22 }
0x2ab0   :  { %1968 = vrot.lane.b32.xlu0 %v5410_v25, %s4889_s27 }
0x2ab4   :  { %1680 = vrot.lane.b32.xlu0 %v5357_v59, %s4889_s27 }
0x2b16   :  { %v2649_v25 = vpop.permute.xlu0 %2648 }
0x2b17   :  { %v2655_v1 = vpop.permute.xlu1 %2654  ;;  %v2651_v10 = vmul.f32 %v4753_v46, %v2649_v25  ;;  %v2687_v46 = vld [vmem:[#allocation3 + $0x10] sm:$0xff] }
0x2b18   :  { %v2657_v32 = vmul.f32 %v4755_v3, %v2655_v1  ;;  %v2689_v3 = vld [vmem:[#allocation3 + $0x20] sm:$0xff] }
0x2b1a   :  { %v2529_v59 = vpop.permute.xlu0 %2528  ;;  %2664 = vrot.lane.b32.xlu1 %v2657_v32, %s4889_s27 }
0x2b1b   :  { %2531 = vst.msk [vmem:[#allocation4 + $0x8] sm:$0xff] %vm271_vm1, %v2529_v59 }
0x2b1e   :  { %v2249_v34 = vpop.permute.xlu0 %2248  ;;  %2388 = vrot.lane.b32.xlu1 %v5483_v16, %s4889_s27  ;;  %v2669_v16 = vld [vmem:[#allocation5 + $0x200] sm:$0xff] }
0x2b1f   :  { %2251 = vst.msk [vmem:[#allocation4 + $0x18] sm:$0xff] %vm271_vm1, %v2249_v34 }
0x2b22   :  { %v1969_v43 = vpop.permute.xlu0 %1968  ;;  %2108 = vrot.lane.b32.xlu1 %v5435_v27, %s4889_s27  ;;  %v4373_v27 = vpack.c.bf16 %v2671_v58, %v2669_v16  ;;  %v2694_v35 = vld [vmem:[#allocation4 + $0x8] sm:$0xff] }
0x2b23   :  { %1971 = vst.msk [vmem:[#allocation4 + $0x28] sm:$0xff] %vm271_vm1, %v1969_v43 }
0x2b26   :  { %v1681_v30 = vpop.permute.xlu0 %1680  ;;  %1828 = vrot.lane.b32.xlu1 %v5385_v41, %s4889_s27  ;;  %v2696_v50 = vld [vmem:[#allocation4 + $0x18] sm:$0xff] }
0x2b27   :  { %1683 = vst.msk [vmem:[#allocation4 + $0x38] sm:$0xff] %vm271_vm1, %v1681_v30 }
0x2b2a   :  { %2659 = vrot.lane.b32.xlu1 %v2651_v10, %s4889_s27  ;;  %v2698_v2 = vld [vmem:[#allocation4 + $0x28] sm:$0xff] }
0x2b2e   :  { %v2700_v6 = vld [vmem:[#allocation4 + $0x38] sm:$0xff] }
0x2b8c   :  { %v2665_v9 = vpop.permute.xlu1 %2664 }
0x2b8d   :  { %2667 = vst.msk [vmem:[#allocation4] sm:$0xff] %vm271_vm1, %v2665_v9 }
0x2b90   :  { %v2389_v11 = vpop.permute.xlu1 %2388 }
0x2b91   :  { %2391 = vst.msk [vmem:[#allocation4 + $0x10] sm:$0xff] %vm271_vm1, %v2389_v11 }
0x2b94   :  { %v2109_v41 = vpop.permute.xlu1 %2108  ;;  %v2693_v61 = vld [vmem:[#allocation4] sm:$0xff] }
0x2b95   :  { %2111 = vst.msk [vmem:[#allocation4 + $0x20] sm:$0xff] %vm271_vm1, %v2109_v41  ;;  %4050 = vmatmul.mubr.msk.f32.vlgmr.msra.gmra.mrb[32].mxu0 %vm271_vm1, %v2693_v61 }
0x2b96   :  { %4374 = vmatpush1.bf16.msra.mxu0 %v4373_v27  ;;  %2795 = vmatprep.mubr.f32.mxu0 %v4887_v0 }
0x2b97   :  { %4376 = vmatprep.subr.bf16.mxu0 %v4375_v45 }
0x2b98   :  { %v1829_v49 = vpop.permute.xlu1 %1828  ;;  %v2695_v33 = vld [vmem:[#allocation4 + $0x10] sm:$0xff] }
0x2b99   :  { %1831 = vst.msk [vmem:[#allocation4 + $0x30] sm:$0xff] %vm271_vm1, %v1829_v49  ;;  %4051 = vmatmul.mubr.msk.f32.gmra.mrb[34].mxu0 %vm271_vm1, %v2694_v35 }
0x2b9a   :  { %2801 = vmatprep.mubr.f32.mxu0 %v4887_v0  ;;  %4378 = vmatpush1.bf16.msra.mxu0 %v4377_v57 }
0x2b9c   :  { %v2660_v14 = vpop.permute.xlu1 %2659  ;;  %v2697_v63 = vld [vmem:[#allocation4 + $0x20] sm:$0xff] }
0x2b9d   :  { %2662 = vst.msk [vmem:[#allocation3 + $0x38] sm:$0xff] %vm271_vm1, %v2660_v14  ;;  %4052 = vmatmul.mubr.msk.f32.gmra.mrb[36].mxu0 %vm271_vm1, %v2695_v33 }
0x2b9e   :  { %2807 = vmatprep.mubr.f32.mxu0 %v4887_v0 }
0x2ba0   :  { %v2699_v4 = vld [vmem:[#allocation4 + $0x30] sm:$0xff] }
0x2ba1   :  { %4053 = vmatmul.mubr.msk.f32.gmra.mrb[38].mxu0 %vm271_vm1, %v2696_v50 }
0x2ba2   :  { %2813 = vmatprep.mubr.f32.mxu0 %v4887_v0 }
0x2ba4   :  { %v2692_v5 = vld [vmem:[#allocation3 + $0x38] sm:$0xff] }
0x2ba5   :  { %4054 = vmatmul.mubr.msk.f32.gmra.mrb[40].mxu0 %vm271_vm1, %v2697_v63 }
0x2ba6   :  { %2819 = vmatprep.mubr.f32.mxu0 %v4887_v0 }
0x2ba9   :  { %4055 = vmatmul.mubr.msk.f32.gmra.mrb[42].mxu0 %vm271_vm1, %v2698_v2 }
0x2baa   :  { %2825 = vmatprep.mubr.f32.mxu0 %v4887_v0 }
0x2bad   :  { %4056 = vmatmul.mubr.msk.f32.gmra.mrb[44].mxu0 %vm271_vm1, %v2699_v4 }
0x2bae   :  { %2831 = vmatprep.mubr.f32.mxu0 %v4887_v0 }
0x2bb1   :  { %4057 = vmatmul.mubr.msk.f32.gmra.mrb[46].mxu0 %vm271_vm1, %v2700_v6 }
0x2bb2   :  { %2926 = vmatprep.mubr.f32.mxu0 %v4887_v0 }
0x2bb5   :  { %4058 = vmatmul.mubr.msk.f32.vlgmr.msra.gmra.mrb[48].mxu0 %vm271_vm1, %v2685_v7 }
0x2bb6   :  { %2932 = vmatprep.mubr.f32.mxu0 %v4887_v0 }
0x2bb9   :  { %4059 = vmatmul.mubr.msk.f32.gmra.mrb[50].mxu0 %vm271_vm1, %v2686_v44 }
0x2bba   :  { %2938 = vmatprep.mubr.f32.mxu0 %v4887_v0 }
0x2bbd   :  { %4060 = vmatmul.mubr.msk.f32.gmra.mrb[36].mxu0 %vm271_vm1, %v2687_v46 }
0x2bbe   :  { %2944 = vmatprep.mubr.f32.mxu0 %v4887_v0 }
0x2bc1   :  { %4061 = vmatmul.mubr.msk.f32.gmra.mrb[38].mxu0 %vm271_vm1, %v2688_v26 }
0x2bc2   :  { %2950 = vmatprep.mubr.f32.mxu0 %v4887_v0 }
0x2bc5   :  { %4062 = vmatmul.mubr.msk.f32.gmra.mrb[40].mxu0 %vm271_vm1, %v2689_v3 }
0x2bc6   :  { %2956 = vmatprep.mubr.f32.mxu0 %v4887_v0 }
0x2bc9   :  { %4063 = vmatmul.mubr.msk.f32.gmra.mrb[42].mxu0 %vm271_vm1, %v2690_v8  ;;  %v3022_v8 = vld [vmem:[#allocation5 + $0x108] sm:$0xff] }
0x2bca   :  { %2962 = vmatprep.mubr.f32.mxu0 %v4887_v0 }
0x2bcd   :  { %4064 = vmatmul.mubr.msk.f32.gmra.mrb[52].mxu0 %vm271_vm1, %v2691_v52  ;;  %v3024_v52 = vld [vmem:[#allocation5 + $0x118] sm:$0xff] }
0x2bce   :  { %2968 = vmatprep.mubr.f32.mxu0 %v4887_v0 }
0x2bd1   :  { %4065 = vmatmul.mubr.msk.f32.gmra.mrb[54].mxu0 %vm271_vm1, %v2692_v5  ;;  %v3021_v5 = vld [vmem:[#allocation5 + $0x100] sm:$0xff] }
0x2bd2   :  { %3726 = vmatprep.mubr.f32.mxu0 %v4887_v0 }
0x2c68   :  { %v2791_v13 = vpop.f32.mrb[32].mxu0 }
0x2c69   :  { %v2793_v20 = vpop.f32.mrb[33].mxu0 }
0x2c6a   :  { %v3023_v20 = vld [vmem:[#allocation5 + $0x110] sm:$0xff] }
0x2c6c   :  { %v2797_v21 = vpop.f32.mrb[34].mxu0 }
0x2c6d   :  { %v2799_v55 = vpop.f32.mrb[35].mxu0 }
0x2c6e   :  { %v3028_v55 = vld [vmem:[#allocation5 + $0x138] sm:$0xff] }
0x2c80   :  { %v2827_v51 = vpop.f32.mrb[44].mxu0 }
0x2c81   :  { %v2829_v24 = vpop.f32.mrb[45].mxu0  ;;  %v5607_v51 = vpack.c.bf16 %v3023_v20, %v3021_v5 }
0x2c84   :  { %v2833_v28 = vpop.f32.mrb[46].mxu0 }
0x2c85   :  { %v2835_v48 = vpop.f32.mrb[47].mxu0  ;;  %v3025_v28 = vld [vmem:[#allocation5 + $0x120] sm:$0xff] }
0x2c88   :  { %v2928_v53 = vpop.f32.mrb[48].mxu0 }
0x2c89   :  { %v2929_v54 = vadd.f32 %v2928_v53, %v2791_v13  ;;  %v2930_v62 = vpop.f32.mrb[49].mxu0  ;;  %v5605_v13 = vpack.c.bf16 %v3024_v52, %v3022_v8  ;;  %v5614_v53 = vpack.c.bf16 %v3027_v37, %v3025_v28 }
0x2c8a   :  { %v3029_v62 = vld [vmem:[#allocation5 + $0x140] sm:$0xff] }
0x2c8b   :  { %v2988_v47 = vadd.f32 %v2981_v42, %v2929_v54  ;;  %4380 = vmatprep.subr.bf16.mxu1 %v5605_v13  ;;  %4444 = vmatprep.subr.bf16.mxu0 %v5605_v13 }
0x2c8c   :  { %v2934_v31 = vpop.f32.mrb[50].mxu0  ;;  %4382 = vmatpush1.bf16.msra.mxu1 %v5607_v51  ;;  %4446 = vmatpush1.bf16.msra.mxu0 %v5607_v51 }
0x2c8d   :  { %4760 = vtanh.f32 %v2988_v47  ;;  %v2935_v29 = vadd.f32 %v2934_v31, %v2797_v21  ;;  %v2936_v60 = vpop.f32.mrb[51].mxu0  ;;  %v4067_v49 = vmul.f32 -1.442695, %v2988_v47  ;;  %v3026_v21 = vld [vmem:[#allocation5 + $0x128] sm:$0xff]  ;;  %v3031_v47 = vld [vmem:[#allocation5 + $0x150] sm:$0xff] }
0x2c8e   :  { %v3034_v31 = vld [vmem:[#allocation5 + $0x168] sm:$0xff]  ;;  %v5622_v60 = vpack.c.bf16 %v3031_v47, %v3029_v62 }
0x2c8f   :  { %v5575_v12 = vadd.f32 %v2981_v42, %v2935_v29  ;;  %v3036_v29 = vld [vmem:[#allocation5 + $0x178] sm:$0xff] }
0x2c90   :  { %v2940_v18 = vpop.f32.mrb[36].mxu0 }
0x2c91   :  { %v5577_v15 = vadd.f32 %v2981_v42, %v2940_v18  ;;  %v2942_v23 = vpop.f32.mrb[37].mxu0  ;;  %v3033_v18 = vld [vmem:[#allocation5 + $0x160] sm:$0xff] }
0x2c92   :  { %v5579_v22 = vadd.f32 %v2985_v39, %v2942_v23  ;;  %v3035_v23 = vld [vmem:[#allocation5 + $0x170] sm:$0xff] }
0x2c94   :  { %v2946_v25 = vpop.f32.mrb[38].mxu0 }
0x2c95   :  { %v5581_v1 = vadd.f32 %v2981_v42, %v2946_v25  ;;  %v2948_v32 = vpop.f32.mrb[39].mxu0 }
0x2c96   :  { %v5583_v59 = vadd.f32 %v2985_v39, %v2948_v32 }
0x2c97   :  { %v4761_v34 = vpop.eup %4760 }
0x2c98   :  { %v2952_v43 = vpop.f32.mrb[40].mxu0  ;;  %3054 = vrot.lane.b32.xlu0 %v4761_v34, %s4888_s0  ;;  %v5630_v34 = vpack.c.bf16 %v3035_v23, %v3033_v18 }
0x2c99   :  { %v5586_v30 = vadd.f32 %v2981_v42, %v2952_v43  ;;  %v2954_v19 = vpop.f32.mrb[41].mxu0 }
0x2c9a   :  { %v5588_v10 = vadd.f32 %v2985_v39, %v2954_v19 }
0x2c9c   :  { %v2958_v9 = vpop.f32.mrb[42].mxu0 }
0x2c9d   :  { %v5590_v16 = vadd.f32 %v2981_v42, %v2958_v9  ;;  %v2960_v58 = vpop.f32.mrb[43].mxu0  ;;  %v3032_v42 = vld [vmem:[#allocation5 + $0x158] sm:$0xff] }
0x2c9e   :  { %v5592_v11 = vadd.f32 %v2985_v39, %v2960_v58 }
0x2ca0   :  { %v2964_v40 = vpop.f32.mrb[52].mxu0 }
0x2ca1   :  { %v2966_v38 = vpop.f32.mrb[53].mxu0 }
0x2ca2   :  { %v2967_v27 = vadd.f32 %v2966_v38, %v2829_v24  ;;  %v5609_v24 = vpack.c.bf16 %v3028_v55, %v3026_v21 }
0x2ca4   :  { %v2970_v45 = vpop.f32.mrb[54].mxu0  ;;  %v5594_v36 = vadd.f32 %v2985_v39, %v2967_v27  ;;  %4384 = vmatprep.subr.bf16.mxu1 %v5609_v24  ;;  %4448 = vmatprep.subr.bf16.mxu0 %v5609_v24 }
0x2ca5   :  { %v2972_v56 = vpop.f32.mrb[55].mxu0  ;;  %4386 = vmatpush1.bf16.msra.mxu1 %v5614_v53  ;;  %4450 = vmatpush1.bf16.msra.mxu0 %v5614_v53 }
0x2ca6   :  { %v2973_v41 = vadd.f32 %v2972_v56, %v2835_v48  ;;  %v3030_v48 = vld [vmem:[#allocation5 + $0x148] sm:$0xff] }
0x2ca7   :  { %v5618_v54 = vpack.c.bf16 %v3032_v42, %v3030_v48 }
0x2ca8   :  { %v3003_v61 = vadd.f32 %v2985_v39, %v2973_v41  ;;  %v5626_v39 = vpack.c.bf16 %v3036_v29, %v3034_v31 }
0x2ca9   :  { %4388 = vmatprep.subr.bf16.mxu1 %v5618_v54  ;;  %4452 = vmatprep.subr.bf16.mxu0 %v5618_v54 }
0x2caa   :  { %4762 = vtanh.f32 %v3003_v61  ;;  %v4068_v33 = vmul.f32 -1.442695, %v3003_v61  ;;  %4390 = vmatpush1.bf16.msra.mxu1 %v5622_v60  ;;  %4454 = vmatpush1.bf16.msra.mxu0 %v5622_v60 }
0x2cab   :  { %4764 = vpow2.f32 %v4067_v49  ;;  %4392 = vmatprep.subr.bf16.mxu1 %v5626_v39  ;;  %4456 = vmatprep.subr.bf16.mxu0 %v5626_v39 }
0x2cae   :  { %4394 = vmatpush1.bf16.msra.mxu1 %v5630_v34  ;;  %4458 = vmatpush1.bf16.msra.mxu0 %v5630_v34 }
0x2caf   :  { %4396 = vmatprep.subr.bf16.mxu1 %v5605_v13 }
0x2cb4   :  { %v4763_v57 = vpop.eup %4762 }
0x2cb5   :  { %3059 = vrot.lane.b32.xlu1 %v4763_v57, %s4888_s0  ;;  %v4765_v35 = vpop.eup %4764 }
0x2cb6   :  { %v3042_v14 = vadd.f32 1.0, %v4765_v35 }
0x2cb8   :  { %4766 = vrcp.f32 %v3042_v14 }
0x2cb9   :  { %4768 = vpow2.f32 %v4068_v33 }
0x2cc2   :  { %v4767_v50 = vpop.eup %4766 }
0x2cc3   :  { %v4769_v4 = vpop.eup %4768 }
0x2cc4   :  { %v3048_v7 = vadd.f32 1.0, %v4769_v4 }
0x2d0a   :  { %v3055_v63 = vpop.permute.xlu0 %3054 }
0x2d0b   :  { %v5597_v2 = vmul.f32 %v4767_v50, %v3055_v63 }
0x2d0d   :  { %4770 = vtanh.f32 %v5597_v2 }
0x2d0e   :  { %4772 = vrcp.f32 %v3048_v7 }
0x2d17   :  { %v4771_v6 = vpop.eup %4770 }
0x2d18   :  { %3065 = vrot.lane.b32.xlu0 %v4771_v6, %s4889_s27  ;;  %v4773_v44 = vpop.eup %4772 }
0x2d27   :  { %v3060_v46 = vpop.permute.xlu1 %3059 }
0x2d28   :  { %v5601_v26 = vmul.f32 %v4773_v44, %v3060_v46 }
0x2d2a   :  { %4774 = vtanh.f32 %v5601_v26 }
0x2d34   :  { %v4775_v3 = vpop.eup %4774 }
0x2d35   :  { %3071 = vrot.lane.b32.xlu1 %v4775_v3, %s4889_s27 }
0x2d8a   :  { %v3066_v25 = vpop.permute.xlu0 %3065 }
0x2d8b   :  { %v3068_v32 = vmul.f32 %v4767_v50, %v3066_v25 }
0x2d8d   :  { %3076 = vrot.lane.b32.xlu0 %v3068_v32, %s4889_s27 }
0x2da7   :  { %v3072_v43 = vpop.permute.xlu1 %3071 }
0x2da8   :  { %v5639_v19 = vmul.f32 %v4773_v44, %v3072_v43 }
0x2daa   :  { %3080 = vrot.lane.b32.xlu1 %v5639_v19, %s4890_s28 }
0x2dff   :  { %v3077_v9 = vpop.permute.xlu0 %3076 }
0x2e00   :  { %3084 = vst.msk [vmem:[#allocation3] sm:$0xff] %vm271_vm1, %v3077_v9 }
0x2e1c   :  { %v3081_v58 = vpop.permute.xlu1 %3080 }
0x2e1d   :  { %v3083_v40 = vsel %vm271_vm1, %v3077_v9, %v3081_v58 }
0x2e1e   :  { %4069 = vmatmul.mubr.msk.f32.vlgmr.msra.gmra.mrb[28].mxu1 %vm280_vm2, %v3083_v40 }
0x2e1f   :  { %4398 = vmatpush1.bf16.msra.mxu1 %v5607_v51  ;;  %3306 = vmatprep.mubr.f32.mxu1 %v4887_v0 }
0x2e20   :  { %4400 = vmatprep.subr.bf16.mxu1 %v5609_v24 }
0x2e23   :  { %4402 = vmatpush1.bf16.msra.mxu1 %v5614_v53 }
0x2e24   :  { %4404 = vmatprep.subr.bf16.mxu1 %v5618_v54 }
0x2e27   :  { %4406 = vmatpush1.bf16.msra.mxu1 %v5622_v60 }
0x2e28   :  { %4408 = vmatprep.subr.bf16.mxu1 %v5626_v39 }
0x2e2b   :  { %4410 = vmatpush1.bf16.msra.mxu1 %v5630_v34 }
0x2e2c   :  { %4412 = vmatprep.subr.bf16.mxu1 %v5605_v13 }
0x2ef1   :  { %v3160_v38 = vpop.f32.mrb[28].mxu1 }
0x2ef2   :  { %v3165_v27 = vadd.f32 %v3160_v38, %v5575_v12  ;;  %v3162_v45 = vpop.f32.mrb[29].mxu1 }
0x2ef3   :  { %v3166_v56 = vadd.f32 %v3162_v45, %v5594_v36 }
0x2ef4   :  { %4776 = vtanh.f32 %v3165_v27  ;;  %v4070_v57 = vmul.f32 -1.442695, %v3165_v27 }
0x2ef5   :  { %4778 = vtanh.f32 %v3166_v56  ;;  %v4071_v49 = vmul.f32 -1.442695, %v3166_v56 }
0x2ef6   :  { %4780 = vpow2.f32 %v4070_v57 }
0x2ef7   :  { %4782 = vpow2.f32 %v4071_v49 }
0x2efe   :  { %v4777_v41 = vpop.eup %4776 }
0x2eff   :  { %v4779_v61 = vpop.eup %4778  ;;  %3187 = vrot.lane.b32.xlu0 %v4777_v41, %s4888_s0 }
0x2f00   :  { %3202 = vrot.lane.b32.xlu1 %v4779_v61, %s4888_s0  ;;  %v4781_v12 = vpop.eup %4780 }
0x2f01   :  { %v4783_v36 = vpop.eup %4782  ;;  %v3170_v35 = vadd.f32 1.0, %v4781_v12 }
0x2f02   :  { %v3176_v14 = vadd.f32 1.0, %v4783_v36 }
0x2f03   :  { %3182 = vrot.lane.b32.xlu0 %v5597_v2, %s4888_s0  ;;  %4784 = vrcp.f32 %v3170_v35 }
0x2f04   :  { %3197 = vrot.lane.b32.xlu1 %v5601_v26, %s4888_s0  ;;  %4786 = vrcp.f32 %v3176_v14 }
0x2f0d   :  { %v4785_v33 = vpop.eup %4784 }
0x2f0e   :  { %v4787_v63 = vpop.eup %4786 }
0x2f71   :  { %v3188_v50 = vpop.permute.xlu0 %3187 }
0x2f72   :  { %v3190_v4 = vmul.f32 %v4785_v33, %v3188_v50  ;;  %v3203_v6 = vpop.permute.xlu1 %3202 }
0x2f73   :  { %v3205_v7 = vmul.f32 %v4787_v63, %v3203_v6 }
0x2f74   :  { %3192 = vrot.lane.b32.xlu0 %v3190_v4, %s4888_s0 }
0x2f75   :  { %3207 = vrot.lane.b32.xlu1 %v3205_v7, %s4888_s0  ;;  %v3183_v2 = vpop.permute.xlu0 %3182 }
0x2f76   :  { %v3198_v44 = vpop.permute.xlu1 %3197  ;;  %v3185_v46 = vmul.f32 %v4785_v33, %v3183_v2 }
0x2f77   :  { %v3200_v26 = vmul.f32 %v4787_v63, %v3198_v44 }
0x2fe6   :  { %v3193_v3 = vpop.permute.xlu0 %3192 }
0x2fe7   :  { %v3195_v8 = vadd.f32 %v3193_v3, %v3185_v46  ;;  %v3208_v52 = vpop.permute.xlu1 %3207 }
0x2fe8   :  { %v3210_v5 = vadd.f32 %v3208_v52, %v3200_v26 }
0x2fe9   :  { %4788 = vtanh.f32 %v3195_v8 }
0x2fea   :  { %4790 = vtanh.f32 %v3210_v5 }
0x2ff3   :  { %v4789_v20 = vpop.eup %4788 }
0x2ff4   :  { %v4791_v21 = vpop.eup %4790  ;;  %3213 = vrot.lane.b32.xlu0 %v4789_v20, %s4888_s0 }
0x2ff5   :  { %3219 = vrot.lane.b32.xlu1 %v4791_v21, %s4888_s0 }
0x3066   :  { %v3214_v55 = vpop.permute.xlu0 %3213 }
0x3067   :  { %v3216_v28 = vmul.f32 %v4785_v33, %v3214_v55  ;;  %v3220_v37 = vpop.permute.xlu1 %3219 }
0x3068   :  { %v5667_v48 = vmul.f32 %v4787_v63, %v3220_v37 }
0x3069   :  { %3224 = vrot.lane.b32.xlu0 %v3216_v28, %s4889_s27 }
0x306a   :  { %3228 = vrot.lane.b32.xlu1 %v5667_v48, %s4890_s28 }
0x30db   :  { %v3225_v42 = vpop.permute.xlu0 %3224 }
0x30dc   :  { %3232 = vst.msk [vmem:[#allocation3 + $0x8] sm:$0xff] %vm271_vm1, %v3225_v42  ;;  %v3229_v62 = vpop.permute.xlu1 %3228 }
0x30dd   :  { %v3231_v47 = vsel %vm271_vm1, %v3225_v42, %v3229_v62 }
0x30de   :  { %4072 = vmatmul.mubr.msk.f32.vlgmr.msra.gmra.mrb[30].mxu1 %vm280_vm2, %v3231_v47 }
0x30df   :  { %4414 = vmatpush1.bf16.msra.mxu1 %v5607_v51  ;;  %3446 = vmatprep.mubr.f32.mxu1 %v4887_v0 }
0x30e0   :  { %4416 = vmatprep.subr.bf16.mxu1 %v5609_v24 }
0x30e3   :  { %4418 = vmatpush1.bf16.msra.mxu1 %v5614_v53 }
0x30e4   :  { %4420 = vmatprep.subr.bf16.mxu1 %v5618_v54 }
0x30e7   :  { %4422 = vmatpush1.bf16.msra.mxu1 %v5622_v60 }
0x30e8   :  { %4424 = vmatprep.subr.bf16.mxu1 %v5626_v39 }
0x30eb   :  { %4426 = vmatpush1.bf16.msra.mxu1 %v5630_v34 }
0x30ec   :  { %4428 = vmatprep.subr.bf16.mxu1 %v5605_v13 }
0x31b1   :  { %v3308_v31 = vpop.f32.mrb[30].mxu1 }
0x31b2   :  { %v3313_v29 = vadd.f32 %v3308_v31, %v5577_v15  ;;  %v3310_v18 = vpop.f32.mrb[31].mxu1 }
0x31b3   :  { %v3314_v23 = vadd.f32 %v3310_v18, %v5592_v11 }
0x31b4   :  { %4792 = vtanh.f32 %v3313_v29  ;;  %v4073_v43 = vmul.f32 -1.442695, %v3313_v29 }
0x31b5   :  { %4794 = vtanh.f32 %v3314_v23  ;;  %v4074_v9 = vmul.f32 -1.442695, %v3314_v23 }
0x31b6   :  { %4796 = vpow2.f32 %v4073_v43 }
0x31b7   :  { %4798 = vpow2.f32 %v4074_v9 }
0x31be   :  { %v4793_v25 = vpop.eup %4792 }
0x31bf   :  { %v4795_v32 = vpop.eup %4794  ;;  %3331 = vrot.lane.b32.xlu0 %v4793_v25, %s4888_s0 }
0x31c0   :  { %3342 = vrot.lane.b32.xlu1 %v4795_v32, %s4888_s0  ;;  %v4797_v58 = vpop.eup %4796 }
0x31c1   :  { %v4799_v13 = vpop.eup %4798  ;;  %v3318_v40 = vadd.f32 1.0, %v4797_v58 }
0x31c2   :  { %v3324_v38 = vadd.f32 1.0, %v4799_v13 }
0x31c3   :  { %4800 = vrcp.f32 %v3318_v40 }
0x31c4   :  { %4802 = vrcp.f32 %v3324_v38 }
0x31cd   :  { %v4801_v15 = vpop.eup %4800 }
0x31ce   :  { %v4803_v27 = vpop.eup %4802  ;;  %v3329_v61 = vmul.f32 %v4801_v15, %v3195_v8 }
0x31cf   :  { %v3340_v49 = vmul.f32 %v4803_v27, %v3210_v5 }
0x3231   :  { %v3332_v11 = vpop.permute.xlu0 %3331 }
0x3232   :  { %v3334_v45 = vmul.f32 %v4801_v15, %v3332_v11  ;;  %v3343_v56 = vpop.permute.xlu1 %3342 }
0x3233   :  { %v3345_v41 = vmul.f32 %v4803_v27, %v3343_v56 }
0x3234   :  { %3336 = vrot.lane.b32.xlu0 %v3334_v45, %s4888_s0 }
0x3235   :  { %3347 = vrot.lane.b32.xlu1 %v3345_v41, %s4888_s0 }
0x32a6   :  { %v3337_v57 = vpop.permute.xlu0 %3336 }
0x32a7   :  { %v3339_v12 = vadd.f32 %v3337_v57, %v3329_v61  ;;  %v3348_v36 = vpop.permute.xlu1 %3347 }
0x32a8   :  { %v3350_v35 = vadd.f32 %v3348_v36, %v3340_v49 }
0x32a9   :  { %4804 = vtanh.f32 %v3339_v12 }
0x32aa   :  { %4806 = vtanh.f32 %v3350_v35 }
0x32b3   :  { %v4805_v14 = vpop.eup %4804 }
0x32b4   :  { %v4807_v33 = vpop.eup %4806  ;;  %3353 = vrot.lane.b32.xlu0 %v4805_v14, %s4888_s0 }
0x32b5   :  { %3359 = vrot.lane.b32.xlu1 %v4807_v33, %s4888_s0 }
0x3326   :  { %v3354_v50 = vpop.permute.xlu0 %3353 }
0x3327   :  { %v3356_v63 = vmul.f32 %v4801_v15, %v3354_v50  ;;  %v3360_v4 = vpop.permute.xlu1 %3359 }
0x3328   :  { %v5692_v6 = vmul.f32 %v4803_v27, %v3360_v4 }
0x3329   :  { %3364 = vrot.lane.b32.xlu0 %v3356_v63, %s4889_s27 }
0x332a   :  { %3368 = vrot.lane.b32.xlu1 %v5692_v6, %s4890_s28 }
0x339b   :  { %v3365_v7 = vpop.permute.xlu0 %3364 }
0x339c   :  { %3372 = vst.msk [vmem:[#allocation3 + $0x10] sm:$0xff] %vm271_vm1, %v3365_v7  ;;  %v3369_v2 = vpop.permute.xlu1 %3368 }
0x339d   :  { %v3371_v44 = vsel %vm271_vm1, %v3365_v7, %v3369_v2 }
0x339e   :  { %4075 = vmatmul.mubr.msk.f32.vlgmr.msra.gmra.mrb[32].mxu1 %vm280_vm2, %v3371_v44 }
0x339f   :  { %4430 = vmatpush1.bf16.msra.mxu1 %v5607_v51  ;;  %3586 = vmatprep.mubr.f32.mxu1 %v4887_v0 }
0x33a0   :  { %4432 = vmatprep.subr.bf16.mxu1 %v5609_v24 }
0x33a3   :  { %4434 = vmatpush1.bf16.msra.mxu1 %v5614_v53 }
0x33a4   :  { %4436 = vmatprep.subr.bf16.mxu1 %v5618_v54 }
0x33a7   :  { %4438 = vmatpush1.bf16.msra.mxu1 %v5622_v60 }
0x33a8   :  { %4440 = vmatprep.subr.bf16.mxu1 %v5626_v39 }
0x33ab   :  { %4442 = vmatpush1.bf16.msra.mxu1 %v5630_v34 }
0x3471   :  { %v3448_v46 = vpop.f32.mrb[32].mxu1 }
0x3472   :  { %v3453_v26 = vadd.f32 %v3448_v46, %v5581_v1  ;;  %v3450_v3 = vpop.f32.mrb[33].mxu1 }
0x3473   :  { %v3454_v51 = vadd.f32 %v3450_v3, %v5588_v10 }
0x3474   :  { %4808 = vtanh.f32 %v3453_v26  ;;  %v4076_v53 = vmul.f32 -1.442695, %v3453_v26 }
0x3475   :  { %4810 = vtanh.f32 %v3454_v51  ;;  %v4077_v54 = vmul.f32 -1.442695, %v3454_v51 }
0x3476   :  { %4812 = vpow2.f32 %v4076_v53 }
0x3477   :  { %4814 = vpow2.f32 %v4077_v54 }
0x347e   :  { %v4809_v8 = vpop.eup %4808 }
0x347f   :  { %v4811_v24 = vpop.eup %4810  ;;  %3471 = vrot.lane.b32.xlu0 %v4809_v8, %s4888_s0 }
0x3480   :  { %3482 = vrot.lane.b32.xlu1 %v4811_v24, %s4888_s0  ;;  %v4813_v60 = vpop.eup %4812 }
0x3481   :  { %v4815_v39 = vpop.eup %4814  ;;  %v3458_v34 = vadd.f32 1.0, %v4813_v60 }
0x3482   :  { %v3464_v52 = vadd.f32 1.0, %v4815_v39 }
0x3483   :  { %4816 = vrcp.f32 %v3458_v34 }
0x3484   :  { %4818 = vrcp.f32 %v3464_v52 }
0x348d   :  { %v4817_v1 = vpop.eup %4816 }
0x348e   :  { %v4819_v5 = vpop.eup %4818  ;;  %v3469_v28 = vmul.f32 %v4817_v1, %v3339_v12 }
0x348f   :  { %v3480_v42 = vmul.f32 %v4819_v5, %v3350_v35 }
0x34f1   :  { %v3472_v10 = vpop.permute.xlu0 %3471 }
0x34f2   :  { %v3474_v20 = vmul.f32 %v4817_v1, %v3472_v10  ;;  %v3483_v21 = vpop.permute.xlu1 %3482 }
0x34f3   :  { %v3485_v55 = vmul.f32 %v4819_v5, %v3483_v21 }
0x34f4   :  { %3476 = vrot.lane.b32.xlu0 %v3474_v20, %s4888_s0 }
0x34f5   :  { %3487 = vrot.lane.b32.xlu1 %v3485_v55, %s4888_s0  ;;  %v3800_v55 = vld [vmem:[#allocation5 + $0x2c0] sm:$0xff] }
0x3566   :  { %v3477_v37 = vpop.permute.xlu0 %3476 }
0x3567   :  { %v3479_v62 = vadd.f32 %v3477_v37, %v3469_v28  ;;  %v3488_v47 = vpop.permute.xlu1 %3487  ;;  %v3801_v28 = vld [vmem:[#allocation5 + $0x2d0] sm:$0xff] }
0x3568   :  { %v3490_v31 = vadd.f32 %v3488_v47, %v3480_v42  ;;  %v4460_v37 = vpack.c.bf16 %v3801_v28, %v3800_v55  ;;  %v4891_v42 = vmov 0.0|0.0  }
0x3569   :  { %4820 = vtanh.f32 %v3479_v62  ;;  %4459 = vmatprep.subr.bf16.mxu1 %v4891_v42  ;;  %4465 = vmatprep.subr.bf16.mxu0 %v4891_v42 }
0x356a   :  { %4822 = vtanh.f32 %v3490_v31 }
0x3573   :  { %v4821_v29 = vpop.eup %4820 }
0x3574   :  { %v4823_v18 = vpop.eup %4822  ;;  %3493 = vrot.lane.b32.xlu0 %v4821_v29, %s4888_s0 }
0x3575   :  { %3499 = vrot.lane.b32.xlu1 %v4823_v18, %s4888_s0 }
0x35e6   :  { %v3494_v23 = vpop.permute.xlu0 %3493 }
0x35e7   :  { %v3496_v25 = vmul.f32 %v4817_v1, %v3494_v23  ;;  %v3500_v32 = vpop.permute.xlu1 %3499 }
0x35e8   :  { %v5716_v43 = vmul.f32 %v4819_v5, %v3500_v32 }
0x35e9   :  { %3504 = vrot.lane.b32.xlu0 %v3496_v25, %s4889_s27 }
0x35ea   :  { %3508 = vrot.lane.b32.xlu1 %v5716_v43, %s4890_s28 }
0x365b   :  { %v3505_v9 = vpop.permute.xlu0 %3504 }
0x365c   :  { %3512 = vst.msk [vmem:[#allocation3 + $0x18] sm:$0xff] %vm271_vm1, %v3505_v9  ;;  %v3509_v58 = vpop.permute.xlu1 %3508 }
0x365d   :  { %v3511_v13 = vsel %vm271_vm1, %v3505_v9, %v3509_v58 }
0x365e   :  { %4078 = vmatmul.mubr.msk.f32.vlgmr.msra.gmra.mrb[34].mxu1 %vm280_vm2, %v3511_v13 }
0x365f   :  { %4461 = vmatpush3.bf16.msra.mxu1 %v4460_v37  ;;  %4105 = vmatprep.mubr.msk.f32.mxu1 %vm4892_vm3, %v4887_v0 }
0x3660   :  { %4462 = vmatprep.subr.bf16.mxu1 %v4891_v42 }
0x3731   :  { %v3588_v40 = vpop.f32.mrb[34].mxu1 }
0x3732   :  { %v3593_v38 = vadd.f32 %v3588_v40, %v5586_v30  ;;  %v3590_v15 = vpop.f32.mrb[35].mxu1 }
0x3733   :  { %v3594_v11 = vadd.f32 %v3590_v15, %v5583_v59 }
0x3734   :  { %4824 = vtanh.f32 %v3593_v38  ;;  %v4079_v56 = vmul.f32 -1.442695, %v3593_v38  ;;  %v3797_v38 = vld [vmem:[#allocation5 + $0x290] sm:$0xff] }
0x3735   :  { %4826 = vtanh.f32 %v3594_v11  ;;  %v4080_v41 = vmul.f32 -1.442695, %v3594_v11 }
0x3736   :  { %4828 = vpow2.f32 %v4079_v56 }
0x3737   :  { %4830 = vpow2.f32 %v4080_v41 }
0x373e   :  { %v4825_v27 = vpop.eup %4824 }
0x373f   :  { %v4827_v45 = vpop.eup %4826  ;;  %3611 = vrot.lane.b32.xlu0 %v4825_v27, %s4888_s0  ;;  %v3798_v27 = vld [vmem:[#allocation5 + $0x2a0] sm:$0xff] }
0x3740   :  { %3622 = vrot.lane.b32.xlu1 %v4827_v45, %s4888_s0  ;;  %v4829_v61 = vpop.eup %4828  ;;  %v3799_v45 = vld [vmem:[#allocation5 + $0x2b0] sm:$0xff] }
0x3741   :  { %v4831_v57 = vpop.eup %4830  ;;  %v3598_v49 = vadd.f32 1.0, %v4829_v61  ;;  %v4469_v56 = vpack.c.bf16 %v3799_v45, %v3798_v27 }
0x3742   :  { %v3604_v12 = vadd.f32 1.0, %v4831_v57 }
0x3743   :  { %4832 = vrcp.f32 %v3598_v49 }
0x3744   :  { %4834 = vrcp.f32 %v3604_v12 }
0x374d   :  { %v4833_v30 = vpop.eup %4832 }
0x374e   :  { %v4835_v36 = vpop.eup %4834  ;;  %v3609_v50 = vmul.f32 %v4833_v30, %v3479_v62  ;;  %v3803_v62 = vld [vmem:[#allocation5 + $0x2f0] sm:$0xff] }
0x374f   :  { %v3620_v4 = vmul.f32 %v4835_v36, %v3490_v31 }
0x37b1   :  { %v3612_v59 = vpop.permute.xlu0 %3611 }
0x37b2   :  { %v3614_v35 = vmul.f32 %v4833_v30, %v3612_v59  ;;  %v3623_v14 = vpop.permute.xlu1 %3622 }
0x37b3   :  { %v3625_v33 = vmul.f32 %v4835_v36, %v3623_v14 }
0x37b4   :  { %3616 = vrot.lane.b32.xlu0 %v3614_v35, %s4888_s0 }
0x37b5   :  { %3627 = vrot.lane.b32.xlu1 %v3625_v33, %s4888_s0 }
0x3826   :  { %v3617_v63 = vpop.permute.xlu0 %3616 }
0x3827   :  { %v3619_v7 = vadd.f32 %v3617_v63, %v3609_v50  ;;  %v3628_v2 = vpop.permute.xlu1 %3627 }
0x3828   :  { %v5730_v44 = vadd.f32 %v3628_v2, %v3620_v4  ;;  %v4086_v2 = vld [vmem:[%s5788_s3 + $0x6] sm:$0x3] }
0x3829   :  { %4836 = vtanh.f32 %v3619_v7 }
0x382a   :  { %4838 = vtanh.f32 %v5730_v44 }
0x3833   :  { %v4837_v46 = vpop.eup %4836 }
0x3834   :  { %v4839_v26 = vpop.eup %4838  ;;  %3633 = vrot.lane.b32.xlu0 %v4837_v46, %s4888_s0 }
0x3835   :  { %3639 = vrot.lane.b32.xlu1 %v4839_v26, %s4888_s0 }
0x38a6   :  { %v3634_v3 = vpop.permute.xlu0 %3633 }
0x38a7   :  { %v3636_v51 = vmul.f32 %v4833_v30, %v3634_v3  ;;  %v3640_v8 = vpop.permute.xlu1 %3639 }
0x38a8   :  { %v5735_v24 = vmul.f32 %v4835_v36, %v3640_v8 }
0x38a9   :  { %3644 = vrot.lane.b32.xlu0 %v3636_v51, %s4889_s27 }
0x38aa   :  { %3648 = vrot.lane.b32.xlu1 %v5735_v24, %s4890_s28 }
0x391b   :  { %v3645_v53 = vpop.permute.xlu0 %3644 }
0x391c   :  { %3652 = vst.msk [vmem:[#allocation3 + $0x20] sm:$0xff] %vm271_vm1, %v3645_v53  ;;  %v3649_v54 = vpop.permute.xlu1 %3648 }
0x391d   :  { %v3651_v60 = vsel %vm271_vm1, %v3645_v53, %v3649_v54 }
0x391e   :  { %4081 = vmatmul.mubr.msk.f32.vlgmr.msra.gmra.mrb[56].mxu0 %vm280_vm2, %v3651_v60 }
0x391f   :  { %4116 = vmatprep.mubr.msk.f32.mxu0 %vm4892_vm3, %v4887_v0 }
0x39f1   :  { %v3728_v39 = vpop.f32.mrb[56].mxu0 }
0x39f2   :  { %v3733_v34 = vadd.f32 %v3728_v39, %v5590_v16  ;;  %v3730_v52 = vpop.f32.mrb[57].mxu0  ;;  %v3802_v16 = vld [vmem:[#allocation5 + $0x2e0] sm:$0xff] }
0x39f3   :  { %v3734_v1 = vadd.f32 %v3730_v52, %v5579_v22  ;;  %v4463_v22 = vpack.c.bf16 %v3803_v62, %v3802_v16 }
0x39f4   :  { %4840 = vtanh.f32 %v3733_v34  ;;  %v4082_v5 = vmul.f32 -1.442695, %v3733_v34 }
0x39f5   :  { %4464 = vmatpush3.bf16.msra.mxu1 %v4463_v22  ;;  %v4083_v0 = vmul.f32 -1.442695, %v3734_v1 }
0x39f6   :  { %4842 = vpow2.f32 %v4082_v5 }
0x39fe   :  { %v4841_v10 = vpop.eup %4840 }
0x39ff   :  { %3751 = vrot.lane.b32.xlu0 %v4841_v10, %s4888_s0 }
0x3a00   :  { %v4843_v20 = vpop.eup %4842 }
0x3a01   :  { %v3738_v21 = vadd.f32 1.0, %v4843_v20 }
0x3a03   :  { %4844 = vrcp.f32 %v3738_v21 }
0x3a04   :  { %4846 = vtanh.f32 %v3734_v1 }
0x3a0d   :  { %v4845_v47 = vpop.eup %4844 }
0x3a0e   :  { %v4847_v18 = vpop.eup %4846  ;;  %v3749_v23 = vmul.f32 %v4845_v47, %v3619_v7 }
0x3a71   :  { %v3752_v31 = vpop.permute.xlu0 %3751 }
0x3a72   :  { %v3754_v29 = vmul.f32 %v4845_v47, %v3752_v31 }
0x3a74   :  { %3756 = vrot.lane.b32.xlu1 %v3754_v29, %s4888_s0 }
0x3a78   :  { %3373 = vrot.lane.b32.xlu1 %v5692_v6, %s4889_s27  ;;  %v3796_v6 = vld [vmem:[#allocation5 + $0x280] sm:$0xff] }
0x3a79   :  { %v4466_v15 = vpack.c.bf16 %v3797_v38, %v3796_v6 }
0x3a7b   :  { %4467 = vmatpush3.bf16.msra.mxu0 %v4466_v15 }
0x3a7c   :  { %3762 = vrot.lane.b32.xlu1 %v4847_v18, %s4888_s0  ;;  %4468 = vmatprep.subr.bf16.mxu0 %v4891_v42 }
0x3a7f   :  { %4470 = vmatpush3.bf16.msra.mxu0 %v4469_v56 }
0x3ae6   :  { %v3757_v25 = vpop.permute.xlu1 %3756 }
0x3ae7   :  { %v3759_v32 = vadd.f32 %v3757_v25, %v3749_v23 }
0x3ae9   :  { %4848 = vtanh.f32 %v3759_v32 }
0x3aea   :  { %v3374_v9 = vpop.permute.xlu1 %3373  ;;  %4850 = vpow2.f32 %v4083_v0 }
0x3aeb   :  { %3376 = vst.msk [vmem:[#allocation4 + $0x28] sm:$0xff] %vm271_vm1, %v3374_v9 }
0x3aee   :  { %v3763_v57 = vpop.permute.xlu1 %3762 }
0x3af2   :  { %v3794_v58 = vld [vmem:[#allocation4 + $0x28] sm:$0xff] }
0x3af3   :  { %v4849_v13 = vpop.eup %4848  ;;  %4106 = vmatmul.mubr.msk.f32.vlgmr.msra.gmra.mrb[36].mxu1 %vm271_vm1, %v3794_v58 }
0x3af4   :  { %3773 = vrot.lane.b32.xlu0 %v4849_v13, %s4888_s0  ;;  %v4851_v40 = vpop.eup %4850 }
0x3af5   :  { %v3744_v11 = vadd.f32 1.0, %v4851_v40 }
0x3af7   :  { %4852 = vrcp.f32 %v3744_v11 }
0x3b01   :  { %v4853_v49 = vpop.eup %4852 }
0x3b02   :  { %v3765_v12 = vmul.f32 %v4853_v49, %v3763_v57  ;;  %v3760_v35 = vmul.f32 %v4853_v49, %v5730_v44  ;;  %v3956_v44 = vrot.slane %v4086_v2, %v4984_v17 }
0x3b66   :  { %v3774_v41 = vpop.permute.xlu0 %3773 }
0x3b67   :  { %v3776_v61 = vmul.f32 %v4845_v47, %v3774_v41 }
0x3b69   :  { %3784 = vrot.lane.b32.xlu0 %v3776_v61, %s4889_s27 }
0x3b6d   :  { %3767 = vrot.lane.b32.xlu0 %v3765_v12, %s4888_s0 }
0x3bc6   :  { %v3873_v30 = vpop.f32.mrb[36].mxu1 }
0x3bc7   :  { %v4107_v59 = vpop.f32.mrb[37].mxu1 }
0x3bdb   :  { %v3785_v36 = vpop.permute.xlu0 %3784 }
0x3bdc   :  { %3787 = vst.msk [vmem:[#allocation3 + $0x28] sm:$0xff] %vm271_vm1, %v3785_v36 }
0x3bdf   :  { %v3768_v14 = vpop.permute.xlu0 %3767 }
0x3be0   :  { %v3770_v33 = vadd.f32 %v3768_v14, %v3760_v35 }
0x3be2   :  { %4854 = vtanh.f32 %v3770_v33 }
0x3be3   :  { %v3793_v50 = vld [vmem:[#allocation3 + $0x28] sm:$0xff] }
0x3be4   :  { %4117 = vmatmul.mubr.msk.f32.vlgmr.msra.gmra.mrb[58].mxu0 %vm271_vm1, %v3793_v50 }
0x3bec   :  { %v4855_v63 = vpop.eup %4854 }
0x3bed   :  { %3779 = vrot.lane.b32.xlu0 %v4855_v63, %s4888_s0 }
0x3bf1   :  { %3233 = vrot.lane.b32.xlu0 %v5667_v48, %s4889_s27 }
0x3c5f   :  { %v3780_v4 = vpop.permute.xlu0 %3779 }
0x3c63   :  { %v3234_v7 = vpop.permute.xlu0 %3233 }
0x3c64   :  { %3236 = vst.msk [vmem:[#allocation4 + $0x30] sm:$0xff] %vm271_vm1, %v3234_v7 }
0x3cb7   :  { %v3946_v46 = vpop.f32.mrb[58].mxu0 }
0x3cb8   :  { %v3947_v26 = vadd.f32 %v3946_v46, %v3873_v30  ;;  %v4118_v3 = vpop.f32.mrb[59].mxu0 }
0x3cba   :  { %v3958_v51 = vadd.f32 %v3956_v44, %v3947_v26 }
0x3cbc   :  { %v3960_v8 = vsel %vm3959_vm4, %v3958_v51, -inf }
0x3cbd   :  { %3961 = vmax.xlane.f32.xlu1 %v3960_v8 }
0x3cce   :  { %3085 = vrot.lane.b32.xlu1 %v5639_v19, %s4889_s27 }
0x3cd2   :  { %3513 = vrot.lane.b32.xlu1 %v5716_v43, %s4889_s27  ;;  %v3782_v43 = vmul.f32 %v4853_v49, %v3780_v4 }
0x3cd6   :  { %3653 = vrot.lane.b32.xlu1 %v5735_v24, %s4889_s27 }
0x3d4a   :  { %v3962_v48 = vpop.xlane.xlu1 %3961 }
0x3d4b   :  { %v3963_v53 = vsub.f32 %v3958_v51, %v3962_v48 }
0x3d4d   :  { %v3964_v17 = vmul.f32 1.442695, %v3963_v53 }
0x3d4e   :  { %v3086_v54 = vpop.permute.xlu1 %3085 }
0x3d4f   :  { %4856 = vpow2.f32 %v3964_v17  ;;  %3088 = vst.msk [vmem:[#allocation4 + $0x38] sm:$0xff] %vm271_vm1, %v3086_v54 }
0x3d52   :  { %v3514_v60 = vpop.permute.xlu1 %3513 }
0x3d53   :  { %3516 = vst.msk [vmem:[#allocation4 + $0x20] sm:$0xff] %vm271_vm1, %v3514_v60 }
0x3d56   :  { %v3654_v39 = vpop.permute.xlu1 %3653 }
0x3d57   :  { %3656 = vst.msk [vmem:[#allocation4 + $0x18] sm:$0xff] %vm271_vm1, %v3654_v39 }
0x3d59   :  { %v4857_v19 = vpop.eup %4856 }
0x3d5a   :  { %v3966_v34 = vsel %vm3959_vm4, %v4857_v19, 0.0 }
0x3d5b   :  { %3967 = vadd.xlane.f32.xlu0 %v3966_v34 }
0x3d71   :  { %3789 = vrot.lane.b32.xlu0 %v3782_v43, %s4889_s27 }
0x3de8   :  { %v3968_v24 = vpop.xlane.xlu0 %3967 }
0x3de9   :  { %4858 = vlog2.f32 %v3968_v24 }
0x3dec   :  { %v3790_v52 = vpop.permute.xlu0 %3789 }
0x3ded   :  { %3792 = vst.msk [vmem:[#allocation4 + $0x10] sm:$0xff] %vm271_vm1, %v3790_v52 }
0x3df3   :  { %v4859_v1 = vpop.eup %4858 }
0x3df4   :  { %v3970_v10 = vmul.f32 0.6931472, %v4859_v1 }
0x3df6   :  { %v3971_v5 = vadd.f32 %v3970_v10, %v3962_v48 }
0x3df8   :  { %v3972_v20 = vsub.f32 %v3958_v51, %v3971_v5 }
0x3dfa   :  { %3973 = vst.msk [vmem:[%s5789_s4] sm:$0xff] %vm3959_vm4, %v3972_v20 }
0x3dfb   :  { %3978 = vsyncpa [#allocation6], 1 }

</bundles_post_ra>
